<compile_context>
chip_gen: v6e
topology: v6e:2x2x1
jax: 0.10.0
libtpu: 0.0.40
codegen_flags: <defaults>
</compile_context>

<pallas_src>
import jax
import jax.numpy as jnp
from jax.experimental import pallas as pl
from jax.experimental.pallas import tpu as pltpu


_VMEM_LIMIT_BYTES = 48 * 1024 * 1024   # explicit scoped-VMEM cap; fits v7x's 64 MiB


def _compiler_params():
    return pltpu.CompilerParams(
        dimension_semantics=("parallel",),      # megacore-shard the row-tile grid (v7x)
        vmem_limit_bytes=_VMEM_LIMIT_BYTES,
    )


def _pick_row_tile(m, target):
    """Row tile: a multiple of 16 (bf16 sublane packing) that divides m, is
    <= target, and leaves >= 2 grid blocks whenever m >= 32 so the "parallel"
    grid axis can feed both v7x TensorCores and the DMA pipeline has work to
    overlap.  Falls back to a single full block (always legal)."""
    if m < 32 or m % 16 != 0:
        # TODO(synk): cdiv grid with a masked partial last tile for ragged m.
        return m
    cap = min(target, m // 2)
    t = (cap // 16) * 16
    while t >= 16:
        if m % t == 0:
            return t
        t -= 16
    return m


# ----------------------------------------------------------------------------
# Fused conv (im2col matmul) + bias + 2x2 max-pool kernel
# ----------------------------------------------------------------------------

def _conv_pool_kernel(p_ref, w_ref, b_ref, o_ref):
    # p_ref: [4, TM, K] bf16 patches (one slab per 2x2-pool corner)
    # w_ref: [K, N]  bf16 (VMEM-resident across the grid)
    # b_ref: [1, N]  f32
    # o_ref: [TM, N] bf16 pooled conv output
    four, tm, k = p_ref.shape
    n = w_ref.shape[1]
    # One MXU pass for all four pool corners: [4,TM,K] -> [4*TM,K] is a pure
    # leading-dim merge (TM is a multiple of 16), no relayout.
    p = p_ref[...].reshape(four * tm, k)
    acc = jnp.dot(p, w_ref[...], preferred_element_type=jnp.float32)   # [4*TM, N]
    # max(conv + b) == max(conv) + b (bias is constant over the pool window)
    pooled = jnp.max(acc.reshape(four, tm, n), axis=0) + b_ref[...]
    o_ref[...] = pooled.astype(o_ref.dtype)
    # TODO(synk): conv outputs (N=32/64) are lane-sparse (masked stores); a
    # lane-dense [TM/4, 4N] store needs a minor-dim relayout -- revisit after
    # checking whether vst.msk is the saturating slot in the bundle dump.


def conv_pool(patches4, w, b, *, row_tile_target=1024):
    """patches4: [4, Mp, K] bf16, w: [K, N] bf16, b: [N] f32 -> [Mp, N] bf16."""
    four, mp, k = patches4.shape
    assert four == 4
    assert mp % 16 == 0, "conv row count must be 16-aligned (B*Hp*Wp always is)"
    k2, n = w.shape
    assert k == k2
    tm = _pick_row_tile(mp, row_tile_target)
    grid = (mp // tm,)
    return pl.pallas_call(
        _conv_pool_kernel,
        out_shape=jax.ShapeDtypeStruct((mp, n), jnp.bfloat16),
        grid=grid,
        in_specs=[
            pl.BlockSpec((4, tm, k), lambda i: (0, i, 0)),   # row-tiled patches
            pl.BlockSpec((k, n), lambda i: (0, 0)),          # weight stays resident
            pl.BlockSpec((1, n), lambda i: (0, 0)),          # bias stays resident
        ],
        out_specs=pl.BlockSpec((tm, n), lambda i: (i, 0)),
        compiler_params=_compiler_params(),
    )(patches4, w, b.reshape(1, n))


# ----------------------------------------------------------------------------
# Fused classifier head: fc1 + ReLU (+dropout=identity) + fc2 + softmax + parity
# ----------------------------------------------------------------------------

def _head_kernel(x_ref, w1_ref, b1_ref, w2_ref, b2_ref, par_ref, o_ref):
    h = jnp.dot(x_ref[...], w1_ref[...], preferred_element_type=jnp.float32)
    h = jnp.maximum(h + b1_ref[...], 0.0)            # fc1 + ReLU (f32)
    # F.dropout(p=0.5, training=False) -> identity at inference
    logits = jnp.dot(h.astype(w2_ref.dtype), w2_ref[...],
                     preferred_element_type=jnp.float32) + b2_ref[...]   # [TM, 10]
    m = jnp.max(logits, axis=-1, keepdims=True)      # softmax(dim=1), f32
    e = jnp.exp(logits - m)
    inv = pl.reciprocal(jnp.sum(e, axis=-1, keepdims=True), approx=True)  # EUP slot
    probs = e * inv
    # Scallop parity head on the VPU: two masked row-sums (par_ref is [2, 10];
    # row 0 = odd-digit mask -> even(0), row 1 = even-digit mask -> even(1)).
    p_odd = jnp.sum(probs * par_ref[0:1, :], axis=-1, keepdims=True)
    p_even = jnp.sum(probs * par_ref[1:2, :], axis=-1, keepdims=True)
    o_ref[...] = jnp.concatenate([p_odd, p_even], axis=-1).astype(o_ref.dtype)


def head_forward(x, w1, b1, w2, b2, parity, *, row_tile_target=1024):
    m, k = x.shape
    tm = _pick_row_tile(m, row_tile_target)
    grid = (m // tm,)
    n1 = w1.shape[1]
    n2 = w2.shape[1]
    no = parity.shape[0]
    return pl.pallas_call(
        _head_kernel,
        out_shape=jax.ShapeDtypeStruct((m, no), jnp.float32),
        grid=grid,
        in_specs=[
            pl.BlockSpec((tm, k), lambda i: (i, 0)),
            pl.BlockSpec((k, n1), lambda i: (0, 0)),    # fc1_w pinned in VMEM
            pl.BlockSpec((1, n1), lambda i: (0, 0)),
            pl.BlockSpec((k, n2), lambda i: (0, 0)),    # fc2_w pinned in VMEM
            pl.BlockSpec((1, n2), lambda i: (0, 0)),
            pl.BlockSpec((no, n2), lambda i: (0, 0)),   # parity masks pinned
        ],
        out_specs=pl.BlockSpec((tm, no), lambda i: (i, 0)),
        compiler_params=_compiler_params(),
    )(x, w1, b1.reshape(1, n1), w2, b2.reshape(1, n2), parity)
    # TODO(synk): for tiny batches, fuse conv2 + flatten + head into one call
    # (or cross-call-prefetch fc1_w during the conv kernels) to hide the ~2 MiB
    # fc1 weight DMA behind conv compute.


# ----------------------------------------------------------------------------
# Glue: corner-major im2col (strided slices, no transpose), params, forward
# ----------------------------------------------------------------------------

def im2col_pool_corners(x, k, k_pad=None):
    """x: [B, H, W, C] NHWC (bf16) -> patches [4, B*Hp*Wp, Kp] bf16.

    Row m is ordered (b, hp, wp); the leading axis enumerates the 4 conv-output
    positions (2hp+di, 2wp+dj) feeding the 2x2/stride-2 max-pool window at
    (hp, wp).  K ordering is (kh, kw, cin) to match the transposed torch weight.
    Built from strided slices + stacks + view-reshapes only (no transpose op),
    so XLA emits a single fusion that reads x once and writes the slab once.
    """
    # TODO(synk): full in-kernel patch extraction (read activations once from
    # HBM, no k*k-blown slab) is the remaining HBM-traffic win; kept as XLA
    # glue to stay within Mosaic's robustly-supported layout set.
    b, h, w, c = x.shape
    ho, wo = h - k + 1, w - k + 1
    hp, wp = ho // 2, wo // 2
    kdim = k * k * c
    x = x.astype(jnp.bfloat16)
    slabs = []
    for di in range(2):
        for dj in range(2):
            cols = []
            for i in range(k):
                for j in range(k):
                    r0, c0 = di + i, dj + j
                    cols.append(x[:, r0:r0 + 2 * hp - 1:2, c0:c0 + 2 * wp - 1:2, :])
            slab = jnp.stack(cols, axis=3)                 # [B, Hp, Wp, k*k, C]
            slabs.append(slab.reshape(b * hp * wp, kdim))  # view reshape
    patches = jnp.stack(slabs, axis=0)                     # [4, M, K]
    if k_pad is not None and k_pad > kdim:
        patches = jnp.pad(patches, ((0, 0), (0, 0), (0, k_pad - kdim)))
    return patches


def init_params(key):
    ks = jax.random.split(key, 8)

    def _w(kk, shape, fan_in):
        return jax.random.normal(kk, shape, jnp.float32) / jnp.sqrt(fan_in)

    params = {}
    # conv1: torch layout [32, 1, 5, 5] -> im2col layout [5*5*1, 32] (kh, kw, cin),
    # K zero-padded 25 -> 32 for aligned MXU feeds (patches padded to match).
    w1 = _w(ks[0], (32, 1, 5, 5), 25)
    w1 = jnp.transpose(w1, (2, 3, 1, 0)).reshape(25, 32)
    params["conv1_w"] = jnp.pad(w1, ((0, 7), (0, 0))).astype(jnp.bfloat16)
    params["conv1_b"] = _w(ks[1], (32,), 25)
    # conv2: torch layout [64, 32, 5, 5] -> im2col layout [5*5*32, 64]
    w2 = _w(ks[2], (64, 32, 5, 5), 800)
    params["conv2_w"] = jnp.transpose(w2, (2, 3, 1, 0)).reshape(800, 64).astype(jnp.bfloat16)
    params["conv2_b"] = _w(ks[3], (64,), 800)
    # fc1 / fc2 stored as [in, out], bf16 for the MXU
    params["fc1_w"] = _w(ks[4], (1024, 1024), 1024).astype(jnp.bfloat16)
    params["fc1_b"] = _w(ks[5], (1024,), 1024)
    params["fc2_w"] = _w(ks[6], (1024, 10), 1024).astype(jnp.bfloat16)
    params["fc2_b"] = _w(ks[7], (10,), 1024)
    # Scallop parity masks [2, 10]: row 0 = even(0) (odd digits), row 1 = even(1) (even digits)
    parity = jnp.stack(
        [jnp.array([float(d % 2 == 1) for d in range(10)], jnp.float32),
         jnp.array([float(d % 2 == 0) for d in range(10)], jnp.float32)],
        axis=0)                                              # [2, 10]
    params["parity"] = parity
    return params


@jax.jit
def mnist_parity_forward(params, x_nchw):
    # NCHW -> NHWC, bf16 before any patch construction (halves glue traffic)
    x = jnp.transpose(x_nchw, (0, 2, 3, 1)).astype(jnp.bfloat16)    # [B, 28, 28, 1]
    b = x.shape[0]

    # conv1 (k=5, valid) + 2x2 max-pool, fused in one Pallas kernel (K padded to 32)
    p1 = im2col_pool_corners(x, 5, k_pad=32)                        # [4, B*144, 32]
    y1 = conv_pool(p1, params["conv1_w"], params["conv1_b"])        # [B*144, 32] bf16
    x1 = y1.reshape(b, 12, 12, 32)

    # conv2 (k=5, valid) + 2x2 max-pool, fused
    p2 = im2col_pool_corners(x1, 5)                                 # [4, B*16, 800]
    y2 = conv_pool(p2, params["conv2_w"], params["conv2_b"])        # [B*16, 64] bf16
    x2 = y2.reshape(b, 4, 4, 64)

    # flatten to 1024 features matching torch's x.view(-1, 1024) on NCHW
    # (torch flattens (C, H, W); ours is (H, W, C) -> transpose back first).
    flat = jnp.transpose(x2, (0, 3, 1, 2)).reshape(b, 1024)

    # fc1 + ReLU + (dropout=identity) + fc2 + softmax + parity, fused in one kernel
    return head_forward(flat, params["fc1_w"], params["fc1_b"],
                        params["fc2_w"], params["fc2_b"], params["parity"])   # [B, 2]


if __name__ == "__main__":
    key = jax.random.PRNGKey(0)
    pkey, xkey = jax.random.split(key)
    params = init_params(pkey)
    # MNIST-shaped input (28x28 required so the flatten yields 1024 features)
    x = jax.random.normal(xkey, (2, 1, 28, 28), jnp.float32)
    out = mnist_parity_forward(params, x)
    out = jax.block_until_ready(out)
    assert out.shape == (2, 2)
    assert bool(jnp.all(jnp.isfinite(out)))
    # parity probabilities partition the softmax mass -> rows sum to ~1
    assert bool(jnp.all(jnp.abs(jnp.sum(out, axis=-1) - 1.0) < 1e-2))
    print("KERNEL_OK")
</pallas_src>

<mosaic_0001>
module attributes {stable_mosaic.version = 11 : i64} {
  func.func @_conv_pool_kernel(%arg0: i32, %arg1: memref<4x144x32xbf16, #tpu.memory_space<vmem>>, %arg2: memref<32x32xbf16, #tpu.memory_space<vmem>>, %arg3: memref<1x32xf32, #tpu.memory_space<vmem>>, %arg4: memref<144x32xbf16, #tpu.memory_space<vmem>>) attributes {dimension_semantics = [#tpu.dimension_semantics<parallel>], iteration_bounds = array<i64: 2>, scalar_prefetch = 0 : i64, scratch_operands = 0 : i64, tpu.core_type = #tpu.core_type<tc>, window_params = [{transform_indices = @transform_0, window_bounds = array<i64: 4, 144, 32>}, {pipeline_mode = #tpu.pipeline_mode<synchronous>, transform_indices = @transform_1, window_bounds = array<i64: 32, 32>}, {pipeline_mode = #tpu.pipeline_mode<synchronous>, transform_indices = @transform_2, window_bounds = array<i64: 1, 32>}, {transform_indices = @transform_3, window_bounds = array<i64: 144, 32>}]} {
    %c0 = arith.constant 0 : index
    %c0_0 = arith.constant 0 : index
    %c0_1 = arith.constant 0 : index
    %0 = vector.load %arg1[%c0, %c0_0, %c0_1] : memref<4x144x32xbf16, #tpu.memory_space<vmem>>, vector<4x144x32xbf16>
    %1 = vector.shape_cast %0 : vector<4x144x32xbf16> to vector<576x32xbf16>
    %c0_2 = arith.constant 0 : index
    %c0_3 = arith.constant 0 : index
    %2 = vector.load %arg2[%c0_2, %c0_3] : memref<32x32xbf16, #tpu.memory_space<vmem>>, vector<32x32xbf16>
    %cst = arith.constant dense<0.000000e+00> : vector<576x32xf32>
    %3 = tpu.matmul %1, %2, %cst {dimension_numbers = #tpu.dot_dimension_numbers<[1], [0], [0], [1], [0, 0, 1, 1], [], []>} : vector<576x32xbf16>, vector<32x32xbf16>, vector<576x32xf32> -> vector<576x32xf32>
    %4 = vector.shape_cast %3 : vector<576x32xf32> to vector<4x144x32xf32>
    %cst_4 = arith.constant dense<0xFF800000> : vector<144x32xf32>
    %5 = vector.multi_reduction <maximumf>, %4, %cst_4 [0] : vector<4x144x32xf32> to vector<144x32xf32>
    %c0_5 = arith.constant 0 : index
    %c0_6 = arith.constant 0 : index
    %6 = vector.load %arg3[%c0_5, %c0_6] : memref<1x32xf32, #tpu.memory_space<vmem>>, vector<1x32xf32>
    %7 = vector.broadcast %6 : vector<1x32xf32> to vector<144x32xf32>
    %8 = arith.addf %5, %7 : vector<144x32xf32>
    %9 = arith.truncf %8 : vector<144x32xf32> to vector<144x32xbf16>
    %c0_7 = arith.constant 0 : index
    %c0_8 = arith.constant 0 : index
    %10 = vector.load %arg4[%c0_7, %c0_8] : memref<144x32xbf16, #tpu.memory_space<vmem>>, vector<144x32xbf16>
    tpu.vector_store %arg4[%c0_7, %c0_8], %9 {strides = array<i32>} : memref<144x32xbf16, #tpu.memory_space<vmem>>, vector<144x32xbf16>,
    return
  }
  func.func @transform_0(%arg0: i32) -> (i32, i32, i32) {
    %c0_i32 = arith.constant 0 : i32
    %c0_i32_0 = arith.constant 0 : i32
    %c0_i32_1 = arith.constant 0 : i32
    return %c0_i32, %arg0, %c0_i32_0 : i32, i32, i32
  }
  func.func @transform_1(%arg0: i32) -> (i32, i32) {
    %c0_i32 = arith.constant 0 : i32
    %c0_i32_0 = arith.constant 0 : i32
    %c0_i32_1 = arith.constant 0 : i32
    return %c0_i32, %c0_i32_0 : i32, i32
  }
  func.func @transform_2(%arg0: i32) -> (i32, i32) {
    %c0_i32 = arith.constant 0 : i32
    %c0_i32_0 = arith.constant 0 : i32
    %c0_i32_1 = arith.constant 0 : i32
    return %c0_i32, %c0_i32_0 : i32, i32
  }
  func.func @transform_3(%arg0: i32) -> (i32, i32) {
    %c0_i32 = arith.constant 0 : i32
    %c0_i32_0 = arith.constant 0 : i32
    return %arg0, %c0_i32 : i32, i32
  }
}

module attributes {stable_mosaic.version = 11 : i64} {
  func.func @_conv_pool_kernel(%arg0: i32, %arg1: memref<4x16x800xbf16, #tpu.memory_space<vmem>>, %arg2: memref<800x64xbf16, #tpu.memory_space<vmem>>, %arg3: memref<1x64xf32, #tpu.memory_space<vmem>>, %arg4: memref<16x64xbf16, #tpu.memory_space<vmem>>) attributes {dimension_semantics = [#tpu.dimension_semantics<parallel>], iteration_bounds = array<i64: 2>, scalar_prefetch = 0 : i64, scratch_operands = 0 : i64, tpu.core_type = #tpu.core_type<tc>, window_params = [{transform_indices = @transform_0, window_bounds = array<i64: 4, 16, 800>}, {pipeline_mode = #tpu.pipeline_mode<synchronous>, transform_indices = @transform_1, window_bounds = array<i64: 800, 64>}, {pipeline_mode = #tpu.pipeline_mode<synchronous>, transform_indices = @transform_2, window_bounds = array<i64: 1, 64>}, {transform_indices = @transform_3, window_bounds = array<i64: 16, 64>}]} {
    %c0 = arith.constant 0 : index
    %c0_0 = arith.constant 0 : index
    %c0_1 = arith.constant 0 : index
    %0 = vector.load %arg1[%c0, %c0_0, %c0_1] : memref<4x16x800xbf16, #tpu.memory_space<vmem>>, vector<4x16x800xbf16>
    %1 = vector.shape_cast %0 : vector<4x16x800xbf16> to vector<64x800xbf16>
    %c0_2 = arith.constant 0 : index
    %c0_3 = arith.constant 0 : index
    %2 = vector.load %arg2[%c0_2, %c0_3] : memref<800x64xbf16, #tpu.memory_space<vmem>>, vector<800x64xbf16>
    %cst = arith.constant dense<0.000000e+00> : vector<64x64xf32>
    %3 = tpu.matmul %1, %2, %cst {dimension_numbers = #tpu.dot_dimension_numbers<[1], [0], [0], [1], [0, 0, 1, 1], [], []>} : vector<64x800xbf16>, vector<800x64xbf16>, vector<64x64xf32> -> vector<64x64xf32>
    %4 = vector.shape_cast %3 : vector<64x64xf32> to vector<4x16x64xf32>
    %cst_4 = arith.constant dense<0xFF800000> : vector<16x64xf32>
    %5 = vector.multi_reduction <maximumf>, %4, %cst_4 [0] : vector<4x16x64xf32> to vector<16x64xf32>
    %c0_5 = arith.constant 0 : index
    %c0_6 = arith.constant 0 : index
    %6 = vector.load %arg3[%c0_5, %c0_6] : memref<1x64xf32, #tpu.memory_space<vmem>>, vector<1x64xf32>
    %7 = vector.broadcast %6 : vector<1x64xf32> to vector<16x64xf32>
    %8 = arith.addf %5, %7 : vector<16x64xf32>
    %9 = arith.truncf %8 : vector<16x64xf32> to vector<16x64xbf16>
    %c0_7 = arith.constant 0 : index
    %c0_8 = arith.constant 0 : index
    %10 = vector.load %arg4[%c0_7, %c0_8] : memref<16x64xbf16, #tpu.memory_space<vmem>>, vector<16x64xbf16>
    tpu.vector_store %arg4[%c0_7, %c0_8], %9 {strides = array<i32>} : memref<16x64xbf16, #tpu.memory_space<vmem>>, vector<16x64xbf16>,
    return
  }
  func.func @transform_0(%arg0: i32) -> (i32, i32, i32) {
    %c0_i32 = arith.constant 0 : i32
    %c0_i32_0 = arith.constant 0 : i32
    %c0_i32_1 = arith.constant 0 : i32
    return %c0_i32, %arg0, %c0_i32_0 : i32, i32, i32
  }
  func.func @transform_1(%arg0: i32) -> (i32, i32) {
    %c0_i32 = arith.constant 0 : i32
    %c0_i32_0 = arith.constant 0 : i32
    %c0_i32_1 = arith.constant 0 : i32
    return %c0_i32, %c0_i32_0 : i32, i32
  }
  func.func @transform_2(%arg0: i32) -> (i32, i32) {
    %c0_i32 = arith.constant 0 : i32
    %c0_i32_0 = arith.constant 0 : i32
    %c0_i32_1 = arith.constant 0 : i32
    return %c0_i32, %c0_i32_0 : i32, i32
  }
  func.func @transform_3(%arg0: i32) -> (i32, i32) {
    %c0_i32 = arith.constant 0 : i32
    %c0_i32_0 = arith.constant 0 : i32
    return %arg0, %c0_i32 : i32, i32
  }
}

module attributes {stable_mosaic.version = 11 : i64} {
  func.func @_head_kernel(%arg0: i32, %arg1: memref<2x1024xbf16, #tpu.memory_space<vmem>>, %arg2: memref<1024x1024xbf16, #tpu.memory_space<vmem>>, %arg3: memref<1x1024xf32, #tpu.memory_space<vmem>>, %arg4: memref<1024x10xbf16, #tpu.memory_space<vmem>>, %arg5: memref<1x10xf32, #tpu.memory_space<vmem>>, %arg6: memref<2x10xf32, #tpu.memory_space<vmem>>, %arg7: memref<2x2xf32, #tpu.memory_space<vmem>>) attributes {dimension_semantics = [#tpu.dimension_semantics<parallel>], iteration_bounds = array<i64: 1>, scalar_prefetch = 0 : i64, scratch_operands = 0 : i64, tpu.core_type = #tpu.core_type<tc>, window_params = [{transform_indices = @transform_0, window_bounds = array<i64: 2, 1024>}, {pipeline_mode = #tpu.pipeline_mode<synchronous>, transform_indices = @transform_1, window_bounds = array<i64: 1024, 1024>}, {pipeline_mode = #tpu.pipeline_mode<synchronous>, transform_indices = @transform_2, window_bounds = array<i64: 1, 1024>}, {pipeline_mode = #tpu.pipeline_mode<synchronous>, transform_indices = @transform_3, window_bounds = array<i64: 1024, 10>}, {pipeline_mode = #tpu.pipeline_mode<synchronous>, transform_indices = @transform_4, window_bounds = array<i64: 1, 10>}, {pipeline_mode = #tpu.pipeline_mode<synchronous>, transform_indices = @transform_5, window_bounds = array<i64: 2, 10>}, {transform_indices = @transform_6, window_bounds = array<i64: 2, 2>}]} {
    %c0 = arith.constant 0 : index
    %c0_0 = arith.constant 0 : index
    %0 = vector.load %arg1[%c0, %c0_0] : memref<2x1024xbf16, #tpu.memory_space<vmem>>, vector<2x1024xbf16>
    %c0_1 = arith.constant 0 : index
    %c0_2 = arith.constant 0 : index
    %1 = vector.load %arg2[%c0_1, %c0_2] : memref<1024x1024xbf16, #tpu.memory_space<vmem>>, vector<1024x1024xbf16>
    %cst = arith.constant dense<0.000000e+00> : vector<2x1024xf32>
    %2 = tpu.matmul %0, %1, %cst {dimension_numbers = #tpu.dot_dimension_numbers<[1], [0], [0], [1], [0, 0, 1, 1], [], []>} : vector<2x1024xbf16>, vector<1024x1024xbf16>, vector<2x1024xf32> -> vector<2x1024xf32>
    %c0_3 = arith.constant 0 : index
    %c0_4 = arith.constant 0 : index
    %3 = vector.load %arg3[%c0_3, %c0_4] : memref<1x1024xf32, #tpu.memory_space<vmem>>, vector<1x1024xf32>
    %4 = vector.broadcast %3 : vector<1x1024xf32> to vector<2x1024xf32>
    %5 = arith.addf %2, %4 : vector<2x1024xf32>
    %cst_5 = arith.constant 0.000000e+00 : f32
    %6 = vector.broadcast %cst_5 : f32 to vector<2x1024xf32>
    %7 = arith.maximumf %5, %6 : vector<2x1024xf32>
    %8 = arith.truncf %7 : vector<2x1024xf32> to vector<2x1024xbf16>
    %c0_6 = arith.constant 0 : index
    %c0_7 = arith.constant 0 : index
    %9 = vector.load %arg4[%c0_6, %c0_7] : memref<1024x10xbf16, #tpu.memory_space<vmem>>, vector<1024x10xbf16>
    %cst_8 = arith.constant dense<0.000000e+00> : vector<2x10xf32>
    %10 = tpu.matmul %8, %9, %cst_8 {dimension_numbers = #tpu.dot_dimension_numbers<[1], [0], [0], [1], [0, 0, 1, 1], [], []>} : vector<2x1024xbf16>, vector<1024x10xbf16>, vector<2x10xf32> -> vector<2x10xf32>
    %c0_9 = arith.constant 0 : index
    %c0_10 = arith.constant 0 : index
    %11 = vector.load %arg5[%c0_9, %c0_10] : memref<1x10xf32, #tpu.memory_space<vmem>>, vector<1x10xf32>
    %12 = vector.broadcast %11 : vector<1x10xf32> to vector<2x10xf32>
    %13 = arith.addf %10, %12 : vector<2x10xf32>
    %cst_11 = arith.constant dense<0xFF800000> : vector<2xf32>
    %14 = vector.multi_reduction <maximumf>, %13, %cst_11 [1] : vector<2x10xf32> to vector<2xf32>
    %15 = vector.shape_cast %14 : vector<2xf32> to vector<2x1xf32>
    %16 = vector.broadcast %15 : vector<2x1xf32> to vector<2x10xf32>
    %17 = arith.subf %13, %16 : vector<2x10xf32>
    %18 = math.exp %17 : vector<2x10xf32>
    %cst_12 = arith.constant dense<0.000000e+00> : vector<2xf32>
    %19 = vector.multi_reduction <add>, %18, %cst_12 [1] : vector<2x10xf32> to vector<2xf32>
    %20 = vector.shape_cast %19 : vector<2xf32> to vector<2x1xf32>
    %21 = tpu.reciprocal %20 {approx = true} : vector<2x1xf32> -> vector<2x1xf32>
    %22 = vector.broadcast %21 : vector<2x1xf32> to vector<2x10xf32>
    %23 = arith.mulf %18, %22 : vector<2x10xf32>
    %c0_13 = arith.constant 0 : index
    %c0_14 = arith.constant 0 : index
    %24 = vector.load %arg6[%c0_13, %c0_14] : memref<2x10xf32, #tpu.memory_space<vmem>>, vector<1x10xf32>
    %25 = vector.broadcast %24 : vector<1x10xf32> to vector<2x10xf32>
    %26 = arith.mulf %23, %25 : vector<2x10xf32>
    %cst_15 = arith.constant dense<0.000000e+00> : vector<2xf32>
    %27 = vector.multi_reduction <add>, %26, %cst_15 [1] : vector<2x10xf32> to vector<2xf32>
    %28 = vector.shape_cast %27 : vector<2xf32> to vector<2x1xf32>
    %c1 = arith.constant 1 : index
    %c0_16 = arith.constant 0 : index
    %29 = vector.load %arg6[%c1, %c0_16] : memref<2x10xf32, #tpu.memory_space<vmem>>, vector<1x10xf32>
    %30 = vector.broadcast %29 : vector<1x10xf32> to vector<2x10xf32>
    %31 = arith.mulf %23, %30 : vector<2x10xf32>
    %cst_17 = arith.constant dense<0.000000e+00> : vector<2xf32>
    %32 = vector.multi_reduction <add>, %31, %cst_17 [1] : vector<2x10xf32> to vector<2xf32>
    %33 = vector.shape_cast %32 : vector<2xf32> to vector<2x1xf32>
    %34 = tpu.concatenate %28, %33 in 1 : vector<2x1xf32>, vector<2x1xf32> -> vector<2x2xf32>
    %c0_18 = arith.constant 0 : index
    %c0_19 = arith.constant 0 : index
    %35 = vector.load %arg7[%c0_18, %c0_19] : memref<2x2xf32, #tpu.memory_space<vmem>>, vector<2x2xf32>
    tpu.vector_store %arg7[%c0_18, %c0_19], %34 {strides = array<i32>} : memref<2x2xf32, #tpu.memory_space<vmem>>, vector<2x2xf32>,
    return
  }
  func.func @transform_0(%arg0: i32) -> (i32, i32) {
    %c0_i32 = arith.constant 0 : i32
    %c0_i32_0 = arith.constant 0 : i32
    return %arg0, %c0_i32 : i32, i32
  }
  func.func @transform_1(%arg0: i32) -> (i32, i32) {
    %c0_i32 = arith.constant 0 : i32
    %c0_i32_0 = arith.constant 0 : i32
    %c0_i32_1 = arith.constant 0 : i32
    return %c0_i32, %c0_i32_0 : i32, i32
  }
  func.func @transform_2(%arg0: i32) -> (i32, i32) {
    %c0_i32 = arith.constant 0 : i32
    %c0_i32_0 = arith.constant 0 : i32
    %c0_i32_1 = arith.constant 0 : i32
    return %c0_i32, %c0_i32_0 : i32, i32
  }
  func.func @transform_3(%arg0: i32) -> (i32, i32) {
    %c0_i32 = arith.constant 0 : i32
    %c0_i32_0 = arith.constant 0 : i32
    %c0_i32_1 = arith.constant 0 : i32
    return %c0_i32, %c0_i32_0 : i32, i32
  }
  func.func @transform_4(%arg0: i32) -> (i32, i32) {
    %c0_i32 = arith.constant 0 : i32
    %c0_i32_0 = arith.constant 0 : i32
    %c0_i32_1 = arith.constant 0 : i32
    return %c0_i32, %c0_i32_0 : i32, i32
  }
  func.func @transform_5(%arg0: i32) -> (i32, i32) {
    %c0_i32 = arith.constant 0 : i32
    %c0_i32_0 = arith.constant 0 : i32
    %c0_i32_1 = arith.constant 0 : i32
    return %c0_i32, %c0_i32_0 : i32, i32
  }
  func.func @transform_6(%arg0: i32) -> (i32, i32) {
    %c0_i32 = arith.constant 0 : i32
    %c0_i32_0 = arith.constant 0 : i32
    return %arg0, %c0_i32 : i32, i32
  }
}

</mosaic_0001>

<bundles_post_ra>
// kernel: mnist_parity_forward.3
= control target key start
LH: loop header
LB: loop body
LE: loop exit
PB: predicated region body
PF: predicated region fallthrough
CT: control target
= control target key end

     0   :  { %s1851_s12 = smov 0   ;;  %s1853_s13 = smov 0   ;;  %s2291_s0 = inlined_call_operand.vmem [shape: bf16[4,288,32], index: 0, kind: input, shape index: {}]   ;;  %s2292_s1 = inlined_call_operand.vmem [shape: bf16[32,32], index: 1, kind: input, shape index: {}]   ;;  %s2293_s2 = inlined_call_operand.vmem [shape: f32[1,32], index: 2, kind: input, shape index: {}]   ;;  %s2294_s3 = inlined_call_operand.vmem [shape: bf16[288,32], index: 3, kind: output, shape index: {}]  }
   0x1   :  { %s1855_s14 = smov 0  }
   0x2 LB: > { %s1504_s15 = sadd.s32 4294967295, %s1829_s14   ;;  %s1868_s16 = sadd.s32 1, %s1829_s14   ;;  %s1829_s14 = sphi %s1855_s14, %s2297_s14   ;;  %s1825_s13 = sphi %s1853_s13, %s2296_s13   ;;  %s1821_s12 = sphi %s1851_s12, %s2295_s12  }
   0x3   : > { %s17_s17 = ssub.s32 %s1829_s14, %s1868_s16  ;;  %s20_s18 = sadd.s32 1, %s1825_s13 }
   0x4   : > { %p18_p0 = scmp.eq.s32.totalorder %s17_s17, 0  ;;  %p27_p1 = scmp.ne.s32.totalorder %s1825_s13, %s1821_s12 }
   0x5   : > { %p28_p2 = scmp.eq.s32.totalorder %s1829_s14, 0  ;;  %p1507_p4 = scmp.ge.s32.totalorder %s1829_s14, 2 }
   0x6   : > { %s1877_s19 = scalar_select %p18_p0, %s1825_s13, %s20_s18  }
   0x7   : > { %p29_p3 = por %p28_p2, %p27_p1  ;;  %127 = sbr.rel (%p1507_p4) target bundleno = 35 (0x23), region = 24 }
   0xc   : > { %130 = sbr.rel (!%p29_p3) target bundleno = 35 (0x23), region = 28  ;;  %s132_s20 = sand.u32 (%p29_p3), 1, %s1825_s13  }
   0xd   : > { %s1606_s21 = smul.u32 (%p29_p3), 72, %s1829_s14 }
   0xe   : > { %s1743_s22 = smul.u32 (%p29_p3), 288, %s132_s20 }
   0xf   : > { %s1885_s25 = scalar_lea.vmem (%p29_p3), %s2291_s0, %s1606_s21 }
  0x10   : > { %v154_v0 = vld [vmem:[%s1885_s25] sm:$0xff] (%p29_p3)   ;;  %v158_v1 = vld [vmem:[%s1885_s25 + $0x8] sm:$0xff] (%p29_p3)   ;;  %v162_v2 = vld [vmem:[%s1885_s25 + $0x10] sm:$0xff] (%p29_p3)   ;;  %s1890_s26 = scalar_lea.vmem (%p29_p3), [#allocation2], %s1743_s22 }
  0x11   : > { %155 = vst [vmem:[%s1890_s26] sm:$0xff] %v154_v0   ;;  %159 = vst [vmem:[%s1890_s26 + $0x8] sm:$0xff] %v158_v1   ;;  %v166_v3 = vld [vmem:[%s1885_s25 + $0x18] sm:$0xff]   ;;  %v170_v4 = vld [vmem:[%s1885_s25 + $0x20] sm:$0xff]  }
  0x12   : > { %163 = vst [vmem:[%s1890_s26 + $0x10] sm:$0xff] %v162_v2   ;;  %v174_v5 = vld [vmem:[%s1885_s25 + $0x28] sm:$0xff]   ;;  %167 = vst [vmem:[%s1890_s26 + $0x18] sm:$0xff] %v166_v3   ;;  %v178_v6 = vld [vmem:[%s1885_s25 + $0x30] sm:$0xff]  }
  0x13   : > { %171 = vst [vmem:[%s1890_s26 + $0x20] sm:$0xff] %v170_v4   ;;  %175 = vst [vmem:[%s1890_s26 + $0x28] sm:$0xff] %v174_v5   ;;  %v182_v7 = vld [vmem:[%s1885_s25 + $0x38] sm:$0xff]   ;;  %v186_v8 = vld [vmem:[%s1885_s25 + $0x40] sm:$0xff]  }
  0x14   : > { %179 = vst [vmem:[%s1890_s26 + $0x30] sm:$0xff] %v178_v6   ;;  %183 = vst [vmem:[%s1890_s26 + $0x38] sm:$0xff] %v182_v7   ;;  %v190_v9 = vld [vmem:[%s1885_s25 + $0x90] sm:$0xff]   ;;  %v194_v10 = vld [vmem:[%s1885_s25 + $0x98] sm:$0xff]  }
  0x15   : > { %187 = vst [vmem:[%s1890_s26 + $0x40] sm:$0xff] %v186_v8   ;;  %v198_v11 = vld [vmem:[%s1885_s25 + $0xa0] sm:$0xff]   ;;  %191 = vst [vmem:[%s1890_s26 + $0x48] sm:$0xff] %v190_v9   ;;  %v202_v12 = vld [vmem:[%s1885_s25 + $0xa8] sm:$0xff]  }
  0x16   : > { %195 = vst [vmem:[%s1890_s26 + $0x50] sm:$0xff] %v194_v10   ;;  %199 = vst [vmem:[%s1890_s26 + $0x58] sm:$0xff] %v198_v11   ;;  %v206_v13 = vld [vmem:[%s1885_s25 + $0xb0] sm:$0xff]   ;;  %v210_v14 = vld [vmem:[%s1885_s25 + $0xb8] sm:$0xff]  }
  0x17   : > { %203 = vst [vmem:[%s1890_s26 + $0x60] sm:$0xff] %v202_v12   ;;  %207 = vst [vmem:[%s1890_s26 + $0x68] sm:$0xff] %v206_v13   ;;  %v214_v15 = vld [vmem:[%s1885_s25 + $0xc0] sm:$0xff]   ;;  %v218_v16 = vld [vmem:[%s1885_s25 + $0xc8] sm:$0xff]  }
  0x18   : > { %211 = vst [vmem:[%s1890_s26 + $0x70] sm:$0xff] %v210_v14   ;;  %v222_v17 = vld [vmem:[%s1885_s25 + $0xd0] sm:$0xff]   ;;  %215 = vst [vmem:[%s1890_s26 + $0x78] sm:$0xff] %v214_v15   ;;  %v226_v18 = vld [vmem:[%s1885_s25 + $0x120] sm:$0xff]  }
  0x19   : > { %219 = vst [vmem:[%s1890_s26 + $0x80] sm:$0xff] %v218_v16   ;;  %223 = vst [vmem:[%s1890_s26 + $0x88] sm:$0xff] %v222_v17   ;;  %v230_v19 = vld [vmem:[%s1885_s25 + $0x128] sm:$0xff]   ;;  %v234_v20 = vld [vmem:[%s1885_s25 + $0x130] sm:$0xff]  }
  0x1a   : > { %227 = vst [vmem:[%s1890_s26 + $0x90] sm:$0xff] %v226_v18   ;;  %231 = vst [vmem:[%s1890_s26 + $0x98] sm:$0xff] %v230_v19   ;;  %v238_v21 = vld [vmem:[%s1885_s25 + $0x138] sm:$0xff]   ;;  %v242_v22 = vld [vmem:[%s1885_s25 + $0x140] sm:$0xff]  }
  0x1b   : > { %235 = vst [vmem:[%s1890_s26 + $0xa0] sm:$0xff] %v234_v20   ;;  %v246_v23 = vld [vmem:[%s1885_s25 + $0x148] sm:$0xff]   ;;  %239 = vst [vmem:[%s1890_s26 + $0xa8] sm:$0xff] %v238_v21   ;;  %v250_v24 = vld [vmem:[%s1885_s25 + $0x150] sm:$0xff]  }
  0x1c   : > { %243 = vst [vmem:[%s1890_s26 + $0xb0] sm:$0xff] %v242_v22   ;;  %247 = vst [vmem:[%s1890_s26 + $0xb8] sm:$0xff] %v246_v23   ;;  %v254_v25 = vld [vmem:[%s1885_s25 + $0x158] sm:$0xff]   ;;  %v258_v26 = vld [vmem:[%s1885_s25 + $0x160] sm:$0xff]  }
  0x1d   : > { %251 = vst [vmem:[%s1890_s26 + $0xc0] sm:$0xff] %v250_v24   ;;  %255 = vst [vmem:[%s1890_s26 + $0xc8] sm:$0xff] %v254_v25   ;;  %v262_v27 = vld [vmem:[%s1885_s25 + $0x1b0] sm:$0xff]   ;;  %v266_v28 = vld [vmem:[%s1885_s25 + $0x1b8] sm:$0xff]  }
  0x1e   : > { %259 = vst [vmem:[%s1890_s26 + $0xd0] sm:$0xff] %v258_v26   ;;  %v270_v29 = vld [vmem:[%s1885_s25 + $0x1c0] sm:$0xff]   ;;  %263 = vst [vmem:[%s1890_s26 + $0xd8] sm:$0xff] %v262_v27   ;;  %v274_v30 = vld [vmem:[%s1885_s25 + $0x1c8] sm:$0xff]  }
  0x1f   : > { %267 = vst [vmem:[%s1890_s26 + $0xe0] sm:$0xff] %v266_v28   ;;  %271 = vst [vmem:[%s1890_s26 + $0xe8] sm:$0xff] %v270_v29   ;;  %v278_v31 = vld [vmem:[%s1885_s25 + $0x1d0] sm:$0xff]   ;;  %v282_v32 = vld [vmem:[%s1885_s25 + $0x1d8] sm:$0xff]  }
  0x20   : > { %275 = vst [vmem:[%s1890_s26 + $0xf0] sm:$0xff] %v274_v30   ;;  %279 = vst [vmem:[%s1890_s26 + $0xf8] sm:$0xff] %v278_v31   ;;  %v286_v33 = vld [vmem:[%s1885_s25 + $0x1e0] sm:$0xff]   ;;  %v290_v34 = vld [vmem:[%s1885_s25 + $0x1e8] sm:$0xff]  }
  0x21   : > { %283 = vst [vmem:[%s1890_s26 + $0x100] sm:$0xff] %v282_v32   ;;  %v294_v35 = vld [vmem:[%s1885_s25 + $0x1f0] sm:$0xff]   ;;  %287 = vst [vmem:[%s1890_s26 + $0x108] sm:$0xff] %v286_v33  }
  0x22   : > { %291 = vst [vmem:[%s1890_s26 + $0x110] sm:$0xff] %v290_v34   ;;  %295 = vst [vmem:[%s1890_s26 + $0x118] sm:$0xff] %v294_v35  }
  0x23 PF: > { %p1509_p5 = scmp.ge.s32.totalorder %s1829_s14, 1  ;;  %p464_p6 = scmp.lt.s32.totalorder %s1829_s14, 3 }
  0x25   : > { %p465_p7 = pnand %p1509_p5, %p464_p6 }
  0x26   : > { %s471_s29 = sand.u32 (!%p465_p7), 1, %s1821_s12   ;;  %s495_s7 = smul.u32 (!%p465_p7), 18, %s1504_s15 }
  0x27   : > { %468 = sbr.rel (%p465_p7) target bundleno = 328 (0x148), region = 69 }
  0x28   : > { %s1744_s5 = smul.u32 (!%p465_p7), 288, %s471_s29  ;;  %p496_p8 = scmp.lt.s32.totalorder (!%p465_p7), %s495_s7, 35 }
  0x2a   : > { %s1970_s6 = scalar_lea.vmem (!%p465_p7), [#allocation2], %s1744_s5 }
  0x2c   : > { %v1769_v36 = vld [vmem:[%s2292_s1 + $0x8] sm:$0xff]   ;;  %v1770_v37 = vld [vmem:[%s2292_s1] sm:$0xff]   ;;  %vm770_vm0 = vcmask 261120   ;;  %v1772_v39 = vld [vmem:[%s1970_s6 + $0x90] sm:$0xff]   ;;  %s2299_s7 = smov (!%p496_p8, %s495_s7), 35  ;;  %vm1423_vm1 = vcmask 257024  }
  0x2d   : > { %1663 = vmatprep.subr.bf16.mxu0 %v1769_v36  ;;  %1739 = vmatprep.subr.bf16.mxu1 %v1769_v36  ;;  %v1771_v38 = vld [vmem:[%s1970_s6] sm:$0xff]   ;;  %v1773_v40 = vld [vmem:[%s1970_s6 + $0x8] sm:$0xff]   ;;  %v1774_v41 = vld [vmem:[%s1970_s6 + $0x98] sm:$0xff]   ;;  %s1510_s10 = sshll.u32 %s2299_s7, 2 }
  0x2e   : > { %1664 = vmatpush3.bf16.msra.mxu0 %v1769_v36  ;;  %1741 = vmatpush3.bf16.msra.mxu1 %v1769_v36  ;;  %v1775_v42 = vld [vmem:[%s1970_s6 + $0x10] sm:$0xff]   ;;  %v1776_v43 = vld [vmem:[%s1970_s6 + $0xa0] sm:$0xff]   ;;  %v1777_v44 = vld [vmem:[%s1970_s6 + $0x18] sm:$0xff]   ;;  %s2124_s14 = scalar_lea.vmem %s2294_s3, %s1510_s10 }
  0x2f   : > { %1665 = vmatprep.subr.bf16.mxu0 %v1770_v37  ;;  %1740 = vmatprep.subr.bf16.mxu1 %v1770_v37  ;;  %v1778_v45 = vld [vmem:[%s1970_s6 + $0xa8] sm:$0xff]   ;;  %v1779_v46 = vld [vmem:[%s1970_s6 + $0x20] sm:$0xff]   ;;  %v1780_v47 = vld [vmem:[%s1970_s6 + $0xb0] sm:$0xff]  }
  0x30   : > { %1667 = vmatprep.mubr.msk.bf16.mxu0 %vm770_vm0, %v1771_v38  ;;  %1703 = vmatprep.mubr.msk.bf16.mxu1 %vm770_vm0, %v1772_v39  ;;  %v1781_v48 = vld [vmem:[%s1970_s6 + $0x28] sm:$0xff]   ;;  %v1782_v49 = vld [vmem:[%s1970_s6 + $0xb8] sm:$0xff]   ;;  %v1783_v50 = vld [vmem:[%s1970_s6 + $0x30] sm:$0xff]  }
  0x31   : > { %v1784_v51 = vld [vmem:[%s1970_s6 + $0xc0] sm:$0xff]   ;;  %v1785_v52 = vld [vmem:[%s1970_s6 + $0x38] sm:$0xff]   ;;  %v1786_v53 = vld [vmem:[%s1970_s6 + $0xc8] sm:$0xff]  }
  0x32   : > { %1666 = vmatpush3.bf16.msra.mxu0 %v1770_v37  ;;  %1742 = vmatpush3.bf16.msra.mxu1 %v1770_v37  ;;  %v1787_v54 = vld [vmem:[%s1970_s6 + $0x40] sm:$0xff]   ;;  %v1788_v55 = vld [vmem:[%s1970_s6 + $0xd0] sm:$0xff]   ;;  %v1789_v56 = vld [vmem:[%s1970_s6 + $0x48] sm:$0xff]  }
  0x33   : > { %v1790_v57 = vld [vmem:[%s1970_s6 + $0xd8] sm:$0xff]   ;;  %v1791_v58 = vld [vmem:[%s1970_s6 + $0x50] sm:$0xff]   ;;  %v1792_v59 = vld [vmem:[%s1970_s6 + $0xe0] sm:$0xff]  }
  0x34   : > { %v1793_v60 = vld [vmem:[%s1970_s6 + $0x58] sm:$0xff]   ;;  %v1794_v61 = vld [vmem:[%s1970_s6 + $0xe8] sm:$0xff]   ;;  %v1795_v62 = vld [vmem:[%s1970_s6 + $0x60] sm:$0xff]  }
  0x35   : > { %1668 = vmatmul.mubr.msk.bf16.vlgmr.msra.gmra.mxu0 %vm770_vm0, %v1773_v40  ;;  %1704 = vmatmul.mubr.msk.bf16.vlgmr.msra.gmra.mxu1 %vm770_vm0, %v1774_v41  ;;  %v1796_v63 = vld [vmem:[%s1970_s6 + $0xf0] sm:$0xff]   ;;  %v1797_v0 = vld [vmem:[%s1970_s6 + $0x68] sm:$0xff]   ;;  %v1798_v1 = vld [vmem:[%s1970_s6 + $0xf8] sm:$0xff]  }
  0x36   : > { %1671 = vmatprep.mubr.msk.bf16.mxu0 %vm770_vm0, %v1775_v42  ;;  %1707 = vmatprep.mubr.msk.bf16.mxu1 %vm770_vm0, %v1776_v43  ;;  %v1799_v2 = vld [vmem:[%s1970_s6 + $0x70] sm:$0xff]   ;;  %v1800_v3 = vld [vmem:[%s1970_s6 + $0x100] sm:$0xff]   ;;  %v1801_v4 = vld [vmem:[%s1970_s6 + $0x78] sm:$0xff]  }
  0x37   : > { %v1802_v5 = vld [vmem:[%s1970_s6 + $0x108] sm:$0xff]   ;;  %v1803_v6 = vld [vmem:[%s1970_s6 + $0x80] sm:$0xff]   ;;  %v1804_v7 = vld [vmem:[%s1970_s6 + $0x110] sm:$0xff]  }
  0x38   : > { %v1805_v8 = vld [vmem:[%s1970_s6 + $0x88] sm:$0xff]   ;;  %v1806_v9 = vld [vmem:[%s1970_s6 + $0x118] sm:$0xff]  }
  0x3d   : > { %1672 = vmatmul.mubr.msk.bf16.gmra.mxu0 %vm770_vm0, %v1777_v44  ;;  %1708 = vmatmul.mubr.msk.bf16.gmra.mxu1 %vm770_vm0, %v1778_v45 }
  0x3e   : > { %1675 = vmatprep.mubr.msk.bf16.mxu0 %vm770_vm0, %v1779_v46  ;;  %1711 = vmatprep.mubr.msk.bf16.mxu1 %vm770_vm0, %v1780_v47 }
  0x45   : > { %1676 = vmatmul.mubr.msk.bf16.gmra.mxu0 %vm770_vm0, %v1781_v48  ;;  %1712 = vmatmul.mubr.msk.bf16.gmra.mxu1 %vm770_vm0, %v1782_v49 }
  0x46   : > { %1679 = vmatprep.mubr.msk.bf16.mxu0 %vm770_vm0, %v1783_v50  ;;  %1715 = vmatprep.mubr.msk.bf16.mxu1 %vm770_vm0, %v1784_v51 }
  0x4d   : > { %1680 = vmatmul.mubr.msk.bf16.gmra.mxu0 %vm770_vm0, %v1785_v52  ;;  %1716 = vmatmul.mubr.msk.bf16.gmra.mxu1 %vm770_vm0, %v1786_v53 }
  0x4e   : > { %1683 = vmatprep.mubr.msk.bf16.mxu0 %vm770_vm0, %v1787_v54  ;;  %1719 = vmatprep.mubr.msk.bf16.mxu1 %vm770_vm0, %v1788_v55  ;;  %v2096_v55 = vld [vmem:[%s2293_s2] ss:$0 sm:$0xff] }
  0x55   : > { %1684 = vmatmul.mubr.msk.bf16.gmra.mxu0 %vm770_vm0, %v1789_v56  ;;  %1720 = vmatmul.mubr.msk.bf16.gmra.mxu1 %vm770_vm0, %v1790_v57 }
  0x56   : > { %1687 = vmatprep.mubr.msk.bf16.mxu0 %vm770_vm0, %v1791_v58  ;;  %1723 = vmatprep.mubr.msk.bf16.mxu1 %vm770_vm0, %v1792_v59 }
  0x5d   : > { %1688 = vmatmul.mubr.msk.bf16.gmra.mxu0 %vm770_vm0, %v1793_v60  ;;  %1724 = vmatmul.mubr.msk.bf16.gmra.mxu1 %vm770_vm0, %v1794_v61 }
  0x5e   : > { %1691 = vmatprep.mubr.msk.bf16.mxu0 %vm770_vm0, %v1795_v62  ;;  %1727 = vmatprep.mubr.msk.bf16.mxu1 %vm770_vm0, %v1796_v63 }
  0x65   : > { %1692 = vmatmul.mubr.msk.bf16.gmra.mxu0 %vm770_vm0, %v1797_v0  ;;  %1728 = vmatmul.mubr.msk.bf16.gmra.mxu1 %vm770_vm0, %v1798_v1 }
  0x66   : > { %1695 = vmatprep.mubr.msk.bf16.mxu0 %vm770_vm0, %v1799_v2  ;;  %1731 = vmatprep.mubr.msk.bf16.mxu1 %vm770_vm0, %v1800_v3 }
  0x6d   : > { %1696 = vmatmul.mubr.msk.bf16.gmra.mxu0 %vm770_vm0, %v1801_v4  ;;  %1732 = vmatmul.mubr.msk.bf16.gmra.mxu1 %vm770_vm0, %v1802_v5 }
  0x6e   : > { %1699 = vmatprep.mubr.msk.bf16.mxu0 %vm770_vm0, %v1803_v6  ;;  %1735 = vmatprep.mubr.msk.bf16.mxu1 %vm770_vm0, %v1804_v7 }
  0x75   : > { %1700 = vmatmul.mubr.msk.bf16.gmra.mxu0 %vm770_vm0, %v1805_v8  ;;  %1736 = vmatmul.mubr.msk.bf16.gmra.mxu1 %vm770_vm0, %v1806_v9 }
  0xf5   : > { %v1669_v10 = vpop.f32.mrf.mxu0  ;;  %v1705_v11 = vpop.f32.mrf.mxu1 }
  0xf6   : > { %v1214_v57 = vsel %vm770_vm0, %v1669_v10, -inf  ;;  %v1217_v58 = vsel %vm770_vm0, %v1705_v11, -inf }
  0xf7   : > { %v913_v12 = vpop.f32.mrf.mxu0  ;;  %v1057_v13 = vpop.f32.mrf.mxu1 }
  0xf8   : > { %v1200_v44 = vsel %vm770_vm0, %v913_v12, -inf  ;;  %v1203_v49 = vsel %vm770_vm0, %v1057_v13, -inf }
  0xf9   : > { %v1670_v14 = vpop.f32.mrf.mxu0  ;;  %v1706_v15 = vpop.f32.mrf.mxu1 }
  0xfa   : > { %v1221_v63 = vsel %vm770_vm0, %v1670_v14, -inf  ;;  %v1224_v0 = vsel %vm770_vm0, %v1706_v15, -inf }
  0xfb   : > { %v916_v16 = vpop.f32.mrf.mxu0  ;;  %v1060_v17 = vpop.f32.mrf.mxu1 }
  0xfc   : > { %v1207_v54 = vsel %vm770_vm0, %v916_v16, -inf  ;;  %v1210_v1 = vsel %vm770_vm0, %v1060_v17, -inf }
  0xfd   : > { %v1673_v18 = vpop.f32.mrf.mxu0  ;;  %v1709_v19 = vpop.f32.mrf.mxu1 }
  0xfe   : > { %v2110_v2 = vsel %vm770_vm0, %v1673_v18, -inf  ;;  %v2113_v3 = vsel %vm770_vm0, %v1709_v19, -inf }
  0xff   : > { %v929_v20 = vpop.f32.mrf.mxu0  ;;  %v1073_v21 = vpop.f32.mrf.mxu1 }
 0x100   : > { %v1228_v4 = vsel %vm770_vm0, %v929_v20, -inf  ;;  %v1231_v9 = vsel %vm770_vm0, %v1073_v21, -inf }
 0x101   : > { %v1674_v22 = vpop.f32.mrf.mxu0  ;;  %v1710_v23 = vpop.f32.mrf.mxu1 }
 0x102   : > { %v2119_v10 = vsel %vm770_vm0, %v1674_v22, -inf  ;;  %v2129_v13 = vsel %vm770_vm0, %v1710_v23, -inf }
 0x103   : > { %v2044_v24 = vpop.f32.mrf.mxu0  ;;  %v2046_v25 = vpop.f32.mrf.mxu1 }
 0x104   : > { %v1235_v19 = vsel %vm770_vm0, %v2044_v24, -inf  ;;  %v1238_v20 = vsel %vm770_vm0, %v2046_v25, -inf }
 0x105   : > { %v2048_v26 = vpop.f32.mrf.mxu0  ;;  %v2050_v27 = vpop.f32.mrf.mxu1 }
 0x106   : > { %v2146_v25 = vsel %vm770_vm0, %v2050_v27, -inf }
 0x107   : > { %v2052_v28 = vpop.f32.mrf.mxu0  ;;  %v2054_v29 = vpop.f32.mrf.mxu1 }
 0x109   : > { %v2056_v30 = vpop.f32.mrf.mxu0  ;;  %v2058_v31 = vpop.f32.mrf.mxu1 }
 0x10a   : > { %v2159_v27 = vsel %vm770_vm0, %v2058_v31, -inf }
 0x10b   : > { %v2060_v32 = vpop.f32.mrf.mxu0  ;;  %v2062_v33 = vpop.f32.mrf.mxu1 }
 0x10c   : > { %v1266_v31 = vsel %vm770_vm0, %v2062_v33, -inf }
 0x10d   : > { %v2064_v34 = vpop.f32.mrf.mxu0  ;;  %v2066_v35 = vpop.f32.mrf.mxu1 }
 0x10f   : > { %v2068_v36 = vpop.f32.mrf.mxu0  ;;  %v2070_v37 = vpop.f32.mrf.mxu1 }
 0x111   : > { %v2074_v38 = vpop.f32.mrf.mxu0  ;;  %v2076_v39 = vpop.f32.mrf.mxu1 }
 0x113   : > { %v2078_v40 = vpop.f32.mrf.mxu0  ;;  %v2080_v41 = vpop.f32.mrf.mxu1 }
 0x115   : > { %v1685_v42 = vpop.f32.mrf.mxu0  ;;  %v1721_v43 = vpop.f32.mrf.mxu1 }
 0x116   : > { %v1201_v45 = vsel %vm770_vm0, %v1685_v42, -inf  ;;  %v1205_v50 = vsel %vm770_vm0, %v1721_v43, -inf  ;;  %v2139_v42 = vsel %vm770_vm0, %v2048_v26, -inf  ;;  %v1259_v26 = vsel %vm770_vm0, %v2054_v29, -inf }
 0x117   : > { %v1202_v46 = vmax.f32 %v1200_v44, %v1201_v45  ;;  %v2086_v47 = vpop.f32.mrf.mxu0  ;;  %v2088_v48 = vpop.f32.mrf.mxu1 }
 0x119   : > { %v1204_v51 = vmax.f32 %v1202_v46, %v1203_v49  ;;  %v1686_v52 = vpop.f32.mrf.mxu0  ;;  %v1722_v53 = vpop.f32.mrf.mxu1  ;;  %v1256_v46 = vsel %vm770_vm0, %v2052_v28, -inf }
 0x11a   : > { %v1208_v56 = vsel %vm770_vm0, %v1686_v52, -inf  ;;  %v1212_v11 = vsel %vm770_vm0, %v1722_v53, -inf }
 0x11b   : > { %v1206_v59 = vmax.f32 %v1204_v51, %v1205_v50  ;;  %v1209_v60 = vmax.f32 %v1207_v54, %v1208_v56  ;;  %v2102_v61 = vpop.f32.mrf.mxu0  ;;  %v2104_v62 = vpop.f32.mrf.mxu1 }
 0x11d   : > { %v1333_v5 = vadd.f32 %v2096_v55, %v1206_v59  ;;  %v1211_v6 = vmax.f32 %v1209_v60, %v1210_v1  ;;  %v1689_v7 = vpop.f32.mrf.mxu0  ;;  %v1725_v8 = vpop.f32.mrf.mxu1 }
 0x11e   : > { %v1229_v12 = vsel %vm770_vm0, %v1689_v7, -inf  ;;  %v1233_v21 = vsel %vm770_vm0, %v1725_v8, -inf }
 0x11f   : > { %v1607_v14 = vpack.c.bf16 %v1333_v5, %v1333_v5  ;;  %v1213_v15 = vmax.f32 %v1211_v6, %v1212_v11  ;;  %v1230_v16 = vmax.f32 %v1228_v4, %v1229_v12  ;;  %v993_v17 = vpop.f32.mrf.mxu0  ;;  %v1137_v18 = vpop.f32.mrf.mxu1 }
 0x120   : > { %v1215_v22 = vsel %vm770_vm0, %v993_v17, -inf  ;;  %v1219_v28 = vsel %vm770_vm0, %v1137_v18, -inf }
 0x121   : > { %1424 = vst.msk [vmem:[%s2124_s14] sm:$0xf] %vm1423_vm1, %v1607_v14  ;;  %v1334_v23 = vadd.f32 %v2096_v55, %v1213_v15  ;;  %v1232_v43 = vmax.f32 %v1230_v16, %v1231_v9  ;;  %v1216_v44 = vmax.f32 %v1214_v57, %v1215_v22  ;;  %v1690_v45 = vpop.f32.mrf.mxu0  ;;  %v1726_v24 = vpop.f32.mrf.mxu1  ;;  %v2155_v57 = vsel %vm770_vm0, %v2056_v30, -inf }
 0x122   : > { %v1236_v49 = vsel %vm770_vm0, %v1690_v45, -inf  ;;  %v1263_v30 = vsel %vm770_vm0, %v2060_v32, -inf  ;;  %v1240_v6 = vsel %vm770_vm0, %v1726_v24, -inf  ;;  %v2182_v22 = vsel %vm770_vm0, %v2064_v34, -inf }
 0x123   : > { %v1608_v50 = vpack.c.bf16 %v1334_v23, %v1334_v23  ;;  %v1234_v51 = vmax.f32 %v1232_v43, %v1233_v21  ;;  %v1218_v52 = vmax.f32 %v1216_v44, %v1217_v58  ;;  %v1237_v53 = vmax.f32 %v1235_v19, %v1236_v49  ;;  %v996_v54 = vpop.f32.mrf.mxu0  ;;  %v1140_v56 = vpop.f32.mrf.mxu1 }
 0x124   : > { %v1222_v29 = vsel %vm770_vm0, %v996_v54, -inf  ;;  %v1226_v15 = vsel %vm770_vm0, %v1140_v56, -inf  ;;  %v2186_v23 = vsel %vm770_vm0, %v2066_v35, -inf  ;;  %v1284_v34 = vsel %vm770_vm0, %v2068_v36, -inf }
 0x125   : > { %1425 = vst.msk [vmem:[%s2124_s14 + $0x4] sm:$0xf] %vm1423_vm1, %v1608_v50  ;;  %v1337_v59 = vadd.f32 %v2096_v55, %v1234_v51  ;;  %v1220_v58 = vmax.f32 %v1218_v52, %v1219_v28  ;;  %v1239_v60 = vmax.f32 %v1237_v53, %v1238_v20  ;;  %v1223_v1 = vmax.f32 %v1221_v63, %v1222_v29  ;;  %v1693_v4 = vpop.f32.mrf.mxu0  ;;  %v1729_v5 = vpop.f32.mrf.mxu1 }
 0x126   : > { %v1257_v7 = vsel %vm770_vm0, %v1693_v4, -inf  ;;  %v1261_v32 = vsel %vm770_vm0, %v1729_v5, -inf  ;;  %v1287_v29 = vsel %vm770_vm0, %v2070_v37, -inf }
 0x127   : > { %v1611_v8 = vpack.c.bf16 %v1337_v59, %v1337_v59  ;;  %v1335_v9 = vadd.f32 %v2096_v55, %v1220_v58  ;;  %v1241_v11 = vmax.f32 %v1239_v60, %v1240_v6  ;;  %v1225_v12 = vmax.f32 %v1223_v1, %v1224_v0  ;;  %v1009_v14 = vpop.f32.mrf.mxu0  ;;  %v1153_v63 = vpop.f32.mrf.mxu1 }
 0x128   : > { %v1258_v16 = vmax.f32 %v1256_v46, %v1257_v7  ;;  %v1243_v17 = vsel %vm770_vm0, %v1009_v14, -inf  ;;  %v1247_v35 = vsel %vm770_vm0, %v1153_v63, -inf }
 0x129   : > { %1428 = vst.msk [vmem:[%s2124_s14 + $0x10] sm:$0xf] %vm1423_vm1, %v1611_v8  ;;  %v1609_v33 = vpack.c.bf16 %v1335_v9, %v1335_v9  ;;  %v1338_v18 = vadd.f32 %v2096_v55, %v1241_v11  ;;  %v1227_v19 = vmax.f32 %v1225_v12, %v1226_v15  ;;  %v1244_v20 = vmax.f32 %v2110_v2, %v1243_v17  ;;  %v1694_v21 = vpop.f32.mrf.mxu0  ;;  %v1730_v0 = vpop.f32.mrf.mxu1 }
 0x12a   : > { %v1260_v43 = vmax.f32 %v1258_v16, %v1259_v26  ;;  %v1264_v44 = vsel %vm770_vm0, %v1694_v21, -inf  ;;  %v1268_v36 = vsel %vm770_vm0, %v1730_v0, -inf  ;;  %v1294_v15 = vsel %vm770_vm0, %v2080_v41, -inf }
 0x12b   : > { %1426 = vst.msk [vmem:[%s2124_s14 + $0x8] sm:$0xf] %vm1423_vm1, %v1609_v33  ;;  %v1612_v45 = vpack.c.bf16 %v1338_v18, %v1338_v18  ;;  %v1336_v24 = vadd.f32 %v2096_v55, %v1227_v19  ;;  %v1246_v2 = vmax.f32 %v1244_v20, %v2113_v3  ;;  %v1265_v46 = vmax.f32 %v1263_v30, %v1264_v44  ;;  %v1012_v49 = vpop.f32.mrf.mxu0  ;;  %v1156_v50 = vpop.f32.mrf.mxu1 }
 0x12c   : > { %v1262_v51 = vmax.f32 %v1260_v43, %v1261_v32  ;;  %v1250_v26 = vsel %vm770_vm0, %v1012_v49, -inf  ;;  %v1254_v37 = vsel %vm770_vm0, %v1156_v50, -inf }
 0x12d   : > { %1429 = vst.msk [vmem:[%s2124_s14 + $0x14] sm:$0xf] %vm1423_vm1, %v1612_v45  ;;  %v1610_v52 = vpack.c.bf16 %v1336_v24, %v1336_v24  ;;  %v1248_v53 = vmax.f32 %v1246_v2, %v1247_v35  ;;  %v1267_v54 = vmax.f32 %v1265_v46, %v1266_v31  ;;  %v1251_v56 = vmax.f32 %v2119_v10, %v1250_v26  ;;  %v1697_v3 = vpop.f32.mrf.mxu0  ;;  %v1733_v28 = vpop.f32.mrf.mxu1 }
 0x12e   : > { %v1341_v59 = vadd.f32 %v2096_v55, %v1262_v51  ;;  %v1285_v58 = vsel %vm770_vm0, %v1697_v3, -inf  ;;  %v1289_v6 = vsel %vm770_vm0, %v1733_v28, -inf }
 0x12f   : > { %1427 = vst.msk [vmem:[%s2124_s14 + $0xc] sm:$0xf] %vm1423_vm1, %v1610_v52  ;;  %v1339_v60 = vadd.f32 %v2096_v55, %v1248_v53  ;;  %v1269_v1 = vmax.f32 %v1267_v54, %v1268_v36  ;;  %v1253_v4 = vmax.f32 %v1251_v56, %v2129_v13  ;;  %v1286_v10 = vmax.f32 %v1284_v34, %v1285_v58  ;;  %v1025_v5 = vpop.f32.mrf.mxu0  ;;  %v1169_v30 = vpop.f32.mrf.mxu1 }
 0x130   : > { %v1615_v31 = vpack.c.bf16 %v1341_v59, %v1341_v59  ;;  %v1271_v7 = vsel %vm770_vm0, %v1025_v5, -inf  ;;  %v1291_v13 = vsel %vm770_vm0, %v2078_v40, -inf  ;;  %v1312_v40 = vsel %vm770_vm0, %v2086_v47, -inf }
 0x131   : > { %v1613_v8 = vpack.c.bf16 %v1339_v60, %v1339_v60  ;;  %v1342_v9 = vadd.f32 %v2096_v55, %v1269_v1  ;;  %v1255_v11 = vmax.f32 %v1253_v4, %v1254_v37  ;;  %v1288_v12 = vmax.f32 %v1286_v10, %v1287_v29  ;;  %v1698_v14 = vpop.f32.mrf.mxu0  ;;  %v1734_v63 = vpop.f32.mrf.mxu1 }
 0x132   : > { %1432 = vst.msk [vmem:[%s2124_s14 + $0x20] sm:$0xf] %vm1423_vm1, %v1615_v31  ;;  %v1272_v16 = vmax.f32 %v2139_v42, %v1271_v7  ;;  %v1292_v32 = vsel %vm770_vm0, %v1698_v14, -inf  ;;  %v1275_v0 = vsel %vm770_vm0, %v1169_v30, -inf  ;;  %v1315_v47 = vsel %vm770_vm0, %v2088_v48, -inf }
 0x133   : > { %1430 = vst.msk [vmem:[%s2124_s14 + $0x18] sm:$0xf] %vm1423_vm1, %v1613_v8  ;;  %v1616_v17 = vpack.c.bf16 %v1342_v9, %v1342_v9  ;;  %v1340_v33 = vadd.f32 %v2096_v55, %v1255_v11  ;;  %v1290_v18 = vmax.f32 %v1288_v12, %v1289_v6  ;;  %v1293_v19 = vmax.f32 %v1291_v13, %v1292_v32  ;;  %v1028_v20 = vpop.f32.mrf.mxu0  ;;  %v1172_v21 = vpop.f32.mrf.mxu1 }
 0x134   : > { %v1274_v41 = vmax.f32 %v1272_v16, %v2146_v25  ;;  %v1278_v42 = vsel %vm770_vm0, %v1028_v20, -inf  ;;  %v1296_v25 = vsel %vm770_vm0, %v1734_v63, -inf  ;;  %v1282_v54 = vsel %vm770_vm0, %v1172_v21, -inf }
 0x135   : > { %1433 = vst.msk [vmem:[%s2124_s14 + $0x24] sm:$0xf] %vm1423_vm1, %v1616_v17  ;;  %v1614_v43 = vpack.c.bf16 %v1340_v33, %v1340_v33  ;;  %v1345_v44 = vadd.f32 %v2096_v55, %v1290_v18  ;;  %v1295_v45 = vmax.f32 %v1293_v19, %v1294_v15  ;;  %v1279_v24 = vmax.f32 %v2155_v57, %v1278_v42  ;;  %v1701_v2 = vpop.f32.mrf.mxu0  ;;  %v1737_v46 = vpop.f32.mrf.mxu1 }
 0x136   : > { %v1276_v49 = vmax.f32 %v1274_v41, %v1275_v0  ;;  %v1313_v50 = vsel %vm770_vm0, %v1701_v2, -inf  ;;  %v1317_v48 = vsel %vm770_vm0, %v1737_v46, -inf  ;;  %v1305_v58 = vsel %vm770_vm0, %v2074_v38, -inf }
 0x137   : > { %1431 = vst.msk [vmem:[%s2124_s14 + $0x1c] sm:$0xf] %vm1423_vm1, %v1614_v43  ;;  %v1619_v34 = vpack.c.bf16 %v1345_v44, %v1345_v44  ;;  %v1297_v51 = vmax.f32 %v1295_v45, %v1296_v25  ;;  %v1281_v35 = vmax.f32 %v1279_v24, %v2159_v27  ;;  %v1314_v26 = vmax.f32 %v1312_v40, %v1313_v50  ;;  %v1041_v52 = vpop.f32.mrf.mxu0  ;;  %v1185_v57 = vpop.f32.mrf.mxu1 }
 0x138   : > { %v1343_v53 = vadd.f32 %v2096_v55, %v1276_v49  ;;  %v1299_v56 = vsel %vm770_vm0, %v1041_v52, -inf  ;;  %v1319_v60 = vsel %vm770_vm0, %v2102_v61, -inf  ;;  %v1322_v37 = vsel %vm770_vm0, %v2104_v62, -inf }
 0x139   : > { %1436 = vst.msk [vmem:[%s2124_s14 + $0x30] sm:$0xf] %vm1423_vm1, %v1619_v34  ;;  %v1346_v3 = vadd.f32 %v2096_v55, %v1297_v51  ;;  %v1283_v28 = vmax.f32 %v1281_v35, %v1282_v54  ;;  %v1316_v29 = vmax.f32 %v1314_v26, %v1315_v47  ;;  %v1300_v27 = vmax.f32 %v2182_v22, %v1299_v56  ;;  %v1702_v59 = vpop.f32.mrf.mxu0  ;;  %v1738_v36 = vpop.f32.mrf.mxu1 }
 0x13a   : > { %v1617_v1 = vpack.c.bf16 %v1343_v53, %v1343_v53  ;;  %v1320_v4 = vsel %vm770_vm0, %v1702_v59, -inf  ;;  %v1303_v38 = vsel %vm770_vm0, %v1185_v57, -inf  ;;  %v1308_v62 = vsel %vm770_vm0, %v2076_v39, -inf }
 0x13b   : > { %v1620_v10 = vpack.c.bf16 %v1346_v3, %v1346_v3  ;;  %v1344_v5 = vadd.f32 %v2096_v55, %v1283_v28  ;;  %v1318_v30 = vmax.f32 %v1316_v29, %v1317_v48  ;;  %v1302_v31 = vmax.f32 %v1300_v27, %v2186_v23  ;;  %v1044_v22 = vpop.f32.mrf.mxu0  ;;  %v1188_v11 = vpop.f32.mrf.mxu1 }
 0x13c   : > { %1434 = vst.msk [vmem:[%s2124_s14 + $0x28] sm:$0xf] %vm1423_vm1, %v1617_v1  ;;  %v1321_v6 = vmax.f32 %v1319_v60, %v1320_v4  ;;  %v1306_v61 = vsel %vm770_vm0, %v1044_v22, -inf  ;;  %v1324_v13 = vsel %vm770_vm0, %v1738_v36, -inf  ;;  %v1310_v32 = vsel %vm770_vm0, %v1188_v11, -inf }
 0x13d   : > { %1437 = vst.msk [vmem:[%s2124_s14 + $0x34] sm:$0xf] %vm1423_vm1, %v1620_v10  ;;  %v1618_v7 = vpack.c.bf16 %v1344_v5, %v1344_v5  ;;  %v1349_v8 = vadd.f32 %v2096_v55, %v1318_v30  ;;  %v1304_v9 = vmax.f32 %v1302_v31, %v1303_v38  ;;  %v1307_v23 = vmax.f32 %v1305_v58, %v1306_v61 }
 0x13e   : > { %v1323_v12 = vmax.f32 %v1321_v6, %v1322_v37 }
 0x13f   : > { %1435 = vst.msk [vmem:[%s2124_s14 + $0x2c] sm:$0xf] %vm1423_vm1, %v1618_v7  ;;  %v1623_v14 = vpack.c.bf16 %v1349_v8, %v1349_v8  ;;  %v1347_v63 = vadd.f32 %v2096_v55, %v1304_v9  ;;  %v1309_v15 = vmax.f32 %v1307_v23, %v1308_v62 }
 0x140   : > { %v1325_v16 = vmax.f32 %v1323_v12, %v1324_v13 }
 0x141   : > { %1440 = vst.msk [vmem:[%s2124_s14 + $0x40] sm:$0xf] %vm1423_vm1, %v1623_v14  ;;  %v1621_v17 = vpack.c.bf16 %v1347_v63, %v1347_v63  ;;  %v1311_v33 = vmax.f32 %v1309_v15, %v1310_v32 }
 0x142   : > { %v1350_v39 = vadd.f32 %v2096_v55, %v1325_v16 }
 0x143   : > { %1438 = vst.msk [vmem:[%s2124_s14 + $0x38] sm:$0xf] %vm1423_vm1, %v1621_v17  ;;  %v1348_v18 = vadd.f32 %v2096_v55, %v1311_v33 }
 0x144   : > { %v1624_v19 = vpack.c.bf16 %v1350_v39, %v1350_v39 }
 0x145   : > { %v1622_v20 = vpack.c.bf16 %v1348_v18, %v1348_v18 }
 0x146   : > { %1441 = vst.msk [vmem:[%s2124_s14 + $0x44] sm:$0xf] %vm1423_vm1, %v1624_v19 }
 0x147   : > { %1439 = vst.msk [vmem:[%s2124_s14 + $0x3c] sm:$0xf] %vm1423_vm1, %v1622_v20 }
 0x148 PF: > { %p10_p9 = scmp.ge.s32.totalorder %s1868_s16, 4   ;;  %s2295_s12 = smov %s1825_s13 }
 0x149   : > { %s2296_s13 = smov %s1877_s19  ;;  %s2297_s14 = smov %s1868_s16 }
 0x14a   :  { %12 = sbr.rel (!%p10_p9) target bundleno = 2 (0x2), region = 108 }

// kernel: mnist_parity_forward.4
= control target key start
LH: loop header
LB: loop body
LE: loop exit
PB: predicated region body
PF: predicated region fallthrough
CT: control target
= control target key end

     0   :  { %s1643_s12 = smov 0   ;;  %s1645_s13 = smov 0   ;;  %s1964_s0 = inlined_call_operand.vmem [shape: bf16[4,32,800], index: 0, kind: input, shape index: {}]   ;;  %s1965_s1 = inlined_call_operand.vmem [shape: bf16[800,64], index: 1, kind: input, shape index: {}]   ;;  %s1966_s2 = inlined_call_operand.vmem [shape: f32[1,64], index: 2, kind: input, shape index: {}]   ;;  %s1967_s3 = inlined_call_operand.vmem [shape: bf16[32,64], index: 3, kind: output, shape index: {}]  }
   0x1   :  { %s1647_s14 = smov 0  }
   0x2 LB: > { %s1213_s15 = sadd.s32 4294967295, %s1621_s14   ;;  %s1660_s16 = sadd.s32 1, %s1621_s14   ;;  %s1621_s14 = sphi %s1647_s14, %s1970_s14   ;;  %s1617_s13 = sphi %s1645_s13, %s1969_s13   ;;  %s1613_s12 = sphi %s1643_s12, %s1968_s12  }
   0x3   : > { %s17_s17 = ssub.s32 %s1621_s14, %s1660_s16  ;;  %s20_s18 = sadd.s32 1, %s1617_s13 }
   0x4   : > { %p18_p0 = scmp.eq.s32.totalorder %s17_s17, 0  ;;  %p27_p1 = scmp.ne.s32.totalorder %s1617_s13, %s1613_s12 }
   0x5   : > { %p28_p2 = scmp.eq.s32.totalorder %s1621_s14, 0  ;;  %p1216_p4 = scmp.ge.s32.totalorder %s1621_s14, 2 }
   0x6   : > { %s1669_s19 = scalar_select %p18_p0, %s1617_s13, %s20_s18  }
   0x7   : > { %p29_p3 = por %p28_p2, %p27_p1  ;;  %127 = sbr.rel (%p1216_p4) target bundleno = 34 (0x22), region = 24 }
   0xc   : > { %130 = sbr.rel (!%p29_p3) target bundleno = 34 (0x22), region = 28  ;;  %s132_s20 = sand.u32 (%p29_p3), 1, %s1617_s13  }
   0xd   : > { %s1483_s21 = smul.u32 (%p29_p3), 56, %s1621_s14 }
   0xe   : > { %s1482_s22 = smul.u32 (%p29_p3), 224, %s132_s20 }
   0xf   : > { %s1677_s25 = scalar_lea.vmem (%p29_p3), %s1964_s0, %s1483_s21 }
  0x10   : > { %v153_v0 = vld [vmem:[%s1677_s25] sm:$0xff] (%p29_p3)  ;;  %v155_v1 = vld [vmem:[%s1677_s25 + $0x8] sm:$0xff] (%p29_p3)  ;;  %v157_v2 = vld [vmem:[%s1677_s25 + $0x10] sm:$0xff] (%p29_p3)  ;;  %s1682_s26 = scalar_lea.vmem (%p29_p3), [#allocation2], %s1482_s22 }
  0x11   : > { %154 = vst [vmem:[%s1682_s26] sm:$0xff] %v153_v0  ;;  %156 = vst [vmem:[%s1682_s26 + $0x8] sm:$0xff] %v155_v1  ;;  %v159_v3 = vld [vmem:[%s1677_s25 + $0x1c] sm:$0xff]  ;;  %v161_v4 = vld [vmem:[%s1677_s25 + $0x24] sm:$0xff] }
  0x12   : > { %158 = vst [vmem:[%s1682_s26 + $0x10] sm:$0xff] %v157_v2  ;;  %v163_v5 = vld [vmem:[%s1677_s25 + $0x2c] sm:$0xff]  ;;  %160 = vst [vmem:[%s1682_s26 + $0x1c] sm:$0xff] %v159_v3  ;;  %v167_v7 = vld [vmem:[%s1677_s25 + $0x78] sm:$0xff] }
  0x13   : > { %162 = vst [vmem:[%s1682_s26 + $0x24] sm:$0xff] %v161_v4  ;;  %164 = vst [vmem:[%s1682_s26 + $0x2c] sm:$0xff] %v163_v5  ;;  %v165_v6 = vld [vmem:[%s1677_s25 + $0x70] sm:$0xff]  ;;  %v169_v8 = vld [vmem:[%s1677_s25 + $0x80] sm:$0xff] }
  0x14   : > { %166 = vst [vmem:[%s1682_s26 + $0x38] sm:$0xff] %v165_v6  ;;  %168 = vst [vmem:[%s1682_s26 + $0x40] sm:$0xff] %v167_v7  ;;  %v171_v9 = vld [vmem:[%s1677_s25 + $0x8c] sm:$0xff]  ;;  %v173_v10 = vld [vmem:[%s1677_s25 + $0x94] sm:$0xff] }
  0x15   : > { %170 = vst [vmem:[%s1682_s26 + $0x48] sm:$0xff] %v169_v8  ;;  %v175_v11 = vld [vmem:[%s1677_s25 + $0x9c] sm:$0xff]  ;;  %172 = vst [vmem:[%s1682_s26 + $0x54] sm:$0xff] %v171_v9  ;;  %v179_v13 = vld [vmem:[%s1677_s25 + $0xe8] sm:$0xff] }
  0x16   : > { %174 = vst [vmem:[%s1682_s26 + $0x5c] sm:$0xff] %v173_v10  ;;  %176 = vst [vmem:[%s1682_s26 + $0x64] sm:$0xff] %v175_v11  ;;  %v177_v12 = vld [vmem:[%s1677_s25 + $0xe0] sm:$0xff]  ;;  %v181_v14 = vld [vmem:[%s1677_s25 + $0xf0] sm:$0xff] }
  0x17   : > { %178 = vst [vmem:[%s1682_s26 + $0x70] sm:$0xff] %v177_v12  ;;  %180 = vst [vmem:[%s1682_s26 + $0x78] sm:$0xff] %v179_v13  ;;  %v183_v15 = vld [vmem:[%s1677_s25 + $0xfc] sm:$0xff]  ;;  %v185_v16 = vld [vmem:[%s1677_s25 + $0x104] sm:$0xff] }
  0x18   : > { %182 = vst [vmem:[%s1682_s26 + $0x80] sm:$0xff] %v181_v14  ;;  %v187_v17 = vld [vmem:[%s1677_s25 + $0x10c] sm:$0xff]  ;;  %184 = vst [vmem:[%s1682_s26 + $0x8c] sm:$0xff] %v183_v15  ;;  %v191_v19 = vld [vmem:[%s1677_s25 + $0x158] sm:$0xff] }
  0x19   : > { %186 = vst [vmem:[%s1682_s26 + $0x94] sm:$0xff] %v185_v16  ;;  %188 = vst [vmem:[%s1682_s26 + $0x9c] sm:$0xff] %v187_v17  ;;  %v189_v18 = vld [vmem:[%s1677_s25 + $0x150] sm:$0xff]  ;;  %v193_v20 = vld [vmem:[%s1677_s25 + $0x160] sm:$0xff] }
  0x1a   : > { %190 = vst [vmem:[%s1682_s26 + $0xa8] sm:$0xff] %v189_v18  ;;  %192 = vst [vmem:[%s1682_s26 + $0xb0] sm:$0xff] %v191_v19  ;;  %v195_v21 = vld [vmem:[%s1677_s25 + $0x16c] sm:$0xff]  ;;  %v197_v22 = vld [vmem:[%s1677_s25 + $0x174] sm:$0xff] }
  0x1b   : > { %194 = vst [vmem:[%s1682_s26 + $0xb8] sm:$0xff] %v193_v20  ;;  %v199_v23 = vld [vmem:[%s1677_s25 + $0x17c] sm:$0xff]  ;;  %196 = vst [vmem:[%s1682_s26 + $0xc4] sm:$0xff] %v195_v21  ;;  %v1220_v24 = vld [vmem:[%s1677_s25 + $0x18] sm:$0xf] }
  0x1c   : > { %198 = vst [vmem:[%s1682_s26 + $0xcc] sm:$0xff] %v197_v22  ;;  %200 = vst [vmem:[%s1682_s26 + $0xd4] sm:$0xff] %v199_v23  ;;  %v1222_v25 = vld [vmem:[%s1677_s25 + $0x34] sm:$0xf]  ;;  %v1224_v26 = vld [vmem:[%s1677_s25 + $0x88] sm:$0xf] }
  0x1d   : > { %1221 = vst [vmem:[%s1682_s26 + $0x18] sm:$0xf] %v1220_v24  ;;  %1223 = vst [vmem:[%s1682_s26 + $0x34] sm:$0xf] %v1222_v25  ;;  %v1226_v27 = vld [vmem:[%s1677_s25 + $0xa4] sm:$0xf] }
  0x1e   : > { %1225 = vst [vmem:[%s1682_s26 + $0x50] sm:$0xf] %v1224_v26  ;;  %v1228_v28 = vld [vmem:[%s1677_s25 + $0xf8] sm:$0xf]  ;;  %v1230_v29 = vld [vmem:[%s1677_s25 + $0x114] sm:$0xf] }
  0x1f   : > { %1227 = vst [vmem:[%s1682_s26 + $0x6c] sm:$0xf] %v1226_v27  ;;  %1229 = vst [vmem:[%s1682_s26 + $0x88] sm:$0xf] %v1228_v28  ;;  %v1232_v30 = vld [vmem:[%s1677_s25 + $0x168] sm:$0xf] }
  0x20   : > { %1231 = vst [vmem:[%s1682_s26 + $0xa4] sm:$0xf] %v1230_v29  ;;  %v1234_v31 = vld [vmem:[%s1677_s25 + $0x184] sm:$0xf]  ;;  %1233 = vst [vmem:[%s1682_s26 + $0xc0] sm:$0xf] %v1232_v30 }
  0x21   : > { %1235 = vst [vmem:[%s1682_s26 + $0xdc] sm:$0xf] %v1234_v31 }
  0x22 PF: > { %p1236_p5 = scmp.ge.s32.totalorder %s1621_s14, 1  ;;  %p229_p6 = scmp.lt.s32.totalorder %s1621_s14, 3 }
  0x24   : > { %p230_p7 = pnand %p1236_p5, %p229_p6 }
  0x25   : > { %s236_s4 = sand.u32 (!%p230_p7), 1, %s1613_s12  }
  0x26   : > { %233 = sbr.rel (%p230_p7) target bundleno = 341 (0x155), region = 54 }
  0x27   : > { %s1484_s11 = smul.u32 (!%p230_p7), 224, %s236_s4 }
  0x29   : > { %s1844_s29 = scalar_lea.vmem (!%p230_p7), [#allocation2], %s1484_s11 }
  0x2b   : > { %v1509_v32 = vld [vmem:[%s1965_s1 + $0x78] sm:$0xff]   ;;  %v1513_v36 = vld [vmem:[%s1965_s1 + $0x70] sm:$0xff]   ;;  %v1517_v40 = vld [vmem:[%s1965_s1 + $0x68] sm:$0xff]   ;;  %vm839_vm0 = vcmask 261120   ;;  %vm1112_vm1 = vcmask 523264   ;;  %vm1144_vm2 = vcmask 519168  }
  0x2c   : > { %v1510_v33 = vld [vmem:[%s1965_s1 + $0xf8] sm:$0xff]   ;;  %1328 = vmatprep.subr.bf16.mxu0 %v1509_v32  ;;  %v1514_v37 = vld [vmem:[%s1965_s1 + $0xf0] sm:$0xff]   ;;  %v1518_v41 = vld [vmem:[%s1965_s1 + $0xe8] sm:$0xff]  }
  0x2d   : > { %v1511_v34 = vld [vmem:[%s1965_s1 + $0x38] sm:$0xff]   ;;  %1368 = vmatprep.subr.bf16.mxu1 %v1510_v33  ;;  %v1515_v38 = vld [vmem:[%s1965_s1 + $0x30] sm:$0xff]   ;;  %v1519_v42 = vld [vmem:[%s1965_s1 + $0x28] sm:$0xff]  }
  0x2e   : > { %v1512_v35 = vld [vmem:[%s1965_s1 + $0xb8] sm:$0xff]   ;;  %1329 = vmatpush3.bf16.msra.mxu0 %v1511_v34  ;;  %v1516_v39 = vld [vmem:[%s1965_s1 + $0xb0] sm:$0xff]   ;;  %v1520_v43 = vld [vmem:[%s1965_s1 + $0xa8] sm:$0xff]  }
  0x2f   : > { %1369 = vmatpush3.bf16.msra.mxu1 %v1512_v35  ;;  %1330 = vmatprep.subr.bf16.mxu0 %v1513_v36  ;;  %v1521_v44 = vld [vmem:[%s1965_s1 + $0x60] sm:$0xff]   ;;  %v1525_v48 = vld [vmem:[%s1965_s1 + $0x58] sm:$0xff]   ;;  %v1529_v52 = vld [vmem:[%s1965_s1 + $0x50] sm:$0xff]  }
  0x30   : > { %1370 = vmatprep.subr.bf16.mxu1 %v1514_v37  ;;  %v1522_v45 = vld [vmem:[%s1965_s1 + $0xe0] sm:$0xff]   ;;  %v1526_v49 = vld [vmem:[%s1965_s1 + $0xd8] sm:$0xff]   ;;  %v1530_v53 = vld [vmem:[%s1965_s1 + $0xd0] sm:$0xff]  }
  0x31   : > { %v1523_v46 = vld [vmem:[%s1965_s1 + $0x20] sm:$0xff]   ;;  %v1527_v50 = vld [vmem:[%s1965_s1 + $0x18] sm:$0xff]   ;;  %v1531_v54 = vld [vmem:[%s1965_s1 + $0x10] sm:$0xff]  }
  0x32   : > { %1331 = vmatpush3.bf16.msra.mxu0 %v1515_v38  ;;  %v1524_v47 = vld [vmem:[%s1965_s1 + $0xa0] sm:$0xff]   ;;  %v1528_v51 = vld [vmem:[%s1965_s1 + $0x98] sm:$0xff]   ;;  %v1532_v55 = vld [vmem:[%s1965_s1 + $0x90] sm:$0xff]  }
  0x33   : > { %1371 = vmatpush3.bf16.msra.mxu1 %v1516_v39  ;;  %1332 = vmatprep.subr.bf16.mxu0 %v1517_v40  ;;  %v1533_v56 = vld [vmem:[%s1965_s1 + $0x48] sm:$0xff]   ;;  %v1537_v60 = vld [vmem:[%s1965_s1 + $0x40] sm:$0xff]   ;;  %v1547_v4 = vld [vmem:[%s1965_s1 + $0x178] sm:$0xff]  }
  0x34   : > { %1372 = vmatprep.subr.bf16.mxu1 %v1518_v41  ;;  %v1534_v57 = vld [vmem:[%s1965_s1 + $0xc8] sm:$0xff]   ;;  %v1538_v61 = vld [vmem:[%s1965_s1 + $0xc0] sm:$0xff]   ;;  %v1548_v5 = vld [vmem:[%s1965_s1 + $0x138] sm:$0xff]  }
  0x35   : > { %v1535_v58 = vld [vmem:[%s1965_s1 + $0x8] sm:$0xff]   ;;  %v1539_v62 = vld [vmem:[%s1965_s1] sm:$0xff]   ;;  %v1549_v6 = vld [vmem:[%s1965_s1 + $0x170] sm:$0xff]  }
  0x36   : > { %1333 = vmatpush3.bf16.msra.mxu0 %v1519_v42  ;;  %v1536_v59 = vld [vmem:[%s1965_s1 + $0x88] sm:$0xff]   ;;  %v1540_v63 = vld [vmem:[%s1965_s1 + $0x80] sm:$0xff]   ;;  %v1550_v7 = vld [vmem:[%s1965_s1 + $0x130] sm:$0xff]  }
  0x37   : > { %1373 = vmatpush3.bf16.msra.mxu1 %v1520_v43  ;;  %1334 = vmatprep.subr.bf16.mxu0 %v1521_v44  ;;  %v1541_v0 = vld [vmem:[%s1844_s29] ss:$28 sps:$4 sm:$0xff]   ;;  %v1544_v2 = vld [vmem:[%s1844_s29 + $0x8] ss:$28 sps:$4 sm:$0xff]   ;;  %v1555_v10 = vld [vmem:[%s1844_s29 + $0x38] ss:$28 sps:$4 sm:$0xff]  }
  0x38   : > { %1374 = vmatprep.subr.bf16.mxu1 %v1522_v45  ;;  %v1543_v1 = vld [vmem:[%s1844_s29 + $0x4] ss:$28 sps:$4 sm:$0xff]   ;;  %v1546_v3 = vld [vmem:[%s1844_s29 + $0xc] ss:$28 sps:$4 sm:$0xff]   ;;  %v1551_v8 = vld [vmem:[%s1844_s29 + $0x3c] ss:$28 sps:$4 sm:$0xff]  }
  0x39   : > { %884 = vmatprep.mubr.bf16.mxu0 %v1543_v1  ;;  %949 = vmatprep.mubr.bf16.mxu1 %v1546_v3  ;;  %v1553_v9 = vld [vmem:[%s1844_s29 + $0x44] ss:$28 sps:$4 sm:$0xff]   ;;  %v1557_v12 = vld [vmem:[%s1965_s1 + $0x168] sm:$0xff]   ;;  %v1561_v16 = vld [vmem:[%s1844_s29 + $0x74] ss:$28 sps:$4 sm:$0xff]  }
  0x3a   : > { %1335 = vmatpush3.bf16.msra.mxu0 %v1523_v46  ;;  %v1556_v11 = vld [vmem:[%s1844_s29 + $0x40] ss:$28 sps:$4 sm:$0xff]   ;;  %v1558_v13 = vld [vmem:[%s1965_s1 + $0x128] sm:$0xff]   ;;  %v1566_v20 = vld [vmem:[%s1844_s29 + $0x78] ss:$28 sps:$4 sm:$0xff]  }
  0x3b   : > { %1375 = vmatpush3.bf16.msra.mxu1 %v1524_v47  ;;  %1336 = vmatprep.subr.bf16.mxu0 %v1525_v48  ;;  %v1559_v14 = vld [vmem:[%s1965_s1 + $0x160] sm:$0xff]   ;;  %v1563_v17 = vld [vmem:[%s1844_s29 + $0x7c] ss:$28 sps:$4 sm:$0xff]   ;;  %v1565_v18 = vld [vmem:[%s1844_s29 + $0x70] ss:$28 sps:$4 sm:$0xff]  }
  0x3c   : > { %1376 = vmatprep.subr.bf16.mxu1 %v1526_v49  ;;  %v1560_v15 = vld [vmem:[%s1965_s1 + $0x120] sm:$0xff]   ;;  %v1567_v19 = vld [vmem:[%s1965_s1 + $0x158] sm:$0xff]   ;;  %v1569_v22 = vld [vmem:[%s1965_s1 + $0x150] sm:$0xff]  }
  0x3d   : > { %v1568_v21 = vld [vmem:[%s1965_s1 + $0x118] sm:$0xff]   ;;  %v1571_v23 = vld [vmem:[%s1844_s29 + $0xac] ss:$28 sps:$4 sm:$0xff]   ;;  %v1573_v24 = vld [vmem:[%s1844_s29 + $0xb4] ss:$28 sps:$4 sm:$0xff]  }
  0x3e   : > { %1337 = vmatpush3.bf16.msra.mxu0 %v1527_v50  ;;  %v1570_v25 = vld [vmem:[%s1965_s1 + $0x110] sm:$0xff]   ;;  %v1577_v26 = vld [vmem:[%s1965_s1 + $0x148] sm:$0xff]   ;;  %v1579_v30 = vld [vmem:[%s1965_s1 + $0x140] sm:$0xff]  }
  0x3f   : > { %1377 = vmatpush3.bf16.msra.mxu1 %v1528_v51  ;;  %1338 = vmatprep.subr.bf16.mxu0 %v1529_v52  ;;  %v1575_v27 = vld [vmem:[%s1844_s29 + $0xa8] ss:$28 sps:$4 sm:$0xff]   ;;  %v1576_v28 = vld [vmem:[%s1844_s29 + $0xb0] ss:$28 sps:$4 sm:$0xff]   ;;  %v1586_v32 = vld [vmem:[%s1844_s29 + $0xbc] ss:$28 sps:$4 sm:$0xff]  }
  0x40   : > { %1378 = vmatprep.subr.bf16.mxu1 %v1530_v53  ;;  %v1578_v29 = vld [vmem:[%s1965_s1 + $0x108] sm:$0xff]   ;;  %v1583_v31 = vld [vmem:[%s1844_s29 + $0x14] ss:$28 sps:$4 sm:$0xff]   ;;  %v1580_v33 = vld [vmem:[%s1965_s1 + $0x100] sm:$0xff]  }
  0x41   : > { %v1587_v34 = vld [vmem:[%s1965_s1 + $0x188] sm:$0xff]   ;;  %v1584_v36 = vld [vmem:[%s1844_s29 + $0xb8] ss:$28 sps:$4 sm:$0xff]   ;;  %v1588_v39 = vld [vmem:[%s1965_s1 + $0x180] sm:$0xff]  }
  0x42   : > { %1339 = vmatpush3.bf16.msra.mxu0 %v1531_v54  ;;  %v1581_v35 = vld [vmem:[%s1844_s29 + $0x10] ss:$28 sps:$4 sm:$0xff]   ;;  %v1591_v38 = vld [vmem:[%s1844_s29 + $0x18] ss:$28 sps:$4 sm:$0xff]   ;;  %v1592_v40 = vld [vmem:[%s1844_s29 + $0x48] ss:$28 sps:$4 sm:$0xff]  }
  0x43   : > { %1379 = vmatpush3.bf16.msra.mxu1 %v1532_v55  ;;  %1340 = vmatprep.subr.bf16.mxu0 %v1533_v56  ;;  %v1589_v37 = vld [vmem:[%s1844_s29 + $0x4c] ss:$28 sps:$4 sm:$0xff]   ;;  %v1594_v42 = vld [vmem:[%s1844_s29 + $0x84] ss:$28 sps:$4 sm:$0xff]  }
  0x44   : > { %1380 = vmatprep.subr.bf16.mxu1 %v1534_v57  ;;  %v1593_v41 = vld [vmem:[%s1844_s29 + $0x50] ss:$28 sps:$4 sm:$0xff]   ;;  %v1596_v43 = vld [vmem:[%s1844_s29 + $0x88] ss:$28 sps:$4 sm:$0xff]   ;;  %v1597_v44 = vld [vmem:[%s1844_s29 + $0x80] ss:$28 sps:$4 sm:$0xff]  }
  0x45   : > { %v1598_v45 = vld [vmem:[%s1844_s29 + $0xc0] ss:$28 sps:$4 sm:$0xff]   ;;  %s1934_s29 = sshll.u32 %s1213_s15, 1 }
  0x46   : > { %1341 = vmatpush3.bf16.msra.mxu0 %v1535_v58  ;;  %p261_p8 = scmp.lt.s32.totalorder %s1934_s29, 3 }
  0x47   : > { %1381 = vmatpush3.bf16.msra.mxu1 %v1536_v59  ;;  %1342 = vmatprep.subr.bf16.mxu0 %v1537_v60 }
  0x48   : > { %1382 = vmatprep.subr.bf16.mxu1 %v1538_v61  ;;  %s1972_s29 = smov (!%p261_p8, %s1934_s29), 3 }
  0x49   : > { %s1238_s23 = sshll.u32 %s1972_s29, 2 }
  0x4a   : > { %1343 = vmatpush3.bf16.msra.mxu0 %v1539_v62  ;;  %s264_s26 = scalar_lea.vmem %s1967_s3, %s1238_s23 }
  0x4b   : > { %1383 = vmatpush3.bf16.msra.mxu1 %v1540_v63  ;;  %1408 = vmatprep.subr.bf16.mxu0 %v1547_v4 }
  0x4c   : > { %1466 = vmatprep.subr.bf16.mxu1 %v1547_v4 }
  0x4d   : > { %885 = vmatmul.mubr.bf16.vlgmr.msra.gmra.mxu0 %v1541_v0 }
  0x4e   : > { %950 = vmatmul.mubr.bf16.vlgmr.msra.gmra.mxu1 %v1544_v2  ;;  %1409 = vmatpush3.bf16.msra.mxu0 %v1548_v5 }
  0x4f   : > { %1474 = vmatpush3.bf16.msra.mxu1 %v1548_v5  ;;  %1410 = vmatprep.subr.bf16.mxu0 %v1549_v6 }
  0x50   : > { %1467 = vmatprep.subr.bf16.mxu1 %v1549_v6  ;;  %892 = vmatprep.mubr.bf16.mxu0 %v1551_v8 }
  0x51   : > { %957 = vmatprep.mubr.bf16.mxu1 %v1553_v9 }
  0x52   : > { %1411 = vmatpush3.bf16.msra.mxu0 %v1550_v7 }
  0x53   : > { %1475 = vmatpush3.bf16.msra.mxu1 %v1550_v7  ;;  %1412 = vmatprep.subr.bf16.mxu0 %v1557_v12 }
  0x54   : > { %1468 = vmatprep.subr.bf16.mxu1 %v1557_v12 }
  0x55   : > { %893 = vmatmul.mubr.bf16.gmra.mxu0 %v1555_v10 }
  0x56   : > { %958 = vmatmul.mubr.bf16.gmra.mxu1 %v1556_v11  ;;  %1413 = vmatpush3.bf16.msra.mxu0 %v1558_v13 }
  0x57   : > { %1476 = vmatpush3.bf16.msra.mxu1 %v1558_v13  ;;  %1414 = vmatprep.subr.bf16.mxu0 %v1559_v14 }
  0x58   : > { %1469 = vmatprep.subr.bf16.mxu1 %v1559_v14  ;;  %900 = vmatprep.mubr.bf16.mxu0 %v1561_v16 }
  0x59   : > { %965 = vmatprep.mubr.bf16.mxu1 %v1563_v17 }
  0x5a   : > { %1415 = vmatpush3.bf16.msra.mxu0 %v1560_v15 }
  0x5b   : > { %1477 = vmatpush3.bf16.msra.mxu1 %v1560_v15  ;;  %1416 = vmatprep.subr.bf16.mxu0 %v1567_v19 }
  0x5c   : > { %1470 = vmatprep.subr.bf16.mxu1 %v1567_v19 }
  0x5d   : > { %901 = vmatmul.mubr.bf16.gmra.mxu0 %v1565_v18 }
  0x5e   : > { %966 = vmatmul.mubr.bf16.gmra.mxu1 %v1566_v20  ;;  %1417 = vmatpush3.bf16.msra.mxu0 %v1568_v21 }
  0x5f   : > { %908 = vmatprep.mubr.bf16.mxu0 %v1571_v23  ;;  %1478 = vmatpush3.bf16.msra.mxu1 %v1568_v21 }
  0x60   : > { %1418 = vmatprep.subr.bf16.mxu0 %v1569_v22  ;;  %1471 = vmatprep.subr.bf16.mxu1 %v1569_v22 }
  0x61   : > { %973 = vmatprep.mubr.bf16.mxu1 %v1573_v24 }
  0x62   : > { %1419 = vmatpush3.bf16.msra.mxu0 %v1570_v25 }
  0x63   : > { %1479 = vmatpush3.bf16.msra.mxu1 %v1570_v25  ;;  %1420 = vmatprep.subr.bf16.mxu0 %v1577_v26 }
  0x64   : > { %1472 = vmatprep.subr.bf16.mxu1 %v1577_v26 }
  0x65   : > { %909 = vmatmul.mubr.bf16.gmra.mxu0 %v1575_v27 }
  0x66   : > { %974 = vmatmul.mubr.bf16.gmra.mxu1 %v1576_v28  ;;  %1014 = vmatprep.mubr.bf16.mxu0 %v1583_v31 }
  0x67   : > { %1421 = vmatpush3.bf16.msra.mxu0 %v1578_v29  ;;  %1480 = vmatpush3.bf16.msra.mxu1 %v1578_v29 }
  0x68   : > { %1422 = vmatprep.subr.bf16.mxu0 %v1579_v30  ;;  %1473 = vmatprep.subr.bf16.mxu1 %v1579_v30 }
  0x69   : > { %1038 = vmatprep.mubr.bf16.mxu1 %v1586_v32 }
  0x6b   : > { %1423 = vmatpush3.bf16.msra.mxu0 %v1580_v33  ;;  %1481 = vmatpush3.bf16.msra.mxu1 %v1580_v33 }
  0x6c   : > { %1454 = vmatprep.subr.bf16.mxu1 %v1587_v34 }
  0x6e   : > { %1015 = vmatmul.mubr.bf16.vlgmr.msra.gmra.mxu0 %v1581_v35  ;;  %1039 = vmatmul.mubr.bf16.vlgmr.msra.gmra.mxu1 %v1584_v36 }
  0x6f   : > { %1022 = vmatprep.mubr.bf16.mxu0 %v1589_v37  ;;  %1455 = vmatpush3.bf16.msra.mxu1 %v1587_v34 }
  0x70   : > { %1458 = vmatprep.mubr.msk.bf16.mxu1 %vm839_vm0, %v1591_v38  ;;  %1456 = vmatprep.subr.bf16.mxu1 %v1588_v39 }
  0x73   : > { %1457 = vmatpush3.bf16.msra.mxu1 %v1588_v39 }
  0x76   : > { %1023 = vmatmul.mubr.bf16.gmra.mxu0 %v1592_v40  ;;  %1459 = vmatmul.mubr.msk.bf16.vlgmr.msra.gmra.mxu1 %vm839_vm0, %v1593_v41 }
  0x77   : > { %1030 = vmatprep.mubr.bf16.mxu0 %v1594_v42  ;;  %1462 = vmatprep.mubr.msk.bf16.mxu1 %vm839_vm0, %v1596_v43 }
  0x7e   : > { %1031 = vmatmul.mubr.bf16.gmra.mxu0 %v1597_v44  ;;  %1463 = vmatmul.mubr.msk.bf16.gmra.mxu1 %vm839_vm0, %v1598_v45 }
 0x10d   : > { %v1344_v46 = vpop.f32.mrf.mxu0 }
 0x10e   : > { %v1384_v47 = vpop.f32.mrf.mxu1 }
 0x10f   : > { %v1345_v48 = vpop.f32.mrf.mxu0 }
 0x110   : > { %v1385_v49 = vpop.f32.mrf.mxu1  ;;  %v1346_v30 = vadd.f32 %v1345_v48, %v1344_v46 }
 0x111   : > { %v1347_v50 = vpop.f32.mrf.mxu0  ;;  %v1386_v31 = vadd.f32 %v1385_v49, %v1384_v47 }
 0x112   : > { %v1387_v51 = vpop.f32.mrf.mxu1 }
 0x113   : > { %v1348_v52 = vpop.f32.mrf.mxu0 }
 0x114   : > { %v1388_v53 = vpop.f32.mrf.mxu1 }
 0x115   : > { %v1350_v54 = vpop.f32.mrf.mxu0  ;;  %v1389_v46 = vadd.f32 %v1388_v53, %v1387_v51 }
 0x116   : > { %v1390_v55 = vpop.f32.mrf.mxu1 }
 0x117   : > { %v1351_v56 = vpop.f32.mrf.mxu0 }
 0x118   : > { %v1391_v57 = vpop.f32.mrf.mxu1  ;;  %v1352_v24 = vadd.f32 %v1351_v56, %v1350_v54  ;;  %v1349_v56 = vadd.f32 %v1348_v52, %v1347_v50 }
 0x119   : > { %v1353_v58 = vpop.f32.mrf.mxu0  ;;  %v1392_v25 = vadd.f32 %v1391_v57, %v1390_v55  ;;  %v952_v55 = vadd.f32 %v1386_v31, %v1346_v30 }
 0x11a   : > { %v1393_v59 = vpop.f32.mrf.mxu1  ;;  %v955_v53 = vadd.f32 %v1389_v46, %v1349_v56 }
 0x11b   : > { %v1354_v60 = vpop.f32.mrf.mxu0  ;;  %v960_v38 = vadd.f32 %v1392_v25, %v1352_v24 }
 0x11c   : > { %v1394_v61 = vpop.f32.mrf.mxu1  ;;  %v1355_v32 = vadd.f32 %v1354_v60, %v1353_v58 }
 0x11d   : > { %v1356_v62 = vpop.f32.mrf.mxu0  ;;  %v1395_v33 = vadd.f32 %v1394_v61, %v1393_v59 }
 0x11e   : > { %v1396_v63 = vpop.f32.mrf.mxu1 }
 0x11f   : > { %v1357_v0 = vpop.f32.mrf.mxu0  ;;  %v963_v47 = vadd.f32 %v1395_v33, %v1355_v32 }
 0x120   : > { %v1397_v1 = vpop.f32.mrf.mxu1  ;;  %v1358_v39 = vadd.f32 %v1357_v0, %v1356_v62 }
 0x121   : > { %v1359_v2 = vpop.f32.mrf.mxu0  ;;  %v1398_v42 = vadd.f32 %v1397_v1, %v1396_v63 }
 0x122   : > { %v1399_v3 = vpop.f32.mrf.mxu1 }
 0x123   : > { %v1360_v4 = vpop.f32.mrf.mxu0 }
 0x124   : > { %v1400_v5 = vpop.f32.mrf.mxu1  ;;  %v1361_v61 = vadd.f32 %v1360_v4, %v1359_v2 }
 0x125   : > { %v1362_v6 = vpop.f32.mrf.mxu0  ;;  %v1401_v62 = vadd.f32 %v1400_v5, %v1399_v3 }
 0x126   : > { %v1402_v7 = vpop.f32.mrf.mxu1 }
 0x127   : > { %v1363_v8 = vpop.f32.mrf.mxu0  ;;  %v971_v4 = vadd.f32 %v1401_v62, %v1361_v61 }
 0x128   : > { %v1403_v9 = vpop.f32.mrf.mxu1  ;;  %v1364_v27 = vadd.f32 %v1363_v8, %v1362_v6  ;;  %v968_v6 = vadd.f32 %v1398_v42, %v1358_v39 }
 0x129   : > { %v1365_v10 = vpop.f32.mrf.mxu0  ;;  %v1404_v28 = vadd.f32 %v1403_v9, %v1402_v7 }
 0x12a   : > { %v1405_v11 = vpop.f32.mrf.mxu1 }
 0x12b   : > { %v1366_v12 = vpop.f32.mrf.mxu0  ;;  %v976_v43 = vadd.f32 %v1404_v28, %v1364_v27  ;;  %v1321_v27 = vld [vmem:[%s1966_s2] ss:$0 sm:$0xff] }
 0x12c   : > { %v1406_v13 = vpop.f32.mrf.mxu1  ;;  %v1367_v44 = vadd.f32 %v1366_v12, %v1365_v10 }
 0x12d   : > { %v1407_v45 = vadd.f32 %v1406_v13, %v1405_v11 }
 0x12e   : > { %v1424_v14 = vpop.f32.mrf.mxu0  ;;  %v1442_v15 = vpop.f32.mrf.mxu1 }
 0x12f   : > { %v979_v7 = vadd.f32 %v1407_v45, %v1367_v44 }
 0x130   : > { %v1425_v16 = vpop.f32.mrf.mxu0  ;;  %v1443_v17 = vpop.f32.mrf.mxu1 }
 0x131   : > { %v1444_v35 = vadd.f32 %v1443_v17, %v1442_v15  ;;  %v1426_v40 = vadd.f32 %v1425_v16, %v1424_v14 }
 0x132   : > { %v1427_v18 = vpop.f32.mrf.mxu0  ;;  %v1445_v19 = vpop.f32.mrf.mxu1 }
 0x133   : > { %v1041_v59 = vadd.f32 %v1444_v35, %v976_v43  ;;  %v1017_v0 = vadd.f32 %v1426_v40, %v952_v55 }
 0x134   : > { %v1428_v20 = vpop.f32.mrf.mxu0  ;;  %v1446_v21 = vpop.f32.mrf.mxu1 }
 0x135   : > { %v1447_v49 = vadd.f32 %v1446_v21, %v1445_v19  ;;  %v1429_v63 = vadd.f32 %v1428_v20, %v1427_v18 }
 0x136   : > { %v1430_v22 = vpop.f32.mrf.mxu0  ;;  %v1460_v23 = vpop.f32.mrf.mxu1 }
 0x137   : > { %v1044_v2 = vadd.f32 %v1447_v49, %v979_v7  ;;  %v1020_v5 = vadd.f32 %v1429_v63, %v955_v53 }
 0x138   : > { %v1431_v26 = vpop.f32.mrf.mxu0  ;;  %v1081_v29 = vpop.f32.mrf.mxu1 }
 0x139   : > { %v1432_v36 = vadd.f32 %v1431_v26, %v1430_v22  ;;  %v1082_v8 = vadd.f32 %v1081_v29, %v1017_v0 }
 0x13a   : > { %v1433_v34 = vpop.f32.mrf.mxu0  ;;  %v1461_v37 = vpop.f32.mrf.mxu1 }
 0x13b   : > { %v1025_v57 = vadd.f32 %v1432_v36, %v960_v38  ;;  %v1113_v18 = vsel %vm1112_vm1, %v1082_v8, -inf }
 0x13c   : > { %v1434_v41 = vpop.f32.mrf.mxu0  ;;  %v1084_v54 = vpop.f32.mrf.mxu1 }
 0x13d   : > { %v1435_v58 = vadd.f32 %v1434_v41, %v1433_v34  ;;  %v1090_v10 = vadd.f32 %v1460_v23, %v1025_v57  ;;  %v1085_v19 = vadd.f32 %v1084_v54, %v1020_v5 }
 0x13e   : > { %v1436_v48 = vpop.f32.mrf.mxu0  ;;  %v1464_v60 = vpop.f32.mrf.mxu1 }
 0x13f   : > { %v1106_v50 = vadd.f32 %v1464_v60, %v1041_v59  ;;  %v1028_v11 = vadd.f32 %v1435_v58, %v963_v47  ;;  %v1114_v21 = vsel %vm1112_vm1, %v1090_v10, -inf  ;;  %v1120_v31 = vsel %vm1112_vm1, %v1085_v19, -inf }
 0x140   : > { %v1437_v1 = vpop.f32.mrf.mxu0  ;;  %v1097_v52 = vpop.f32.mrf.mxu1 }
 0x141   : > { %v1438_v51 = vadd.f32 %v1437_v1, %v1436_v48  ;;  %v1117_v14 = vsel %vm1112_vm1, %v1106_v50, -inf  ;;  %v1093_v20 = vadd.f32 %v1461_v37, %v1028_v11 }
 0x142   : > { %v1439_v9 = vpop.f32.mrf.mxu0  ;;  %v1465_v3 = vpop.f32.mrf.mxu1  ;;  %v1118_v24 = vmax.f32 %v1114_v21, %v1117_v14 }
 0x143   : > { %v1033_v12 = vadd.f32 %v1438_v51, %v968_v6  ;;  %v1109_v16 = vadd.f32 %v1465_v3, %v1044_v2  ;;  %v1121_v32 = vsel %vm1112_vm1, %v1093_v20, -inf }
 0x144   : > { %v1440_v13 = vpop.f32.mrf.mxu0  ;;  %v1100_v26 = vpop.f32.mrf.mxu1 }
 0x145   : > { %v1098_v15 = vadd.f32 %v1097_v52, %v1033_v12  ;;  %v1441_v17 = vadd.f32 %v1440_v13, %v1439_v9  ;;  %v1124_v28 = vsel %vm1112_vm1, %v1109_v16, -inf }
 0x146   : > { %v1125_v35 = vmax.f32 %v1121_v32, %v1124_v28 }
 0x147   : > { %v1115_v22 = vsel %vm1112_vm1, %v1098_v15, -inf  ;;  %v1036_v23 = vadd.f32 %v1441_v17, %v971_v4 }
 0x148   : > { %v1116_v25 = vmax.f32 %v1113_v18, %v1115_v22 }
 0x149   : > { %v1101_v29 = vadd.f32 %v1100_v26, %v1036_v23 }
 0x14a   : > { %v1119_v30 = vmax.f32 %v1116_v25, %v1118_v24 }
 0x14b   : > { %v1122_v33 = vsel %vm1112_vm1, %v1101_v29, -inf }
 0x14c   : > { %v1134_v34 = vadd.f32 %v1321_v27, %v1119_v30  ;;  %v1123_v36 = vmax.f32 %v1120_v31, %v1122_v33 }
 0x14e   : > { %v1326_v37 = vpack.c.bf16 %v1134_v34, %v1134_v34  ;;  %v1126_v38 = vmax.f32 %v1123_v36, %v1125_v35 }
 0x150   : > { %1145 = vst.msk [vmem:[%s264_s26] sm:$0xf] %vm1144_vm2, %v1326_v37  ;;  %v1135_v39 = vadd.f32 %v1321_v27, %v1126_v38 }
 0x152   : > { %v1327_v40 = vpack.c.bf16 %v1135_v39, %v1135_v39 }
 0x154   : > { %1146 = vst.msk [vmem:[%s264_s26 + $0x4] sm:$0xf] %vm1144_vm2, %v1327_v40 }
 0x155 PF: > { %p10_p9 = scmp.ge.s32.totalorder %s1660_s16, 4   ;;  %s1968_s12 = smov %s1617_s13 }
 0x156   : > { %s1969_s13 = smov %s1669_s19  ;;  %s1970_s14 = smov %s1660_s16 }
 0x157   :  { %12 = sbr.rel (!%p10_p9) target bundleno = 2 (0x2), region = 99 }

// kernel: mnist_parity_forward.5
= control target key start
LH: loop header
LB: loop body
LE: loop exit
PB: predicated region body
PF: predicated region fallthrough
CT: control target
= control target key end

     0   :  { %v540_v32 = vlaneseq  ;;  %v5358_v33 = vmov 1966171168   ;;  %s7278_s0 = inlined_call_operand.vmem [shape: bf16[2,1024], index: 0, kind: input, shape index: {}]   ;;  %s7279_s1 = inlined_call_operand.vmem [shape: bf16[1024,1024], index: 1, kind: input, shape index: {}]   ;;  %s7280_s2 = inlined_call_operand.vmem [shape: f32[1,1024], index: 2, kind: input, shape index: {}]   ;;  %s7281_s3 = inlined_call_operand.vmem [shape: bf16[1024,10], index: 3, kind: input, shape index: {}]   ;;  %s7282_s4 = inlined_call_operand.vmem [shape: f32[1,10], index: 4, kind: input, shape index: {}]   ;;  %s7283_s5 = inlined_call_operand.vmem [shape: f32[2,10], index: 5, kind: input, shape index: {}]   ;;  %s7284_s6 = inlined_call_operand.hbm [shape: f32[2,2], index: 6, kind: output, shape index: {}]  }
   0x1   :  { %v82_v0 = vld [vmem:[%s7279_s1 + $0x1c0] sm:$0xff]  ;;  %v583_v34 = vunpack.c.l.s4 %v5358_v33 }
   0x2   :  { %v86_v1 = vld [vmem:[%s7279_s1 + $0x1e0] sm:$0xff]  ;;  %v5461_v43 = vshrl.u32 %v540_v32, 7 }
   0x3   :  { %v210_v2 = vld [vmem:[%s7279_s1 + $0x5c0] sm:$0xff]  ;;  %v4654_v3 = vcombine.high %v82_v0, %v86_v1  ;;  %v4653_v5 = vcombine.low %v82_v0, %v86_v1  ;;  %v584_v44 = vunpack.c.0.s8 %v583_v34 }
   0x4   :  { %v214_v4 = vld [vmem:[%s7279_s1 + $0x5e0] sm:$0xff] }
   0x5   :  { %v74_v6 = vld [vmem:[%s7279_s1 + $0x180] sm:$0xff]  ;;  %v4782_v8 = vcombine.high %v210_v2, %v214_v4  ;;  %v4781_v9 = vcombine.low %v210_v2, %v214_v4  ;;  %3198 = vmatprep.subr.bf16.mxu0 %v4654_v3  ;;  %v5476_v53 = vsub.s32 %v584_v44, %v5461_v43 }
   0x6   :  { %v78_v7 = vld [vmem:[%s7279_s1 + $0x1a0] sm:$0xff]  ;;  %3199 = vmatpush1.bf16.msra.mxu0 %v4653_v5 }
   0x7   :  { %v4646_v10 = vcombine.high %v74_v6, %v78_v7  ;;  %v202_v11 = vld [vmem:[%s7279_s1 + $0x580] sm:$0xff]  ;;  %3239 = vmatprep.subr.bf16.mxu1 %v4782_v8  ;;  %v4645_v18 = vcombine.low %v74_v6, %v78_v7 }
   0x8   :  { %v206_v12 = vld [vmem:[%s7279_s1 + $0x5a0] sm:$0xff]  ;;  %3240 = vmatpush1.bf16.msra.mxu1 %v4781_v9 }
   0x9   :  { %v66_v13 = vld [vmem:[%s7279_s1 + $0x140] sm:$0xff]  ;;  %v4774_v14 = vcombine.high %v202_v11, %v206_v12  ;;  %3200 = vmatprep.subr.bf16.mxu0 %v4646_v10  ;;  %v4773_v19 = vcombine.low %v202_v11, %v206_v12 }
   0xa   :  { %v70_v15 = vld [vmem:[%s7279_s1 + $0x160] sm:$0xff]  ;;  %3201 = vmatpush1.bf16.msra.mxu0 %v4645_v18 }
   0xb   :  { %v194_v16 = vld [vmem:[%s7279_s1 + $0x540] sm:$0xff]  ;;  %v4638_v20 = vcombine.high %v66_v13, %v70_v15  ;;  %3241 = vmatprep.subr.bf16.mxu1 %v4774_v14  ;;  %v4637_v26 = vcombine.low %v66_v13, %v70_v15 }
   0xc   :  { %v198_v17 = vld [vmem:[%s7279_s1 + $0x560] sm:$0xff]  ;;  %3242 = vmatpush1.bf16.msra.mxu1 %v4773_v19 }
   0xd   :  { %v4766_v21 = vcombine.high %v194_v16, %v198_v17  ;;  %v58_v22 = vld [vmem:[%s7279_s1 + $0x100] sm:$0xff]  ;;  %3202 = vmatprep.subr.bf16.mxu0 %v4638_v20  ;;  %v4765_v27 = vcombine.low %v194_v16, %v198_v17 }
   0xe   :  { %v62_v23 = vld [vmem:[%s7279_s1 + $0x120] sm:$0xff]  ;;  %3203 = vmatpush1.bf16.msra.mxu0 %v4637_v26 }
   0xf   :  { %v186_v24 = vld [vmem:[%s7279_s1 + $0x500] sm:$0xff]  ;;  %v4630_v28 = vcombine.high %v58_v22, %v62_v23  ;;  %3243 = vmatprep.subr.bf16.mxu1 %v4766_v21  ;;  %v4629_v37 = vcombine.low %v58_v22, %v62_v23 }
  0x10   :  { %v190_v25 = vld [vmem:[%s7279_s1 + $0x520] sm:$0xff]  ;;  %3244 = vmatpush1.bf16.msra.mxu1 %v4765_v27 }
  0x11   :  { %v4758_v29 = vcombine.high %v186_v24, %v190_v25  ;;  %v50_v30 = vld [vmem:[%s7279_s1 + $0xc0] sm:$0xff]  ;;  %3204 = vmatprep.subr.bf16.mxu0 %v4630_v28  ;;  %v4757_v38 = vcombine.low %v186_v24, %v190_v25 }
  0x12   :  { %v54_v31 = vld [vmem:[%s7279_s1 + $0xe0] sm:$0xff]  ;;  %3205 = vmatpush1.bf16.msra.mxu0 %v4629_v37 }
  0x13   :  { %v178_v35 = vld [vmem:[%s7279_s1 + $0x4c0] sm:$0xff]  ;;  %v4622_v39 = vcombine.high %v50_v30, %v54_v31  ;;  %3245 = vmatprep.subr.bf16.mxu1 %v4758_v29  ;;  %v4621_v47 = vcombine.low %v50_v30, %v54_v31 }
  0x14   :  { %v182_v36 = vld [vmem:[%s7279_s1 + $0x4e0] sm:$0xff]  ;;  %3246 = vmatpush1.bf16.msra.mxu1 %v4757_v38 }
  0x15   :  { %v4750_v40 = vcombine.high %v178_v35, %v182_v36  ;;  %v42_v41 = vld [vmem:[%s7279_s1 + $0x80] sm:$0xff]  ;;  %3206 = vmatprep.subr.bf16.mxu0 %v4622_v39  ;;  %v4749_v48 = vcombine.low %v178_v35, %v182_v36 }
  0x16   :  { %v46_v42 = vld [vmem:[%s7279_s1 + $0xa0] sm:$0xff]  ;;  %3207 = vmatpush1.bf16.msra.mxu0 %v4621_v47 }
  0x17   :  { %v170_v45 = vld [vmem:[%s7279_s1 + $0x480] sm:$0xff]  ;;  %v4614_v49 = vcombine.high %v42_v41, %v46_v42  ;;  %3247 = vmatprep.subr.bf16.mxu1 %v4750_v40  ;;  %v4613_v56 = vcombine.low %v42_v41, %v46_v42 }
  0x18   :  { %v174_v46 = vld [vmem:[%s7279_s1 + $0x4a0] sm:$0xff]  ;;  %3248 = vmatpush1.bf16.msra.mxu1 %v4749_v48 }
  0x19   :  { %v4742_v50 = vcombine.high %v170_v45, %v174_v46  ;;  %v34_v51 = vld [vmem:[%s7279_s1 + $0x40] sm:$0xff]  ;;  %3208 = vmatprep.subr.bf16.mxu0 %v4614_v49  ;;  %v4741_v57 = vcombine.low %v170_v45, %v174_v46 }
  0x1a   :  { %v38_v52 = vld [vmem:[%s7279_s1 + $0x60] sm:$0xff]  ;;  %3209 = vmatpush1.bf16.msra.mxu0 %v4613_v56 }
  0x1b   :  { %v162_v54 = vld [vmem:[%s7279_s1 + $0x440] sm:$0xff]  ;;  %v4606_v58 = vcombine.high %v34_v51, %v38_v52  ;;  %3249 = vmatprep.subr.bf16.mxu1 %v4742_v50  ;;  %v4605_v2 = vcombine.low %v34_v51, %v38_v52 }
  0x1c   :  { %v166_v55 = vld [vmem:[%s7279_s1 + $0x460] sm:$0xff]  ;;  %3250 = vmatpush1.bf16.msra.mxu1 %v4741_v57 }
  0x1d   :  { %v25_v59 = vld [vmem:[%s7278_s0] sm:$0xff]  ;;  %v4734_v60 = vcombine.high %v162_v54, %v166_v55  ;;  %3210 = vmatprep.subr.bf16.mxu0 %v4606_v58  ;;  %v4733_v4 = vcombine.low %v162_v54, %v166_v55 }
  0x1e   :  { %v26_v61 = vld [vmem:[%s7279_s1] sm:$0xff]  ;;  %v5494_v63 = vrot.slane %v25_v59, %v5476_v53  ;;  %3211 = vmatpush1.bf16.msra.mxu0 %v4605_v2  ;;  %v581_v19 = vcombine.high %v25_v59, %v25_v59 }
  0x1f   :  { %v30_v62 = vld [vmem:[%s7279_s1 + $0x20] sm:$0xff]  ;;  %3251 = vmatprep.subr.bf16.mxu1 %v4734_v60 }
  0x20   :  { %v154_v0 = vld [vmem:[%s7279_s1 + $0x400] sm:$0xff]  ;;  %v596_v3 = vcombine.high %v5494_v63, %v5494_v63  ;;  %v4598_v5 = vcombine.high %v26_v61, %v30_v62  ;;  %v4597_v12 = vcombine.low %v26_v61, %v30_v62  ;;  %3252 = vmatpush1.bf16.msra.mxu1 %v4733_v4  ;;  %v5544_v28 = vrot.slane %v581_v19, %v5476_v53 }
  0x21   :  { %v158_v1 = vld [vmem:[%s7279_s1 + $0x420] sm:$0xff] }
  0x22   :  { %v4726_v6 = vcombine.high %v154_v0, %v158_v1  ;;  %v146_v7 = vld [vmem:[%s7279_s1 + $0x3c0] sm:$0xff]  ;;  %v5511_v9 = vrot.slane %v596_v3, %v5476_v53  ;;  %3212 = vmatprep.subr.bf16.mxu0 %v4598_v5  ;;  %v4725_v14 = vcombine.low %v154_v0, %v158_v1  ;;  %v5554_v32 = vrot.slane %v5544_v28, %v5476_v53 }
  0x23   :  { %v150_v8 = vld [vmem:[%s7279_s1 + $0x3e0] sm:$0xff]  ;;  %3213 = vmatpush1.bf16.msra.mxu0 %v4597_v12 }
  0x24   :  { %v274_v10 = vld [vmem:[%s7279_s1 + $0x7c0] sm:$0xff]  ;;  %3230 = vmatprep.mubr.bf16.mxu0 %v5511_v9  ;;  %v5522_v13 = vcombine.high %v5511_v9, %v5511_v9  ;;  %v4718_v15 = vcombine.high %v146_v7, %v150_v8  ;;  %3253 = vmatprep.subr.bf16.mxu1 %v4726_v6  ;;  %v4717_v22 = vcombine.low %v146_v7, %v150_v8 }
  0x25   :  { %v278_v11 = vld [vmem:[%s7279_s1 + $0x7e0] sm:$0xff]  ;;  %3254 = vmatpush1.bf16.msra.mxu1 %v4725_v14 }
  0x26   :  { %v4846_v16 = vcombine.high %v274_v10, %v278_v11  ;;  %v138_v17 = vld [vmem:[%s7279_s1 + $0x380] sm:$0xff]  ;;  %3271 = vmatprep.mubr.bf16.mxu1 %v5522_v13  ;;  %3214 = vmatprep.subr.bf16.mxu0 %v4718_v15  ;;  %v4845_v23 = vcombine.low %v274_v10, %v278_v11 }
  0x27   :  { %v142_v18 = vld [vmem:[%s7279_s1 + $0x3a0] sm:$0xff]  ;;  %3215 = vmatpush2.bf16.msra.mxu0 %v4717_v22 }
  0x28   :  { %v266_v20 = vld [vmem:[%s7279_s1 + $0x780] sm:$0xff]  ;;  %v4710_v24 = vcombine.high %v138_v17, %v142_v18  ;;  %3255 = vmatprep.subr.bf16.mxu1 %v4846_v16  ;;  %v4709_v31 = vcombine.low %v138_v17, %v142_v18 }
  0x29   :  { %v270_v21 = vld [vmem:[%s7279_s1 + $0x7a0] sm:$0xff]  ;;  %3256 = vmatpush2.bf16.msra.mxu1 %v4845_v23  ;;  %v5632_v23 = vrot.slane %v5494_v63, %v5476_v53 }
  0x2a   :  { %v4838_v25 = vcombine.high %v266_v20, %v270_v21  ;;  %v130_v26 = vld [vmem:[%s7279_s1 + $0x340] sm:$0xff]  ;;  %3216 = vmatprep.subr.bf16.mxu0 %v4710_v24  ;;  %v4837_v33 = vcombine.low %v266_v20, %v270_v21  ;;  %v597_v21 = vcombine.high %v5544_v28, %v5544_v28 }
  0x2b   :  { %v134_v27 = vld [vmem:[%s7279_s1 + $0x360] sm:$0xff]  ;;  %3217 = vmatpush2.bf16.msra.mxu0 %v4709_v31  ;;  %v5651_v31 = vcombine.high %v5632_v23, %v5632_v23 }
  0x2c   :  { %v258_v29 = vld [vmem:[%s7279_s1 + $0x740] sm:$0xff]  ;;  %v4702_v34 = vcombine.high %v130_v26, %v134_v27  ;;  %3257 = vmatprep.subr.bf16.mxu1 %v4838_v25  ;;  %v4701_v40 = vcombine.low %v130_v26, %v134_v27 }
  0x2d   :  { %v262_v30 = vld [vmem:[%s7279_s1 + $0x760] sm:$0xff]  ;;  %3258 = vmatpush2.bf16.msra.mxu1 %v4837_v33 }
  0x2e   :  { %v4830_v35 = vcombine.high %v258_v29, %v262_v30  ;;  %v122_v36 = vld [vmem:[%s7279_s1 + $0x300] sm:$0xff]  ;;  %3218 = vmatprep.subr.bf16.mxu0 %v4702_v34  ;;  %v4829_v41 = vcombine.low %v258_v29, %v262_v30  ;;  %v5647_v30 = vrot.slane %v597_v21, %v5476_v53 }
  0x2f   :  { %v126_v37 = vld [vmem:[%s7279_s1 + $0x320] sm:$0xff]  ;;  %3219 = vmatpush2.bf16.msra.mxu0 %v4701_v40 }
  0x30   :  { %v250_v38 = vld [vmem:[%s7279_s1 + $0x700] sm:$0xff]  ;;  %v4694_v42 = vcombine.high %v122_v36, %v126_v37  ;;  %3259 = vmatprep.subr.bf16.mxu1 %v4830_v35  ;;  %v4693_v49 = vcombine.low %v122_v36, %v126_v37  ;;  %v5668_v40 = vcombine.high %v5647_v30, %v5647_v30 }
  0x31   :  { %v254_v39 = vld [vmem:[%s7279_s1 + $0x720] sm:$0xff]  ;;  %3260 = vmatpush2.bf16.msra.mxu1 %v4829_v41 }
  0x32   :  { %v4822_v44 = vcombine.high %v250_v38, %v254_v39  ;;  %v114_v45 = vld [vmem:[%s7279_s1 + $0x2c0] sm:$0xff]  ;;  %3220 = vmatprep.subr.bf16.mxu0 %v4694_v42  ;;  %v4821_v50 = vcombine.low %v250_v38, %v254_v39 }
  0x33   :  { %v118_v46 = vld [vmem:[%s7279_s1 + $0x2e0] sm:$0xff]  ;;  %3221 = vmatpush2.bf16.msra.mxu0 %v4693_v49 }
  0x34   :  { %v242_v47 = vld [vmem:[%s7279_s1 + $0x6c0] sm:$0xff]  ;;  %v4686_v51 = vcombine.high %v114_v45, %v118_v46  ;;  %3261 = vmatprep.subr.bf16.mxu1 %v4822_v44  ;;  %v4685_v58 = vcombine.low %v114_v45, %v118_v46 }
  0x35   :  { %v246_v48 = vld [vmem:[%s7279_s1 + $0x6e0] sm:$0xff]  ;;  %3262 = vmatpush2.bf16.msra.mxu1 %v4821_v50 }
  0x36   :  { %v4814_v52 = vcombine.high %v242_v47, %v246_v48  ;;  %v106_v54 = vld [vmem:[%s7279_s1 + $0x280] sm:$0xff]  ;;  %3222 = vmatprep.subr.bf16.mxu0 %v4686_v51  ;;  %v4813_v59 = vcombine.low %v242_v47, %v246_v48 }
  0x37   :  { %v110_v55 = vld [vmem:[%s7279_s1 + $0x2a0] sm:$0xff]  ;;  %3223 = vmatpush2.bf16.msra.mxu0 %v4685_v58 }
  0x38   :  { %v234_v56 = vld [vmem:[%s7279_s1 + $0x680] sm:$0xff]  ;;  %v4678_v60 = vcombine.high %v106_v54, %v110_v55  ;;  %3263 = vmatprep.subr.bf16.mxu1 %v4814_v52  ;;  %v4677_v3 = vcombine.low %v106_v54, %v110_v55 }
  0x39   :  { %v238_v57 = vld [vmem:[%s7279_s1 + $0x6a0] sm:$0xff]  ;;  %3264 = vmatpush2.bf16.msra.mxu1 %v4813_v59 }
  0x3a   :  { %v4806_v61 = vcombine.high %v234_v56, %v238_v57  ;;  %v98_v62 = vld [vmem:[%s7279_s1 + $0x240] sm:$0xff]  ;;  %3224 = vmatprep.subr.bf16.mxu0 %v4678_v60  ;;  %v4805_v4 = vcombine.low %v234_v56, %v238_v57 }
  0x3b   :  { %v102_v0 = vld [vmem:[%s7279_s1 + $0x260] sm:$0xff]  ;;  %3225 = vmatpush2.bf16.msra.mxu0 %v4677_v3 }
  0x3c   :  { %v226_v1 = vld [vmem:[%s7279_s1 + $0x640] sm:$0xff]  ;;  %v4670_v5 = vcombine.high %v98_v62, %v102_v0  ;;  %3265 = vmatprep.subr.bf16.mxu1 %v4806_v61  ;;  %v4669_v12 = vcombine.low %v98_v62, %v102_v0 }
  0x3d   :  { %v230_v2 = vld [vmem:[%s7279_s1 + $0x660] sm:$0xff]  ;;  %3266 = vmatpush2.bf16.msra.mxu1 %v4805_v4 }
  0x3e   :  { %v4798_v6 = vcombine.high %v226_v1, %v230_v2  ;;  %v90_v7 = vld [vmem:[%s7279_s1 + $0x200] sm:$0xff]  ;;  %3226 = vmatprep.subr.bf16.mxu0 %v4670_v5  ;;  %v4797_v14 = vcombine.low %v226_v1, %v230_v2 }
  0x3f   :  { %v94_v8 = vld [vmem:[%s7279_s1 + $0x220] sm:$0xff]  ;;  %3227 = vmatpush2.bf16.msra.mxu0 %v4669_v12 }
  0x40   :  { %v218_v10 = vld [vmem:[%s7279_s1 + $0x600] sm:$0xff]  ;;  %v4662_v15 = vcombine.high %v90_v7, %v94_v8  ;;  %3267 = vmatprep.subr.bf16.mxu1 %v4798_v6  ;;  %v4661_v22 = vcombine.low %v90_v7, %v94_v8 }
  0x41   :  { %v222_v11 = vld [vmem:[%s7279_s1 + $0x620] sm:$0xff]  ;;  %3268 = vmatpush2.bf16.msra.mxu1 %v4797_v14 }
  0x42   :  { %v4790_v16 = vcombine.high %v218_v10, %v222_v11  ;;  %v338_v17 = vld [vmem:[%s7279_s1 + $0x9c0] sm:$0xff]  ;;  %3228 = vmatprep.subr.bf16.mxu0 %v4662_v15  ;;  %v4789_v24 = vcombine.low %v218_v10, %v222_v11 }
  0x43   :  { %v342_v18 = vld [vmem:[%s7279_s1 + $0x9e0] sm:$0xff]  ;;  %3229 = vmatpush2.bf16.msra.mxu0 %v4661_v22 }
  0x44   :  { %v466_v19 = vld [vmem:[%s7279_s1 + $0xdc0] sm:$0xff]  ;;  %v4910_v25 = vcombine.high %v338_v17, %v342_v18  ;;  %3269 = vmatprep.subr.bf16.mxu1 %v4790_v16  ;;  %v4909_v33 = vcombine.low %v338_v17, %v342_v18 }
  0x45   :  { %v470_v20 = vld [vmem:[%s7279_s1 + $0xde0] sm:$0xff]  ;;  %3270 = vmatpush2.bf16.msra.mxu1 %v4789_v24 }
  0x46   :  { %v5038_v26 = vcombine.high %v466_v19, %v470_v20  ;;  %v330_v27 = vld [vmem:[%s7279_s1 + $0x980] sm:$0xff]  ;;  %3280 = vmatprep.subr.bf16.mxu0 %v4910_v25  ;;  %v5037_v34 = vcombine.low %v466_v19, %v470_v20  ;;  %3231 = vmatmul.mubr.bf16.vlgmr.msra.gmra.mxu0 %v5632_v23 }
  0x47   :  { %v334_v28 = vld [vmem:[%s7279_s1 + $0x9a0] sm:$0xff]  ;;  %3281 = vmatpush1.bf16.msra.mxu0 %v4909_v33  ;;  %3312 = vmatprep.mubr.bf16.mxu0 %v5647_v30 }
  0x48   :  { %v458_v29 = vld [vmem:[%s7279_s1 + $0xd80] sm:$0xff]  ;;  %v4902_v35 = vcombine.high %v330_v27, %v334_v28  ;;  %3321 = vmatprep.subr.bf16.mxu1 %v5038_v26  ;;  %3272 = vmatmul.mubr.bf16.vlgmr.msra.gmra.mxu1 %v5651_v31  ;;  %v4901_v41 = vcombine.low %v330_v27, %v334_v28 }
  0x49   :  { %v462_v63 = vld [vmem:[%s7279_s1 + $0xda0] sm:$0xff]  ;;  %3322 = vmatpush1.bf16.msra.mxu1 %v5037_v34  ;;  %3353 = vmatprep.mubr.bf16.mxu1 %v5668_v40 }
  0x4a   :  { %v322_v36 = vld [vmem:[%s7279_s1 + $0x940] sm:$0xff]  ;;  %v5030_v38 = vcombine.high %v458_v29, %v462_v63  ;;  %3282 = vmatprep.subr.bf16.mxu0 %v4902_v35  ;;  %v5029_v42 = vcombine.low %v458_v29, %v462_v63 }
  0x4b   :  { %v326_v37 = vld [vmem:[%s7279_s1 + $0x960] sm:$0xff]  ;;  %3283 = vmatpush1.bf16.msra.mxu0 %v4901_v41 }
  0x4c   :  { %v450_v53 = vld [vmem:[%s7279_s1 + $0xd40] sm:$0xff]  ;;  %v4894_v44 = vcombine.high %v322_v36, %v326_v37  ;;  %3323 = vmatprep.subr.bf16.mxu1 %v5030_v38  ;;  %v4893_v50 = vcombine.low %v322_v36, %v326_v37 }
  0x4d   :  { %v454_v39 = vld [vmem:[%s7279_s1 + $0xd60] sm:$0xff]  ;;  %3324 = vmatpush1.bf16.msra.mxu1 %v5029_v42 }
  0x4e   :  { %v314_v45 = vld [vmem:[%s7279_s1 + $0x900] sm:$0xff]  ;;  %v5022_v48 = vcombine.high %v450_v53, %v454_v39  ;;  %3284 = vmatprep.subr.bf16.mxu0 %v4894_v44  ;;  %v5021_v51 = vcombine.low %v450_v53, %v454_v39 }
  0x4f   :  { %v318_v46 = vld [vmem:[%s7279_s1 + $0x920] sm:$0xff]  ;;  %3285 = vmatpush1.bf16.msra.mxu0 %v4893_v50 }
  0x50   :  { %v442_v47 = vld [vmem:[%s7279_s1 + $0xd00] sm:$0xff]  ;;  %v4886_v52 = vcombine.high %v314_v45, %v318_v46  ;;  %3325 = vmatprep.subr.bf16.mxu1 %v5022_v48  ;;  %v4885_v59 = vcombine.low %v314_v45, %v318_v46 }
  0x51   :  { %v446_v49 = vld [vmem:[%s7279_s1 + $0xd20] sm:$0xff]  ;;  %3326 = vmatpush1.bf16.msra.mxu1 %v5021_v51 }
  0x52   :  { %v306_v54 = vld [vmem:[%s7279_s1 + $0x8c0] sm:$0xff]  ;;  %v5014_v57 = vcombine.high %v442_v47, %v446_v49  ;;  %3286 = vmatprep.subr.bf16.mxu0 %v4886_v52  ;;  %v5013_v60 = vcombine.low %v442_v47, %v446_v49 }
  0x53   :  { %v310_v55 = vld [vmem:[%s7279_s1 + $0x8e0] sm:$0xff]  ;;  %3287 = vmatpush1.bf16.msra.mxu0 %v4885_v59 }
  0x54   :  { %v434_v56 = vld [vmem:[%s7279_s1 + $0xcc0] sm:$0xff]  ;;  %v4878_v61 = vcombine.high %v306_v54, %v310_v55  ;;  %3327 = vmatprep.subr.bf16.mxu1 %v5014_v57  ;;  %v4877_v4 = vcombine.low %v306_v54, %v310_v55 }
  0x55   :  { %v438_v58 = vld [vmem:[%s7279_s1 + $0xce0] sm:$0xff]  ;;  %3328 = vmatpush1.bf16.msra.mxu1 %v5013_v60 }
  0x56   :  { %v298_v62 = vld [vmem:[%s7279_s1 + $0x880] sm:$0xff]  ;;  %v5006_v2 = vcombine.high %v434_v56, %v438_v58  ;;  %3288 = vmatprep.subr.bf16.mxu0 %v4878_v61  ;;  %v5005_v5 = vcombine.low %v434_v56, %v438_v58 }
  0x57   :  { %v302_v0 = vld [vmem:[%s7279_s1 + $0x8a0] sm:$0xff]  ;;  %3289 = vmatpush1.bf16.msra.mxu0 %v4877_v4 }
  0x58   :  { %v426_v1 = vld [vmem:[%s7279_s1 + $0xc80] sm:$0xff]  ;;  %v4870_v6 = vcombine.high %v298_v62, %v302_v0  ;;  %3329 = vmatprep.subr.bf16.mxu1 %v5006_v2  ;;  %v4869_v14 = vcombine.low %v298_v62, %v302_v0 }
  0x59   :  { %v430_v3 = vld [vmem:[%s7279_s1 + $0xca0] sm:$0xff]  ;;  %3330 = vmatpush1.bf16.msra.mxu1 %v5005_v5 }
  0x5a   :  { %v290_v7 = vld [vmem:[%s7279_s1 + $0x840] sm:$0xff]  ;;  %v4998_v11 = vcombine.high %v426_v1, %v430_v3  ;;  %3290 = vmatprep.subr.bf16.mxu0 %v4870_v6  ;;  %v4997_v15 = vcombine.low %v426_v1, %v430_v3 }
  0x5b   :  { %v294_v8 = vld [vmem:[%s7279_s1 + $0x860] sm:$0xff]  ;;  %3291 = vmatpush1.bf16.msra.mxu0 %v4869_v14 }
  0x5c   :  { %v418_v10 = vld [vmem:[%s7279_s1 + $0xc40] sm:$0xff]  ;;  %v4862_v16 = vcombine.high %v290_v7, %v294_v8  ;;  %3331 = vmatprep.subr.bf16.mxu1 %v4998_v11  ;;  %v4861_v22 = vcombine.low %v290_v7, %v294_v8 }
  0x5d   :  { %v422_v12 = vld [vmem:[%s7279_s1 + $0xc60] sm:$0xff]  ;;  %3332 = vmatpush1.bf16.msra.mxu1 %v4997_v15 }
  0x5e   :  { %v282_v17 = vld [vmem:[%s7279_s1 + $0x800] sm:$0xff]  ;;  %v4990_v20 = vcombine.high %v418_v10, %v422_v12  ;;  %3292 = vmatprep.subr.bf16.mxu0 %v4862_v16  ;;  %v4989_v24 = vcombine.low %v418_v10, %v422_v12 }
  0x5f   :  { %v286_v18 = vld [vmem:[%s7279_s1 + $0x820] sm:$0xff]  ;;  %3293 = vmatpush1.bf16.msra.mxu0 %v4861_v22 }
  0x60   :  { %v410_v19 = vld [vmem:[%s7279_s1 + $0xc00] sm:$0xff]  ;;  %v4854_v25 = vcombine.high %v282_v17, %v286_v18  ;;  %3333 = vmatprep.subr.bf16.mxu1 %v4990_v20  ;;  %v4853_v33 = vcombine.low %v282_v17, %v286_v18 }
  0x61   :  { %v414_v21 = vld [vmem:[%s7279_s1 + $0xc20] sm:$0xff]  ;;  %3334 = vmatpush1.bf16.msra.mxu1 %v4989_v24 }
  0x62   :  { %v402_v26 = vld [vmem:[%s7279_s1 + $0xbc0] sm:$0xff]  ;;  %v4982_v29 = vcombine.high %v410_v19, %v414_v21  ;;  %3294 = vmatprep.subr.bf16.mxu0 %v4854_v25  ;;  %v4981_v34 = vcombine.low %v410_v19, %v414_v21 }
  0x63   :  { %v406_v27 = vld [vmem:[%s7279_s1 + $0xbe0] sm:$0xff]  ;;  %3295 = vmatpush1.bf16.msra.mxu0 %v4853_v33 }
  0x64   :  { %v530_v28 = vld [vmem:[%s7279_s1 + $0xfc0] sm:$0xff]  ;;  %v4974_v35 = vcombine.high %v402_v26, %v406_v27  ;;  %3335 = vmatprep.subr.bf16.mxu1 %v4982_v29  ;;  %v4973_v41 = vcombine.low %v402_v26, %v406_v27 }
  0x65   :  { %v534_v63 = vld [vmem:[%s7279_s1 + $0xfe0] sm:$0xff]  ;;  %3336 = vmatpush1.bf16.msra.mxu1 %v4981_v34 }
  0x66   :  { %v394_v36 = vld [vmem:[%s7279_s1 + $0xb80] sm:$0xff]  ;;  %v5102_v38 = vcombine.high %v530_v28, %v534_v63  ;;  %3296 = vmatprep.subr.bf16.mxu0 %v4974_v35  ;;  %v5101_v42 = vcombine.low %v530_v28, %v534_v63 }
  0x67   :  { %v398_v37 = vld [vmem:[%s7279_s1 + $0xba0] sm:$0xff]  ;;  %3297 = vmatpush2.bf16.msra.mxu0 %v4973_v41 }
  0x68   :  { %v522_v53 = vld [vmem:[%s7279_s1 + $0xf80] sm:$0xff]  ;;  %v4966_v44 = vcombine.high %v394_v36, %v398_v37  ;;  %3337 = vmatprep.subr.bf16.mxu1 %v5102_v38  ;;  %v4965_v50 = vcombine.low %v394_v36, %v398_v37  ;;  %v83_v36 = vld [vmem:[%s7279_s1 + $0x1c8] sm:$0xff] }
  0x69   :  { %v526_v39 = vld [vmem:[%s7279_s1 + $0xfa0] sm:$0xff]  ;;  %3338 = vmatpush2.bf16.msra.mxu1 %v5101_v42  ;;  %v87_v37 = vld [vmem:[%s7279_s1 + $0x1e8] sm:$0xff] }
  0x6a   :  { %v386_v45 = vld [vmem:[%s7279_s1 + $0xb40] sm:$0xff]  ;;  %v5094_v48 = vcombine.high %v522_v53, %v526_v39  ;;  %3298 = vmatprep.subr.bf16.mxu0 %v4966_v44  ;;  %v5093_v51 = vcombine.low %v522_v53, %v526_v39  ;;  %v211_v53 = vld [vmem:[%s7279_s1 + $0x5c8] sm:$0xff]  ;;  %v4656_v44 = vcombine.high %v83_v36, %v87_v37 }
  0x6b   :  { %v390_v46 = vld [vmem:[%s7279_s1 + $0xb60] sm:$0xff]  ;;  %3299 = vmatpush2.bf16.msra.mxu0 %v4965_v50  ;;  %v215_v39 = vld [vmem:[%s7279_s1 + $0x5e8] sm:$0xff]  ;;  %v5855_v50 = vcombine.high %v5554_v32, %v5554_v32 }
  0x6c   :  { %v514_v47 = vld [vmem:[%s7279_s1 + $0xf40] sm:$0xff]  ;;  %v4958_v52 = vcombine.high %v386_v45, %v390_v46  ;;  %3339 = vmatprep.subr.bf16.mxu1 %v5094_v48  ;;  %v4957_v59 = vcombine.low %v386_v45, %v390_v46  ;;  %v75_v45 = vld [vmem:[%s7279_s1 + $0x188] sm:$0xff]  ;;  %v4784_v48 = vcombine.high %v211_v53, %v215_v39 }
  0x6d   :  { %v518_v49 = vld [vmem:[%s7279_s1 + $0xf60] sm:$0xff]  ;;  %3340 = vmatpush2.bf16.msra.mxu1 %v5093_v51  ;;  %v79_v46 = vld [vmem:[%s7279_s1 + $0x1a8] sm:$0xff]  ;;  %v4655_v51 = vcombine.low %v83_v36, %v87_v37 }
  0x6e   :  { %v378_v54 = vld [vmem:[%s7279_s1 + $0xb00] sm:$0xff]  ;;  %v5086_v57 = vcombine.high %v514_v47, %v518_v49  ;;  %3300 = vmatprep.subr.bf16.mxu0 %v4958_v52  ;;  %v5085_v60 = vcombine.low %v514_v47, %v518_v49  ;;  %v203_v47 = vld [vmem:[%s7279_s1 + $0x588] sm:$0xff] }
  0x6f   :  { %v382_v55 = vld [vmem:[%s7279_s1 + $0xb20] sm:$0xff]  ;;  %3301 = vmatpush2.bf16.msra.mxu0 %v4957_v59  ;;  %v207_v49 = vld [vmem:[%s7279_s1 + $0x5a8] sm:$0xff] }
  0x70   :  { %v506_v56 = vld [vmem:[%s7279_s1 + $0xf00] sm:$0xff]  ;;  %v4950_v61 = vcombine.high %v378_v54, %v382_v55  ;;  %3341 = vmatprep.subr.bf16.mxu1 %v5086_v57  ;;  %v4949_v4 = vcombine.low %v378_v54, %v382_v55 }
  0x71   :  { %v510_v58 = vld [vmem:[%s7279_s1 + $0xf20] sm:$0xff]  ;;  %3342 = vmatpush2.bf16.msra.mxu1 %v5085_v60 }
  0x72   :  { %v370_v62 = vld [vmem:[%s7279_s1 + $0xac0] sm:$0xff]  ;;  %v5078_v2 = vcombine.high %v506_v56, %v510_v58  ;;  %3302 = vmatprep.subr.bf16.mxu0 %v4950_v61  ;;  %v5077_v5 = vcombine.low %v506_v56, %v510_v58 }
  0x73   :  { %v374_v0 = vld [vmem:[%s7279_s1 + $0xae0] sm:$0xff]  ;;  %3303 = vmatpush2.bf16.msra.mxu0 %v4949_v4 }
  0x74   :  { %v498_v1 = vld [vmem:[%s7279_s1 + $0xec0] sm:$0xff]  ;;  %v4942_v6 = vcombine.high %v370_v62, %v374_v0  ;;  %3343 = vmatprep.subr.bf16.mxu1 %v5078_v2  ;;  %v4941_v14 = vcombine.low %v370_v62, %v374_v0 }
  0x75   :  { %v502_v3 = vld [vmem:[%s7279_s1 + $0xee0] sm:$0xff]  ;;  %3344 = vmatpush2.bf16.msra.mxu1 %v5077_v5 }
  0x76   :  { %v362_v7 = vld [vmem:[%s7279_s1 + $0xa80] sm:$0xff]  ;;  %v5070_v11 = vcombine.high %v498_v1, %v502_v3  ;;  %3304 = vmatprep.subr.bf16.mxu0 %v4942_v6  ;;  %v5069_v15 = vcombine.low %v498_v1, %v502_v3 }
  0x77   :  { %v366_v8 = vld [vmem:[%s7279_s1 + $0xaa0] sm:$0xff]  ;;  %3305 = vmatpush2.bf16.msra.mxu0 %v4941_v14 }
  0x78   :  { %v490_v10 = vld [vmem:[%s7279_s1 + $0xe80] sm:$0xff]  ;;  %v4934_v16 = vcombine.high %v362_v7, %v366_v8  ;;  %3345 = vmatprep.subr.bf16.mxu1 %v5070_v11  ;;  %v4933_v22 = vcombine.low %v362_v7, %v366_v8 }
  0x79   :  { %v494_v12 = vld [vmem:[%s7279_s1 + $0xea0] sm:$0xff]  ;;  %3346 = vmatpush2.bf16.msra.mxu1 %v5069_v15 }
  0x7a   :  { %v354_v17 = vld [vmem:[%s7279_s1 + $0xa40] sm:$0xff]  ;;  %v5062_v20 = vcombine.high %v490_v10, %v494_v12  ;;  %3306 = vmatprep.subr.bf16.mxu0 %v4934_v16  ;;  %v5061_v24 = vcombine.low %v490_v10, %v494_v12 }
  0x7b   :  { %v358_v18 = vld [vmem:[%s7279_s1 + $0xa60] sm:$0xff]  ;;  %3307 = vmatpush2.bf16.msra.mxu0 %v4933_v22 }
  0x7c   :  { %v482_v19 = vld [vmem:[%s7279_s1 + $0xe40] sm:$0xff]  ;;  %v4926_v25 = vcombine.high %v354_v17, %v358_v18  ;;  %3347 = vmatprep.subr.bf16.mxu1 %v5062_v20  ;;  %v4925_v33 = vcombine.low %v354_v17, %v358_v18 }
  0x7d   :  { %v486_v21 = vld [vmem:[%s7279_s1 + $0xe60] sm:$0xff]  ;;  %3348 = vmatpush2.bf16.msra.mxu1 %v5061_v24 }
  0x7e   :  { %v346_v26 = vld [vmem:[%s7279_s1 + $0xa00] sm:$0xff]  ;;  %v5054_v29 = vcombine.high %v482_v19, %v486_v21  ;;  %3308 = vmatprep.subr.bf16.mxu0 %v4926_v25  ;;  %v5053_v34 = vcombine.low %v482_v19, %v486_v21 }
  0x7f   :  { %v350_v27 = vld [vmem:[%s7279_s1 + $0xa20] sm:$0xff]  ;;  %3309 = vmatpush2.bf16.msra.mxu0 %v4925_v33 }
  0x80   :  { %v474_v28 = vld [vmem:[%s7279_s1 + $0xe00] sm:$0xff]  ;;  %v4918_v35 = vcombine.high %v346_v26, %v350_v27  ;;  %3349 = vmatprep.subr.bf16.mxu1 %v5054_v29  ;;  %v4917_v41 = vcombine.low %v346_v26, %v350_v27 }
  0x81   :  { %v478_v63 = vld [vmem:[%s7279_s1 + $0xe20] sm:$0xff]  ;;  %3350 = vmatpush2.bf16.msra.mxu1 %v5053_v34 }
  0x82   :  { %v5046_v38 = vcombine.high %v474_v28, %v478_v63  ;;  %3310 = vmatprep.subr.bf16.mxu0 %v4918_v35  ;;  %v5045_v42 = vcombine.low %v474_v28, %v478_v63 }
  0x83   :  { %3311 = vmatpush2.bf16.msra.mxu0 %v4917_v41 }
  0x84   :  { %3351 = vmatprep.subr.bf16.mxu1 %v5046_v38 }
  0x85   :  { %11 = vsyncpa [#allocation3], 0  ;;  %3352 = vmatpush2.bf16.msra.mxu1 %v5045_v42  ;;  %3362 = vmatprep.subr.bf16.mxu0 %v4656_v44  ;;  %v4783_v52 = vcombine.low %v211_v53, %v215_v39  ;;  %v4648_v54 = vcombine.high %v75_v45, %v79_v46  ;;  %v4776_v55 = vcombine.high %v203_v47, %v207_v49  ;;  %v67_v56 = vld [vmem:[%s7279_s1 + $0x148] sm:$0xff]  ;;  %vm4549_vm0 = vcmask 74752   ;;  %s5359_s28 = smov [#allocation2]  }
  0x86   :  { %3403 = vmatprep.subr.bf16.mxu1 %v4784_v48  ;;  %v71_v57 = vld [vmem:[%s7279_s1 + $0x168] sm:$0xff]  ;;  %3313 = vmatmul.mubr.bf16.vlgmr.msra.gmra.mxu0 %v5554_v32  ;;  %v4647_v60 = vcombine.low %v75_v45, %v79_v46  ;;  %v4775_v61 = vcombine.low %v203_v47, %v207_v49  ;;  %s4589_s29 = sshll.u32 %s5359_s28, 4  ;;  %vm4579_vm1 = vcmask 7168   ;;  %vm4581_vm2 = vcmask 9216   ;;  %s4590_s29 = int_to_ptr.vmem [resolvable:$true] %s4589_s29 }
  0x87   :  { %v195_v58 = vld [vmem:[%s7279_s1 + $0x548] sm:$0xff]  ;;  %3363 = vmatpush1.bf16.msra.mxu0 %v4655_v51  ;;  %v4640_v62 = vcombine.high %v67_v56, %v71_v57  ;;  %3394 = vmatprep.mubr.bf16.mxu0 %v5511_v9  ;;  %v4639_v5 = vcombine.low %v67_v56, %v71_v57  ;;  %s5336_s30 = scalar_lea.vmem %s4590_s29, 32  ;;  %p5341_p1 = scmp.lt.s32.totalorder %s4590_s29, %s4590_s29 }
  0x88   :  { %v199_v59 = vld [vmem:[%s7279_s1 + $0x568] sm:$0xff]  ;;  %3354 = vmatmul.mubr.bf16.vlgmr.msra.gmra.mxu1 %v5855_v50  ;;  %3364 = vmatprep.subr.bf16.mxu0 %v4648_v54  ;;  %p5337_p0 = scmp.ne.s32.totalorder %s4590_s29, %s5336_s30  ;;  %p5342_p2 = scmp.lt.s32.totalorder %s5336_s30, %s5336_s30 }
  0x89   :  { %3404 = vmatpush1.bf16.msra.mxu1 %v4783_v52  ;;  %v4768_v0 = vcombine.high %v195_v58, %v199_v59  ;;  %v59_v1 = vld [vmem:[%s7279_s1 + $0x108] sm:$0xff]  ;;  %3435 = vmatprep.mubr.bf16.mxu1 %v5522_v13  ;;  %v4767_v6 = vcombine.low %v195_v58, %v199_v59 }
  0x8a   :  { %3405 = vmatprep.subr.bf16.mxu1 %v4776_v55  ;;  %v63_v2 = vld [vmem:[%s7279_s1 + $0x128] sm:$0xff]  ;;  %p5343_p3 = por %p5342_p2, %p5341_p1 }
  0x8b   :  { %v187_v3 = vld [vmem:[%s7279_s1 + $0x508] sm:$0xff]  ;;  %3365 = vmatpush1.bf16.msra.mxu0 %v4647_v60  ;;  %v4632_v7 = vcombine.high %v59_v1, %v63_v2  ;;  %v4631_v15 = vcombine.low %v59_v1, %v63_v2 }
  0x8c   :  { %v191_v4 = vld [vmem:[%s7279_s1 + $0x528] sm:$0xff]  ;;  %3366 = vmatprep.subr.bf16.mxu0 %v4640_v62  ;;  %p5344_p4 = pnand %p5343_p3, %p5337_p0 }
  0x8d   :  { %3406 = vmatpush1.bf16.msra.mxu1 %v4775_v61  ;;  %v4760_v8 = vcombine.high %v187_v3, %v191_v4  ;;  %v51_v10 = vld [vmem:[%s7279_s1 + $0xc8] sm:$0xff]  ;;  %v4759_v16 = vcombine.low %v187_v3, %v191_v4 }
  0x8e   :  { %3407 = vmatprep.subr.bf16.mxu1 %v4768_v0  ;;  %v55_v11 = vld [vmem:[%s7279_s1 + $0xe8] sm:$0xff] }
  0x8f   :  { %v179_v12 = vld [vmem:[%s7279_s1 + $0x4c8] sm:$0xff]  ;;  %3367 = vmatpush1.bf16.msra.mxu0 %v4639_v5  ;;  %v4624_v17 = vcombine.high %v51_v10, %v55_v11  ;;  %v4623_v24 = vcombine.low %v51_v10, %v55_v11 }
  0x90   :  { %v183_v14 = vld [vmem:[%s7279_s1 + $0x4e8] sm:$0xff]  ;;  %3368 = vmatprep.subr.bf16.mxu0 %v4632_v7 }
  0x91   :  { %3408 = vmatpush1.bf16.msra.mxu1 %v4767_v6  ;;  %v4752_v18 = vcombine.high %v179_v12, %v183_v14  ;;  %v43_v19 = vld [vmem:[%s7279_s1 + $0x88] sm:$0xff]  ;;  %v4751_v25 = vcombine.low %v179_v12, %v183_v14 }
  0x92   :  { %3409 = vmatprep.subr.bf16.mxu1 %v4760_v8  ;;  %v47_v20 = vld [vmem:[%s7279_s1 + $0xa8] sm:$0xff] }
  0x93   :  { %v171_v21 = vld [vmem:[%s7279_s1 + $0x488] sm:$0xff]  ;;  %3369 = vmatpush1.bf16.msra.mxu0 %v4631_v15  ;;  %v4616_v26 = vcombine.high %v43_v19, %v47_v20  ;;  %v4615_v34 = vcombine.low %v43_v19, %v47_v20 }
  0x94   :  { %v175_v22 = vld [vmem:[%s7279_s1 + $0x4a8] sm:$0xff]  ;;  %3370 = vmatprep.subr.bf16.mxu0 %v4624_v17 }
  0x95   :  { %3410 = vmatpush1.bf16.msra.mxu1 %v4759_v16  ;;  %v4744_v27 = vcombine.high %v171_v21, %v175_v22  ;;  %v35_v28 = vld [vmem:[%s7279_s1 + $0x48] sm:$0xff]  ;;  %v4743_v35 = vcombine.low %v171_v21, %v175_v22 }
  0x96   :  { %3411 = vmatprep.subr.bf16.mxu1 %v4752_v18  ;;  %v39_v29 = vld [vmem:[%s7279_s1 + $0x68] sm:$0xff] }
  0x97   :  { %v163_v63 = vld [vmem:[%s7279_s1 + $0x448] sm:$0xff]  ;;  %3371 = vmatpush1.bf16.msra.mxu0 %v4623_v24  ;;  %v4608_v36 = vcombine.high %v35_v28, %v39_v29  ;;  %v4607_v42 = vcombine.low %v35_v28, %v39_v29 }
  0x98   :  { %v167_v33 = vld [vmem:[%s7279_s1 + $0x468] sm:$0xff]  ;;  %3372 = vmatprep.subr.bf16.mxu0 %v4616_v26 }
  0x99   :  { %3412 = vmatpush1.bf16.msra.mxu1 %v4751_v25  ;;  %v4736_v37 = vcombine.high %v163_v63, %v167_v33  ;;  %v27_v53 = vld [vmem:[%s7279_s1 + $0x8] sm:$0xff]  ;;  %v4735_v44 = vcombine.low %v163_v63, %v167_v33 }
  0x9a   :  { %3413 = vmatprep.subr.bf16.mxu1 %v4744_v27  ;;  %v31_v38 = vld [vmem:[%s7279_s1 + $0x28] sm:$0xff] }
  0x9b   :  { %v155_v39 = vld [vmem:[%s7279_s1 + $0x408] sm:$0xff]  ;;  %3373 = vmatpush1.bf16.msra.mxu0 %v4615_v34  ;;  %v4600_v45 = vcombine.high %v27_v53, %v31_v38  ;;  %v4599_v52 = vcombine.low %v27_v53, %v31_v38 }
  0x9c   :  { %v159_v41 = vld [vmem:[%s7279_s1 + $0x428] sm:$0xff]  ;;  %3374 = vmatprep.subr.bf16.mxu0 %v4608_v36 }
  0x9d   :  { %3414 = vmatpush1.bf16.msra.mxu1 %v4743_v35  ;;  %v4728_v46 = vcombine.high %v155_v39, %v159_v41  ;;  %v147_v47 = vld [vmem:[%s7279_s1 + $0x3c8] sm:$0xff]  ;;  %v4727_v54 = vcombine.low %v155_v39, %v159_v41 }
  0x9e   :  { %3415 = vmatprep.subr.bf16.mxu1 %v4736_v37  ;;  %v151_v48 = vld [vmem:[%s7279_s1 + $0x3e8] sm:$0xff] }
  0x9f   :  { %v275_v49 = vld [vmem:[%s7279_s1 + $0x7c8] sm:$0xff]  ;;  %3375 = vmatpush1.bf16.msra.mxu0 %v4607_v42  ;;  %v4720_v55 = vcombine.high %v147_v47, %v151_v48  ;;  %v4719_v61 = vcombine.low %v147_v47, %v151_v48 }
  0xa0   :  { %v279_v51 = vld [vmem:[%s7279_s1 + $0x7e8] sm:$0xff]  ;;  %3376 = vmatprep.subr.bf16.mxu0 %v4600_v45 }
  0xa1   :  { %3416 = vmatpush1.bf16.msra.mxu1 %v4735_v44  ;;  %v4848_v56 = vcombine.high %v275_v49, %v279_v51  ;;  %v139_v57 = vld [vmem:[%s7279_s1 + $0x388] sm:$0xff]  ;;  %v4847_v62 = vcombine.low %v275_v49, %v279_v51 }
  0xa2   :  { %3417 = vmatprep.subr.bf16.mxu1 %v4728_v46  ;;  %v143_v58 = vld [vmem:[%s7279_s1 + $0x3a8] sm:$0xff] }
  0xa3   :  { %v267_v59 = vld [vmem:[%s7279_s1 + $0x788] sm:$0xff]  ;;  %3377 = vmatpush1.bf16.msra.mxu0 %v4599_v52  ;;  %v4712_v0 = vcombine.high %v139_v57, %v143_v58  ;;  %v4711_v6 = vcombine.low %v139_v57, %v143_v58 }
  0xa4   :  { %v271_v60 = vld [vmem:[%s7279_s1 + $0x7a8] sm:$0xff]  ;;  %3378 = vmatprep.subr.bf16.mxu0 %v4720_v55 }
  0xa5   :  { %3418 = vmatpush1.bf16.msra.mxu1 %v4727_v54  ;;  %v4840_v1 = vcombine.high %v267_v59, %v271_v60  ;;  %v131_v2 = vld [vmem:[%s7279_s1 + $0x348] sm:$0xff]  ;;  %v4839_v7 = vcombine.low %v267_v59, %v271_v60 }
  0xa6   :  { %3419 = vmatprep.subr.bf16.mxu1 %v4848_v56  ;;  %v135_v3 = vld [vmem:[%s7279_s1 + $0x368] sm:$0xff] }
  0xa7   :  { %v259_v4 = vld [vmem:[%s7279_s1 + $0x748] sm:$0xff]  ;;  %3379 = vmatpush2.bf16.msra.mxu0 %v4719_v61  ;;  %v4704_v8 = vcombine.high %v131_v2, %v135_v3  ;;  %v4703_v16 = vcombine.low %v131_v2, %v135_v3 }
  0xa8   :  { %v263_v5 = vld [vmem:[%s7279_s1 + $0x768] sm:$0xff]  ;;  %3380 = vmatprep.subr.bf16.mxu0 %v4712_v0 }
  0xa9   :  { %3420 = vmatpush2.bf16.msra.mxu1 %v4847_v62  ;;  %v4832_v10 = vcombine.high %v259_v4, %v263_v5  ;;  %v123_v11 = vld [vmem:[%s7279_s1 + $0x308] sm:$0xff]  ;;  %v4831_v17 = vcombine.low %v259_v4, %v263_v5 }
  0xaa   :  { %3421 = vmatprep.subr.bf16.mxu1 %v4840_v1  ;;  %v127_v12 = vld [vmem:[%s7279_s1 + $0x328] sm:$0xff] }
  0xab   :  { %v251_v14 = vld [vmem:[%s7279_s1 + $0x708] sm:$0xff]  ;;  %3381 = vmatpush2.bf16.msra.mxu0 %v4711_v6  ;;  %v4696_v18 = vcombine.high %v123_v11, %v127_v12  ;;  %v4695_v25 = vcombine.low %v123_v11, %v127_v12 }
  0xac   :  { %v255_v15 = vld [vmem:[%s7279_s1 + $0x728] sm:$0xff]  ;;  %3382 = vmatprep.subr.bf16.mxu0 %v4704_v8 }
  0xad   :  { %3422 = vmatpush2.bf16.msra.mxu1 %v4839_v7  ;;  %v4824_v19 = vcombine.high %v251_v14, %v255_v15  ;;  %v115_v20 = vld [vmem:[%s7279_s1 + $0x2c8] sm:$0xff]  ;;  %v4823_v26 = vcombine.low %v251_v14, %v255_v15 }
  0xae   :  { %3423 = vmatprep.subr.bf16.mxu1 %v4832_v10  ;;  %v119_v21 = vld [vmem:[%s7279_s1 + $0x2e8] sm:$0xff] }
  0xaf   :  { %v243_v22 = vld [vmem:[%s7279_s1 + $0x6c8] sm:$0xff]  ;;  %3383 = vmatpush2.bf16.msra.mxu0 %v4703_v16  ;;  %v4688_v27 = vcombine.high %v115_v20, %v119_v21  ;;  %v4687_v35 = vcombine.low %v115_v20, %v119_v21 }
  0xb0   :  { %v247_v24 = vld [vmem:[%s7279_s1 + $0x6e8] sm:$0xff]  ;;  %3384 = vmatprep.subr.bf16.mxu0 %v4696_v18 }
  0xb1   :  { %3424 = vmatpush2.bf16.msra.mxu1 %v4831_v17  ;;  %v4816_v28 = vcombine.high %v243_v22, %v247_v24  ;;  %v107_v29 = vld [vmem:[%s7279_s1 + $0x288] sm:$0xff]  ;;  %v4815_v36 = vcombine.low %v243_v22, %v247_v24 }
  0xb2   :  { %3425 = vmatprep.subr.bf16.mxu1 %v4824_v19  ;;  %v111_v63 = vld [vmem:[%s7279_s1 + $0x2a8] sm:$0xff] }
  0xb3   :  { %v235_v33 = vld [vmem:[%s7279_s1 + $0x688] sm:$0xff]  ;;  %3385 = vmatpush2.bf16.msra.mxu0 %v4695_v25  ;;  %v4680_v37 = vcombine.high %v107_v29, %v111_v63  ;;  %v4679_v44 = vcombine.low %v107_v29, %v111_v63 }
  0xb4   :  { %v239_v34 = vld [vmem:[%s7279_s1 + $0x6a8] sm:$0xff]  ;;  %3386 = vmatprep.subr.bf16.mxu0 %v4688_v27 }
  0xb5   :  { %3426 = vmatpush2.bf16.msra.mxu1 %v4823_v26  ;;  %v4808_v53 = vcombine.high %v235_v33, %v239_v34  ;;  %v99_v38 = vld [vmem:[%s7279_s1 + $0x248] sm:$0xff]  ;;  %v4807_v45 = vcombine.low %v235_v33, %v239_v34 }
  0xb6   :  { %3427 = vmatprep.subr.bf16.mxu1 %v4816_v28  ;;  %v103_v39 = vld [vmem:[%s7279_s1 + $0x268] sm:$0xff] }
  0xb7   :  { %v227_v41 = vld [vmem:[%s7279_s1 + $0x648] sm:$0xff]  ;;  %3387 = vmatpush2.bf16.msra.mxu0 %v4687_v35  ;;  %v4672_v46 = vcombine.high %v99_v38, %v103_v39  ;;  %v4671_v54 = vcombine.low %v99_v38, %v103_v39 }
  0xb8   :  { %v231_v42 = vld [vmem:[%s7279_s1 + $0x668] sm:$0xff]  ;;  %3388 = vmatprep.subr.bf16.mxu0 %v4680_v37 }
  0xb9   :  { %3428 = vmatpush2.bf16.msra.mxu1 %v4815_v36  ;;  %v4800_v47 = vcombine.high %v227_v41, %v231_v42  ;;  %v91_v48 = vld [vmem:[%s7279_s1 + $0x208] sm:$0xff]  ;;  %v4799_v55 = vcombine.low %v227_v41, %v231_v42 }
  0xba   :  { %3429 = vmatprep.subr.bf16.mxu1 %v4808_v53  ;;  %v95_v49 = vld [vmem:[%s7279_s1 + $0x228] sm:$0xff] }
  0xbb   :  { %v219_v51 = vld [vmem:[%s7279_s1 + $0x608] sm:$0xff]  ;;  %3389 = vmatpush2.bf16.msra.mxu0 %v4679_v44  ;;  %v4664_v56 = vcombine.high %v91_v48, %v95_v49  ;;  %v4663_v62 = vcombine.low %v91_v48, %v95_v49 }
  0xbc   :  { %v223_v52 = vld [vmem:[%s7279_s1 + $0x628] sm:$0xff]  ;;  %3390 = vmatprep.subr.bf16.mxu0 %v4672_v46 }
  0xbd   :  { %3430 = vmatpush2.bf16.msra.mxu1 %v4807_v45  ;;  %v4792_v57 = vcombine.high %v219_v51, %v223_v52  ;;  %v339_v58 = vld [vmem:[%s7279_s1 + $0x9c8] sm:$0xff]  ;;  %v4791_v0 = vcombine.low %v219_v51, %v223_v52 }
  0xbe   :  { %3431 = vmatprep.subr.bf16.mxu1 %v4800_v47  ;;  %v343_v59 = vld [vmem:[%s7279_s1 + $0x9e8] sm:$0xff] }
  0xbf   :  { %v467_v60 = vld [vmem:[%s7279_s1 + $0xdc8] sm:$0xff]  ;;  %3391 = vmatpush2.bf16.msra.mxu0 %v4671_v54  ;;  %v4912_v1 = vcombine.high %v339_v58, %v343_v59  ;;  %v4911_v7 = vcombine.low %v339_v58, %v343_v59 }
  0xc0   :  { %v471_v61 = vld [vmem:[%s7279_s1 + $0xde8] sm:$0xff]  ;;  %3392 = vmatprep.subr.bf16.mxu0 %v4664_v56 }
  0xc1   :  { %3432 = vmatpush2.bf16.msra.mxu1 %v4799_v55  ;;  %v5040_v2 = vcombine.high %v467_v60, %v471_v61  ;;  %v331_v3 = vld [vmem:[%s7279_s1 + $0x988] sm:$0xff]  ;;  %v5039_v8 = vcombine.low %v467_v60, %v471_v61 }
  0xc2   :  { %3433 = vmatprep.subr.bf16.mxu1 %v4792_v57  ;;  %v335_v4 = vld [vmem:[%s7279_s1 + $0x9a8] sm:$0xff] }
  0xc3   :  { %v459_v5 = vld [vmem:[%s7279_s1 + $0xd88] sm:$0xff]  ;;  %3393 = vmatpush2.bf16.msra.mxu0 %v4663_v62  ;;  %v4904_v10 = vcombine.high %v331_v3, %v335_v4  ;;  %v4903_v17 = vcombine.low %v331_v3, %v335_v4 }
  0xc4   :  { %v463_v6 = vld [vmem:[%s7279_s1 + $0xda8] sm:$0xff]  ;;  %3444 = vmatprep.subr.bf16.mxu0 %v4912_v1 }
  0xc5   :  { %3434 = vmatpush2.bf16.msra.mxu1 %v4791_v0  ;;  %v5032_v11 = vcombine.high %v459_v5, %v463_v6  ;;  %v323_v12 = vld [vmem:[%s7279_s1 + $0x948] sm:$0xff]  ;;  %v5031_v18 = vcombine.low %v459_v5, %v463_v6 }
  0xc6   :  { %3485 = vmatprep.subr.bf16.mxu1 %v5040_v2  ;;  %v327_v14 = vld [vmem:[%s7279_s1 + $0x968] sm:$0xff]  ;;  %3395 = vmatmul.mubr.bf16.vlgmr.msra.gmra.mxu0 %v5632_v23 }
  0xc7   :  { %v451_v15 = vld [vmem:[%s7279_s1 + $0xd48] sm:$0xff]  ;;  %3445 = vmatpush1.bf16.msra.mxu0 %v4911_v7  ;;  %v4896_v19 = vcombine.high %v323_v12, %v327_v14  ;;  %3476 = vmatprep.mubr.bf16.mxu0 %v5647_v30  ;;  %v4895_v26 = vcombine.low %v323_v12, %v327_v14 }
  0xc8   :  { %v455_v16 = vld [vmem:[%s7279_s1 + $0xd68] sm:$0xff]  ;;  %3436 = vmatmul.mubr.bf16.vlgmr.msra.gmra.mxu1 %v5651_v31  ;;  %3446 = vmatprep.subr.bf16.mxu0 %v4904_v10 }
  0xc9   :  { %3486 = vmatpush1.bf16.msra.mxu1 %v5039_v8  ;;  %v5024_v20 = vcombine.high %v451_v15, %v455_v16  ;;  %v315_v21 = vld [vmem:[%s7279_s1 + $0x908] sm:$0xff]  ;;  %3517 = vmatprep.mubr.bf16.mxu1 %v5668_v40  ;;  %v5023_v27 = vcombine.low %v451_v15, %v455_v16 }
  0xca   :  { %3487 = vmatprep.subr.bf16.mxu1 %v5032_v11  ;;  %v319_v22 = vld [vmem:[%s7279_s1 + $0x928] sm:$0xff] }
  0xcb   :  { %v443_v24 = vld [vmem:[%s7279_s1 + $0xd08] sm:$0xff]  ;;  %3447 = vmatpush1.bf16.msra.mxu0 %v4903_v17  ;;  %v4888_v28 = vcombine.high %v315_v21, %v319_v22  ;;  %v4887_v36 = vcombine.low %v315_v21, %v319_v22 }
  0xcc   :  { %v447_v25 = vld [vmem:[%s7279_s1 + $0xd28] sm:$0xff]  ;;  %3448 = vmatprep.subr.bf16.mxu0 %v4896_v19 }
  0xcd   :  { %3488 = vmatpush1.bf16.msra.mxu1 %v5031_v18  ;;  %v5016_v29 = vcombine.high %v443_v24, %v447_v25  ;;  %v307_v63 = vld [vmem:[%s7279_s1 + $0x8c8] sm:$0xff]  ;;  %v5015_v37 = vcombine.low %v443_v24, %v447_v25 }
  0xce   :  { %3489 = vmatprep.subr.bf16.mxu1 %v5024_v20  ;;  %v311_v33 = vld [vmem:[%s7279_s1 + $0x8e8] sm:$0xff] }
  0xcf   :  { %v435_v34 = vld [vmem:[%s7279_s1 + $0xcc8] sm:$0xff]  ;;  %3449 = vmatpush1.bf16.msra.mxu0 %v4895_v26  ;;  %v4880_v53 = vcombine.high %v307_v63, %v311_v33  ;;  %v4879_v45 = vcombine.low %v307_v63, %v311_v33 }
  0xd0   :  { %v439_v35 = vld [vmem:[%s7279_s1 + $0xce8] sm:$0xff]  ;;  %3450 = vmatprep.subr.bf16.mxu0 %v4888_v28 }
  0xd1   :  { %3490 = vmatpush1.bf16.msra.mxu1 %v5023_v27  ;;  %v5008_v38 = vcombine.high %v435_v34, %v439_v35  ;;  %v299_v39 = vld [vmem:[%s7279_s1 + $0x888] sm:$0xff]  ;;  %v5007_v46 = vcombine.low %v435_v34, %v439_v35 }
  0xd2   :  { %3491 = vmatprep.subr.bf16.mxu1 %v5016_v29  ;;  %v303_v41 = vld [vmem:[%s7279_s1 + $0x8a8] sm:$0xff] }
  0xd3   :  { %v427_v42 = vld [vmem:[%s7279_s1 + $0xc88] sm:$0xff]  ;;  %3451 = vmatpush1.bf16.msra.mxu0 %v4887_v36  ;;  %v4872_v47 = vcombine.high %v299_v39, %v303_v41  ;;  %v4871_v55 = vcombine.low %v299_v39, %v303_v41 }
  0xd4   :  { %v431_v44 = vld [vmem:[%s7279_s1 + $0xca8] sm:$0xff]  ;;  %3452 = vmatprep.subr.bf16.mxu0 %v4880_v53 }
  0xd5   :  { %3492 = vmatpush1.bf16.msra.mxu1 %v5015_v37  ;;  %v5000_v48 = vcombine.high %v427_v42, %v431_v44  ;;  %v291_v49 = vld [vmem:[%s7279_s1 + $0x848] sm:$0xff]  ;;  %v4999_v56 = vcombine.low %v427_v42, %v431_v44 }
  0xd6   :  { %3493 = vmatprep.subr.bf16.mxu1 %v5008_v38  ;;  %v295_v51 = vld [vmem:[%s7279_s1 + $0x868] sm:$0xff] }
  0xd7   :  { %v419_v52 = vld [vmem:[%s7279_s1 + $0xc48] sm:$0xff]  ;;  %3453 = vmatpush1.bf16.msra.mxu0 %v4879_v45  ;;  %v4864_v57 = vcombine.high %v291_v49, %v295_v51  ;;  %v4863_v0 = vcombine.low %v291_v49, %v295_v51 }
  0xd8   :  { %v423_v54 = vld [vmem:[%s7279_s1 + $0xc68] sm:$0xff]  ;;  %3454 = vmatprep.subr.bf16.mxu0 %v4872_v47 }
  0xd9   :  { %3494 = vmatpush1.bf16.msra.mxu1 %v5007_v46  ;;  %v4992_v58 = vcombine.high %v419_v52, %v423_v54  ;;  %v283_v59 = vld [vmem:[%s7279_s1 + $0x808] sm:$0xff]  ;;  %v4991_v1 = vcombine.low %v419_v52, %v423_v54 }
  0xda   :  { %3495 = vmatprep.subr.bf16.mxu1 %v5000_v48  ;;  %v287_v60 = vld [vmem:[%s7279_s1 + $0x828] sm:$0xff] }
  0xdb   :  { %v411_v61 = vld [vmem:[%s7279_s1 + $0xc08] sm:$0xff]  ;;  %3455 = vmatpush1.bf16.msra.mxu0 %v4871_v55  ;;  %v4856_v2 = vcombine.high %v283_v59, %v287_v60  ;;  %v4855_v8 = vcombine.low %v283_v59, %v287_v60 }
  0xdc   :  { %v415_v62 = vld [vmem:[%s7279_s1 + $0xc28] sm:$0xff]  ;;  %3456 = vmatprep.subr.bf16.mxu0 %v4864_v57 }
  0xdd   :  { %3496 = vmatpush1.bf16.msra.mxu1 %v4999_v56  ;;  %v4984_v3 = vcombine.high %v411_v61, %v415_v62  ;;  %v403_v4 = vld [vmem:[%s7279_s1 + $0xbc8] sm:$0xff]  ;;  %v4983_v10 = vcombine.low %v411_v61, %v415_v62 }
  0xde   :  { %3497 = vmatprep.subr.bf16.mxu1 %v4992_v58  ;;  %v407_v5 = vld [vmem:[%s7279_s1 + $0xbe8] sm:$0xff] }
  0xdf   :  { %v531_v6 = vld [vmem:[%s7279_s1 + $0xfc8] sm:$0xff]  ;;  %3457 = vmatpush1.bf16.msra.mxu0 %v4863_v0  ;;  %v4976_v11 = vcombine.high %v403_v4, %v407_v5  ;;  %v4975_v18 = vcombine.low %v403_v4, %v407_v5 }
  0xe0   :  { %v535_v7 = vld [vmem:[%s7279_s1 + $0xfe8] sm:$0xff]  ;;  %3458 = vmatprep.subr.bf16.mxu0 %v4856_v2 }
  0xe1   :  { %3498 = vmatpush1.bf16.msra.mxu1 %v4991_v1  ;;  %v5104_v12 = vcombine.high %v531_v6, %v535_v7  ;;  %v395_v14 = vld [vmem:[%s7279_s1 + $0xb88] sm:$0xff]  ;;  %v5103_v19 = vcombine.low %v531_v6, %v535_v7 }
  0xe2   :  { %3499 = vmatprep.subr.bf16.mxu1 %v4984_v3  ;;  %v399_v15 = vld [vmem:[%s7279_s1 + $0xba8] sm:$0xff] }
  0xe3   :  { %v523_v16 = vld [vmem:[%s7279_s1 + $0xf88] sm:$0xff]  ;;  %3459 = vmatpush1.bf16.msra.mxu0 %v4855_v8  ;;  %v4968_v20 = vcombine.high %v395_v14, %v399_v15  ;;  %v4967_v27 = vcombine.low %v395_v14, %v399_v15  ;;  %v84_v15 = vld [vmem:[%s7279_s1 + $0x1d0] sm:$0xff] }
  0xe4   :  { %v527_v17 = vld [vmem:[%s7279_s1 + $0xfa8] sm:$0xff]  ;;  %3460 = vmatprep.subr.bf16.mxu0 %v4976_v11 }
  0xe5   :  { %3500 = vmatpush1.bf16.msra.mxu1 %v4983_v10  ;;  %v5096_v21 = vcombine.high %v523_v16, %v527_v17  ;;  %v387_v22 = vld [vmem:[%s7279_s1 + $0xb48] sm:$0xff]  ;;  %v5095_v28 = vcombine.low %v523_v16, %v527_v17  ;;  %v88_v16 = vld [vmem:[%s7279_s1 + $0x1f0] sm:$0xff] }
  0xe6   :  { %3501 = vmatprep.subr.bf16.mxu1 %v5104_v12  ;;  %v391_v24 = vld [vmem:[%s7279_s1 + $0xb68] sm:$0xff]  ;;  %v212_v17 = vld [vmem:[%s7279_s1 + $0x5d0] sm:$0xff] }
  0xe7   :  { %v515_v25 = vld [vmem:[%s7279_s1 + $0xf48] sm:$0xff]  ;;  %3461 = vmatpush2.bf16.msra.mxu0 %v4975_v18  ;;  %v4960_v29 = vcombine.high %v387_v22, %v391_v24  ;;  %v4959_v37 = vcombine.low %v387_v22, %v391_v24  ;;  %v216_v18 = vld [vmem:[%s7279_s1 + $0x5f0] sm:$0xff]  ;;  %v6241_v22 = vld [vmem:[%s7280_s2] sm:$0xff]  ;;  %v4658_v24 = vcombine.high %v84_v15, %v88_v16 }
  0xe8   :  { %v519_v26 = vld [vmem:[%s7279_s1 + $0xf68] sm:$0xff]  ;;  %3462 = vmatprep.subr.bf16.mxu0 %v4968_v20  ;;  %v542_v20 = vsub.s32 0, %v5461_v43 }
  0xe9   :  { %3502 = vmatpush2.bf16.msra.mxu1 %v5103_v19  ;;  %v5088_v63 = vcombine.high %v515_v25, %v519_v26  ;;  %v379_v33 = vld [vmem:[%s7279_s1 + $0xb08] sm:$0xff]  ;;  %v5087_v53 = vcombine.low %v515_v25, %v519_v26  ;;  %v4786_v25 = vcombine.high %v212_v17, %v216_v18  ;;  %v546_v26 = vsub.s32 1, %v5461_v43 }
  0xea   :  { %3503 = vmatprep.subr.bf16.mxu1 %v5096_v21  ;;  %v383_v34 = vld [vmem:[%s7279_s1 + $0xb28] sm:$0xff] }
  0xeb   :  { %v507_v35 = vld [vmem:[%s7279_s1 + $0xf08] sm:$0xff]  ;;  %3463 = vmatpush2.bf16.msra.mxu0 %v4967_v27  ;;  %v4952_v38 = vcombine.high %v379_v33, %v383_v34  ;;  %v4951_v46 = vcombine.low %v379_v33, %v383_v34  ;;  %v76_v27 = vld [vmem:[%s7279_s1 + $0x190] sm:$0xff]  ;;  %v543_v33 = vrot.slane %v6241_v22, %v542_v20  ;;  %v4657_v34 = vcombine.low %v84_v15, %v88_v16 }
  0xec   :  { %v511_v36 = vld [vmem:[%s7279_s1 + $0xf28] sm:$0xff]  ;;  %3464 = vmatprep.subr.bf16.mxu0 %v4960_v29  ;;  %v204_v29 = vld [vmem:[%s7279_s1 + $0x590] sm:$0xff] }
  0xed   :  { %3504 = vmatpush2.bf16.msra.mxu1 %v5095_v28  ;;  %v5080_v39 = vcombine.high %v507_v35, %v511_v36  ;;  %v371_v41 = vld [vmem:[%s7279_s1 + $0xac8] sm:$0xff]  ;;  %v5079_v47 = vcombine.low %v507_v35, %v511_v36  ;;  %v80_v28 = vld [vmem:[%s7279_s1 + $0x1b0] sm:$0xff]  ;;  %v4785_v35 = vcombine.low %v212_v17, %v216_v18 }
  0xee   :  { %3505 = vmatprep.subr.bf16.mxu1 %v5088_v63  ;;  %v375_v42 = vld [vmem:[%s7279_s1 + $0xae8] sm:$0xff]  ;;  %v208_v63 = vld [vmem:[%s7279_s1 + $0x5b0] sm:$0xff]  ;;  %v4650_v36 = vcombine.high %v76_v27, %v80_v28 }
  0xef   :  { %v499_v44 = vld [vmem:[%s7279_s1 + $0xec8] sm:$0xff]  ;;  %3465 = vmatpush2.bf16.msra.mxu0 %v4959_v37  ;;  %v4944_v48 = vcombine.high %v371_v41, %v375_v42  ;;  %v4943_v56 = vcombine.low %v371_v41, %v375_v42  ;;  %v547_v37 = vrot.slane %v6241_v22, %v546_v26  ;;  %v196_v42 = vld [vmem:[%s7279_s1 + $0x550] sm:$0xff] }
  0xf0   :  { %v503_v45 = vld [vmem:[%s7279_s1 + $0xee8] sm:$0xff]  ;;  %3466 = vmatprep.subr.bf16.mxu0 %v4952_v38  ;;  %v68_v38 = vld [vmem:[%s7279_s1 + $0x150] sm:$0xff] }
  0xf1   :  { %3506 = vmatpush2.bf16.msra.mxu1 %v5087_v53  ;;  %v5072_v49 = vcombine.high %v499_v44, %v503_v45  ;;  %v363_v51 = vld [vmem:[%s7279_s1 + $0xa88] sm:$0xff]  ;;  %v5071_v57 = vcombine.low %v499_v44, %v503_v45  ;;  %v4778_v53 = vcombine.high %v204_v29, %v208_v63  ;;  %v200_v44 = vld [vmem:[%s7279_s1 + $0x570] sm:$0xff] }
  0xf2   :  { %3507 = vmatprep.subr.bf16.mxu1 %v5080_v39  ;;  %v367_v52 = vld [vmem:[%s7279_s1 + $0xaa8] sm:$0xff]  ;;  %v72_v39 = vld [vmem:[%s7279_s1 + $0x170] sm:$0xff] }
  0xf3   :  { %v491_v54 = vld [vmem:[%s7279_s1 + $0xe88] sm:$0xff]  ;;  %3467 = vmatpush2.bf16.msra.mxu0 %v4951_v46  ;;  %v4936_v58 = vcombine.high %v363_v51, %v367_v52  ;;  %v4935_v1 = vcombine.low %v363_v51, %v367_v52  ;;  %v4642_v51 = vcombine.high %v68_v38, %v72_v39  ;;  %v44_v17 = vld [vmem:[%s7279_s1 + $0x90] sm:$0xff] }
  0xf4   :  { %v495_v55 = vld [vmem:[%s7279_s1 + $0xea8] sm:$0xff]  ;;  %3468 = vmatprep.subr.bf16.mxu0 %v4944_v48  ;;  %v48_v18 = vld [vmem:[%s7279_s1 + $0xb0] sm:$0xff] }
  0xf5   :  { %3508 = vmatpush2.bf16.msra.mxu1 %v5079_v47  ;;  %v5064_v59 = vcombine.high %v491_v54, %v495_v55  ;;  %v355_v60 = vld [vmem:[%s7279_s1 + $0xa48] sm:$0xff]  ;;  %v5063_v2 = vcombine.low %v491_v54, %v495_v55  ;;  %v4649_v47 = vcombine.low %v76_v27, %v80_v28  ;;  %v176_v20 = vld [vmem:[%s7279_s1 + $0x4b0] sm:$0xff] }
  0xf6   :  { %3509 = vmatprep.subr.bf16.mxu1 %v5072_v49  ;;  %v359_v61 = vld [vmem:[%s7279_s1 + $0xa68] sm:$0xff]  ;;  %v4777_v49 = vcombine.low %v204_v29, %v208_v63  ;;  %v36_v27 = vld [vmem:[%s7279_s1 + $0x50] sm:$0xff] }
  0xf7   :  { %v483_v62 = vld [vmem:[%s7279_s1 + $0xe48] sm:$0xff]  ;;  %3469 = vmatpush2.bf16.msra.mxu0 %v4943_v56  ;;  %v4928_v3 = vcombine.high %v355_v60, %v359_v61  ;;  %v4927_v10 = vcombine.low %v355_v60, %v359_v61  ;;  %v4770_v56 = vcombine.high %v196_v42, %v200_v44  ;;  %v188_v60 = vld [vmem:[%s7279_s1 + $0x510] sm:$0xff] }
  0xf8   :  { %v487_v0 = vld [vmem:[%s7279_s1 + $0xe68] sm:$0xff]  ;;  %3470 = vmatprep.subr.bf16.mxu0 %v4936_v58  ;;  %v64_v58 = vld [vmem:[%s7279_s1 + $0x130] sm:$0xff] }
  0xf9   :  { %3510 = vmatpush2.bf16.msra.mxu1 %v5071_v57  ;;  %v5056_v4 = vcombine.high %v483_v62, %v487_v0  ;;  %v347_v5 = vld [vmem:[%s7279_s1 + $0xa08] sm:$0xff]  ;;  %v5055_v11 = vcombine.low %v483_v62, %v487_v0  ;;  %v60_v57 = vld [vmem:[%s7279_s1 + $0x110] sm:$0xff] }
  0xfa   :  { %3511 = vmatprep.subr.bf16.mxu1 %v5064_v59  ;;  %v351_v6 = vld [vmem:[%s7279_s1 + $0xa28] sm:$0xff]  ;;  %v192_v61 = vld [vmem:[%s7279_s1 + $0x530] sm:$0xff] }
  0xfb   :  { %v475_v7 = vld [vmem:[%s7279_s1 + $0xe08] sm:$0xff]  ;;  %3471 = vmatpush2.bf16.msra.mxu0 %v4935_v1  ;;  %v4920_v12 = vcombine.high %v347_v5, %v351_v6  ;;  %v4919_v19 = vcombine.low %v347_v5, %v351_v6  ;;  %v4641_v1 = vcombine.low %v68_v38, %v72_v39  ;;  %v4762_v6 = vcombine.high %v188_v60, %v192_v61  ;;  %v40_v28 = vld [vmem:[%s7279_s1 + $0x70] sm:$0xff] }
  0xfc   :  { %v479_v8 = vld [vmem:[%s7279_s1 + $0xe28] sm:$0xff]  ;;  %3472 = vmatprep.subr.bf16.mxu0 %v4928_v3  ;;  %v4769_v3 = vcombine.low %v196_v42, %v200_v44  ;;  %v164_v29 = vld [vmem:[%s7279_s1 + $0x450] sm:$0xff] }
  0xfd   :  { %3512 = vmatpush2.bf16.msra.mxu1 %v5063_v2  ;;  %v5048_v14 = vcombine.high %v475_v7, %v479_v8  ;;  %v5047_v21 = vcombine.low %v475_v7, %v479_v8  ;;  %v52_v7 = vld [vmem:[%s7279_s1 + $0xd0] sm:$0xff] }
  0xfe   :  { %3513 = vmatprep.subr.bf16.mxu1 %v5056_v4  ;;  %v4634_v4 = vcombine.high %v60_v57, %v64_v58  ;;  %v56_v8 = vld [vmem:[%s7279_s1 + $0xf0] sm:$0xff] }
  0xff   :  { %3473 = vmatpush2.bf16.msra.mxu0 %v4927_v10  ;;  %v180_v10 = vld [vmem:[%s7279_s1 + $0x4d0] sm:$0xff]  ;;  %v4626_v15 = vcombine.high %v52_v7, %v56_v8 }
 0x100   :  { %3474 = vmatprep.subr.bf16.mxu0 %v4920_v12  ;;  %v4633_v12 = vcombine.low %v60_v57, %v64_v58  ;;  %v168_v63 = vld [vmem:[%s7279_s1 + $0x470] sm:$0xff] }
 0x101   :  { %3514 = vmatpush2.bf16.msra.mxu1 %v5055_v11  ;;  %v184_v11 = vld [vmem:[%s7279_s1 + $0x4f0] sm:$0xff]  ;;  %v4737_v42 = vcombine.low %v164_v29, %v168_v63 }
 0x102   :  { %3515 = vmatprep.subr.bf16.mxu1 %v5048_v14  ;;  %v4761_v14 = vcombine.low %v188_v60, %v192_v61  ;;  %v4754_v16 = vcombine.high %v180_v10, %v184_v11  ;;  %v156_v38 = vld [vmem:[%s7279_s1 + $0x410] sm:$0xff] }
 0x103   :  { %3475 = vmatpush2.bf16.msra.mxu0 %v4919_v19  ;;  %v172_v19 = vld [vmem:[%s7279_s1 + $0x490] sm:$0xff] }
 0x104   :  { %3526 = vmatprep.subr.bf16.mxu0 %v4658_v24  ;;  %v4753_v24 = vcombine.low %v180_v10, %v184_v11  ;;  %v4746_v26 = vcombine.high %v172_v19, %v176_v20  ;;  %v160_v39 = vld [vmem:[%s7279_s1 + $0x430] sm:$0xff] }
 0x105   :  { %3516 = vmatpush2.bf16.msra.mxu1 %v5047_v21  ;;  %v4625_v21 = vcombine.low %v52_v7, %v56_v8  ;;  %v140_v57 = vld [vmem:[%s7279_s1 + $0x390] sm:$0xff] }
 0x106   :  { %3567 = vmatprep.subr.bf16.mxu1 %v4786_v25  ;;  %v3232_v41 = vpop.f32.mrf.mxu0  ;;  %3477 = vmatmul.mubr.bf16.vlgmr.msra.gmra.mxu0 %v5554_v32  ;;  %v4618_v25 = vcombine.high %v44_v17, %v48_v18  ;;  %v144_v58 = vld [vmem:[%s7279_s1 + $0x3b0] sm:$0xff] }
 0x107   :  { %v3233_v45 = vadd.f32 %v3232_v41, %v543_v33  ;;  %3527 = vmatpush1.bf16.msra.mxu0 %v4657_v34  ;;  %3558 = vmatprep.mubr.bf16.mxu0 %v5511_v9  ;;  %v4617_v33 = vcombine.low %v44_v17, %v48_v18  ;;  %v4745_v34 = vcombine.low %v172_v19, %v176_v20  ;;  %v272_v60 = vld [vmem:[%s7279_s1 + $0x7b0] sm:$0xff] }
 0x108   :  { %v3273_v46 = vpop.f32.mrf.mxu1  ;;  %3518 = vmatmul.mubr.bf16.vlgmr.msra.gmra.mxu1 %v5855_v50  ;;  %v3234_v48 = vpop.f32.mrf.mxu0  ;;  %3528 = vmatprep.subr.bf16.mxu0 %v4650_v36  ;;  %v4738_v36 = vcombine.high %v164_v29, %v168_v63  ;;  %v4609_v41 = vcombine.low %v36_v27, %v40_v28  ;;  %v4713_v7 = vcombine.low %v140_v57, %v144_v58 }
 0x109   :  { %3568 = vmatpush1.bf16.msra.mxu1 %v4785_v35  ;;  %v6272_v52 = vadd.f32 %v3273_v46, %v3233_v45  ;;  %v3235_v54 = vadd.f32 %v3234_v48, %v547_v37  ;;  %3599 = vmatprep.mubr.bf16.mxu1 %v5522_v13  ;;  %v4610_v35 = vcombine.high %v36_v27, %v40_v28  ;;  %v28_v37 = vld [vmem:[%s7279_s1 + $0x10] sm:$0xff] }
 0x10a   :  { %v3275_v55 = vpop.f32.mrf.mxu1  ;;  %3569 = vmatprep.subr.bf16.mxu1 %v4778_v53  ;;  %v3236_v59 = vpop.f32.mrf.mxu0  ;;  %v32_v53 = vld [vmem:[%s7279_s1 + $0x30] sm:$0xff]  ;;  %v4730_v45 = vcombine.high %v156_v38, %v160_v39 }
 0x10b   :  { %v6288_v62 = vadd.f32 %v3275_v55, %v3235_v54  ;;  %3529 = vmatpush1.bf16.msra.mxu0 %v4649_v47  ;;  %v4602_v44 = vcombine.high %v28_v37, %v32_v53  ;;  %v148_v46 = vld [vmem:[%s7279_s1 + $0x3d0] sm:$0xff]  ;;  %v4729_v54 = vcombine.low %v156_v38, %v160_v39 }
 0x10c   :  { %v3277_v0 = vpop.f32.mrf.mxu1  ;;  %v3237_v2 = vpop.f32.mrf.mxu0  ;;  %3530 = vmatprep.subr.bf16.mxu0 %v4642_v51  ;;  %v152_v47 = vld [vmem:[%s7279_s1 + $0x3f0] sm:$0xff]  ;;  %v4601_v51 = vcombine.low %v28_v37, %v32_v53 }
 0x10d   :  { %3570 = vmatpush1.bf16.msra.mxu1 %v4777_v49  ;;  %v276_v48 = vld [vmem:[%s7279_s1 + $0x7d0] sm:$0xff]  ;;  %v4722_v55 = vcombine.high %v148_v46, %v152_v47  ;;  %v4721_v61 = vcombine.low %v148_v46, %v152_v47 }
 0x10e   :  { %v3278_v5 = vpop.f32.mrf.mxu1  ;;  %3571 = vmatprep.subr.bf16.mxu1 %v4770_v56  ;;  %v280_v49 = vld [vmem:[%s7279_s1 + $0x7f0] sm:$0xff] }
 0x10f   :  { %3531 = vmatpush1.bf16.msra.mxu0 %v4641_v1  ;;  %v4850_v56 = vcombine.high %v276_v48, %v280_v49  ;;  %v268_v59 = vld [vmem:[%s7279_s1 + $0x790] sm:$0xff]  ;;  %v4849_v0 = vcombine.low %v276_v48, %v280_v49  ;;  %v4714_v1 = vcombine.high %v140_v57, %v144_v58 }
 0x110   :  { %3532 = vmatprep.subr.bf16.mxu0 %v4634_v4  ;;  %v4842_v2 = vcombine.high %v268_v59, %v272_v60  ;;  %v136_v4 = vld [vmem:[%s7279_s1 + $0x370] sm:$0xff]  ;;  %v4841_v8 = vcombine.low %v268_v59, %v272_v60 }
 0x111   :  { %3572 = vmatpush1.bf16.msra.mxu1 %v4769_v3  ;;  %v132_v3 = vld [vmem:[%s7279_s1 + $0x350] sm:$0xff] }
 0x112   :  { %3573 = vmatprep.subr.bf16.mxu1 %v4762_v6  ;;  %v260_v5 = vld [vmem:[%s7279_s1 + $0x750] sm:$0xff]  ;;  %v4706_v10 = vcombine.high %v132_v3, %v136_v4  ;;  %v4705_v17 = vcombine.low %v132_v3, %v136_v4 }
 0x113   :  { %3533 = vmatpush1.bf16.msra.mxu0 %v4633_v12  ;;  %v264_v6 = vld [vmem:[%s7279_s1 + $0x770] sm:$0xff] }
 0x114   :  { %3534 = vmatprep.subr.bf16.mxu0 %v4626_v15  ;;  %v4834_v11 = vcombine.high %v260_v5, %v264_v6  ;;  %v124_v12 = vld [vmem:[%s7279_s1 + $0x310] sm:$0xff]  ;;  %v4833_v18 = vcombine.low %v260_v5, %v264_v6 }
 0x115   :  { %3574 = vmatpush1.bf16.msra.mxu1 %v4761_v14  ;;  %v128_v14 = vld [vmem:[%s7279_s1 + $0x330] sm:$0xff] }
 0x116   :  { %3575 = vmatprep.subr.bf16.mxu1 %v4754_v16  ;;  %v252_v15 = vld [vmem:[%s7279_s1 + $0x710] sm:$0xff]  ;;  %v4698_v19 = vcombine.high %v124_v12, %v128_v14  ;;  %v4697_v27 = vcombine.low %v124_v12, %v128_v14 }
 0x117   :  { %3535 = vmatpush1.bf16.msra.mxu0 %v4625_v21  ;;  %v256_v16 = vld [vmem:[%s7279_s1 + $0x730] sm:$0xff] }
 0x118   :  { %3536 = vmatprep.subr.bf16.mxu0 %v4618_v25  ;;  %v4826_v20 = vcombine.high %v252_v15, %v256_v16  ;;  %v116_v21 = vld [vmem:[%s7279_s1 + $0x2d0] sm:$0xff]  ;;  %v4825_v28 = vcombine.low %v252_v15, %v256_v16 }
 0x119   :  { %3576 = vmatpush1.bf16.msra.mxu1 %v4753_v24  ;;  %v120_v24 = vld [vmem:[%s7279_s1 + $0x2f0] sm:$0xff] }
 0x11a   :  { %3577 = vmatprep.subr.bf16.mxu1 %v4746_v26  ;;  %v244_v25 = vld [vmem:[%s7279_s1 + $0x6d0] sm:$0xff]  ;;  %v4690_v29 = vcombine.high %v116_v21, %v120_v24  ;;  %v4689_v37 = vcombine.low %v116_v21, %v120_v24 }
 0x11b   :  { %3537 = vmatpush1.bf16.msra.mxu0 %v4617_v33  ;;  %v248_v26 = vld [vmem:[%s7279_s1 + $0x6f0] sm:$0xff] }
 0x11c   :  { %3538 = vmatprep.subr.bf16.mxu0 %v4610_v35  ;;  %v4818_v63 = vcombine.high %v244_v25, %v248_v26  ;;  %v108_v33 = vld [vmem:[%s7279_s1 + $0x290] sm:$0xff]  ;;  %v4817_v53 = vcombine.low %v244_v25, %v248_v26 }
 0x11d   :  { %3578 = vmatpush1.bf16.msra.mxu1 %v4745_v34  ;;  %v112_v34 = vld [vmem:[%s7279_s1 + $0x2b0] sm:$0xff] }
 0x11e   :  { %3579 = vmatprep.subr.bf16.mxu1 %v4738_v36  ;;  %v236_v35 = vld [vmem:[%s7279_s1 + $0x690] sm:$0xff]  ;;  %v4682_v38 = vcombine.high %v108_v33, %v112_v34  ;;  %v4681_v46 = vcombine.low %v108_v33, %v112_v34 }
 0x11f   :  { %3539 = vmatpush1.bf16.msra.mxu0 %v4609_v41  ;;  %v240_v36 = vld [vmem:[%s7279_s1 + $0x6b0] sm:$0xff] }
 0x120   :  { %3540 = vmatprep.subr.bf16.mxu0 %v4602_v44  ;;  %v4810_v39 = vcombine.high %v236_v35, %v240_v36  ;;  %v100_v41 = vld [vmem:[%s7279_s1 + $0x250] sm:$0xff]  ;;  %v4809_v47 = vcombine.low %v236_v35, %v240_v36 }
 0x121   :  { %3580 = vmatpush1.bf16.msra.mxu1 %v4737_v42  ;;  %v104_v42 = vld [vmem:[%s7279_s1 + $0x270] sm:$0xff] }
 0x122   :  { %3581 = vmatprep.subr.bf16.mxu1 %v4730_v45  ;;  %v228_v44 = vld [vmem:[%s7279_s1 + $0x650] sm:$0xff]  ;;  %v4674_v48 = vcombine.high %v100_v41, %v104_v42  ;;  %v4673_v57 = vcombine.low %v100_v41, %v104_v42 }
 0x123   :  { %3541 = vmatpush1.bf16.msra.mxu0 %v4601_v51  ;;  %v232_v45 = vld [vmem:[%s7279_s1 + $0x670] sm:$0xff] }
 0x124   :  { %3542 = vmatprep.subr.bf16.mxu0 %v4722_v55  ;;  %v4802_v49 = vcombine.high %v228_v44, %v232_v45  ;;  %v92_v51 = vld [vmem:[%s7279_s1 + $0x210] sm:$0xff]  ;;  %v4801_v58 = vcombine.low %v228_v44, %v232_v45 }
 0x125   :  { %3582 = vmatpush1.bf16.msra.mxu1 %v4729_v54  ;;  %v96_v54 = vld [vmem:[%s7279_s1 + $0x230] sm:$0xff] }
 0x126   :  { %3583 = vmatprep.subr.bf16.mxu1 %v4850_v56  ;;  %v220_v55 = vld [vmem:[%s7279_s1 + $0x610] sm:$0xff]  ;;  %v4666_v59 = vcombine.high %v92_v51, %v96_v54  ;;  %v4665_v3 = vcombine.low %v92_v51, %v96_v54 }
 0x127   :  { %3543 = vmatpush2.bf16.msra.mxu0 %v4721_v61  ;;  %v224_v56 = vld [vmem:[%s7279_s1 + $0x630] sm:$0xff] }
 0x128   :  { %3544 = vmatprep.subr.bf16.mxu0 %v4714_v1  ;;  %v4794_v60 = vcombine.high %v220_v55, %v224_v56  ;;  %v340_v61 = vld [vmem:[%s7279_s1 + $0x9d0] sm:$0xff]  ;;  %v4793_v4 = vcombine.low %v220_v55, %v224_v56 }
 0x129   :  { %3584 = vmatpush2.bf16.msra.mxu1 %v4849_v0  ;;  %v344_v0 = vld [vmem:[%s7279_s1 + $0x9f0] sm:$0xff] }
 0x12a   :  { %3585 = vmatprep.subr.bf16.mxu1 %v4842_v2  ;;  %v468_v1 = vld [vmem:[%s7279_s1 + $0xdd0] sm:$0xff]  ;;  %v4914_v5 = vcombine.high %v340_v61, %v344_v0  ;;  %v4913_v12 = vcombine.low %v340_v61, %v344_v0 }
 0x12b   :  { %3545 = vmatpush2.bf16.msra.mxu0 %v4713_v7  ;;  %v472_v2 = vld [vmem:[%s7279_s1 + $0xdf0] sm:$0xff] }
 0x12c   :  { %3546 = vmatprep.subr.bf16.mxu0 %v4706_v10  ;;  %v5042_v6 = vcombine.high %v468_v1, %v472_v2  ;;  %v332_v7 = vld [vmem:[%s7279_s1 + $0x990] sm:$0xff]  ;;  %v5041_v14 = vcombine.low %v468_v1, %v472_v2 }
 0x12d   :  { %3586 = vmatpush2.bf16.msra.mxu1 %v4841_v8  ;;  %v336_v8 = vld [vmem:[%s7279_s1 + $0x9b0] sm:$0xff] }
 0x12e   :  { %3587 = vmatprep.subr.bf16.mxu1 %v4834_v11  ;;  %v460_v10 = vld [vmem:[%s7279_s1 + $0xd90] sm:$0xff]  ;;  %v4906_v15 = vcombine.high %v332_v7, %v336_v8  ;;  %v4905_v26 = vcombine.low %v332_v7, %v336_v8 }
 0x12f   :  { %3547 = vmatpush2.bf16.msra.mxu0 %v4705_v17  ;;  %v464_v11 = vld [vmem:[%s7279_s1 + $0xdb0] sm:$0xff] }
 0x130   :  { %3548 = vmatprep.subr.bf16.mxu0 %v4698_v19  ;;  %v5034_v16 = vcombine.high %v460_v10, %v464_v11  ;;  %v324_v17 = vld [vmem:[%s7279_s1 + $0x950] sm:$0xff] }
 0x131   :  { %3588 = vmatpush2.bf16.msra.mxu1 %v4833_v18  ;;  %v328_v18 = vld [vmem:[%s7279_s1 + $0x970] sm:$0xff] }
 0x132   :  { %3589 = vmatprep.subr.bf16.mxu1 %v4826_v20  ;;  %v452_v20 = vld [vmem:[%s7279_s1 + $0xd50] sm:$0xff]  ;;  %v4897_v41 = vcombine.low %v324_v17, %v328_v18 }
 0x133   :  { %3549 = vmatpush2.bf16.msra.mxu0 %v4697_v27  ;;  %v456_v21 = vld [vmem:[%s7279_s1 + $0xd70] sm:$0xff] }
 0x134   :  { %3550 = vmatprep.subr.bf16.mxu0 %v4690_v29  ;;  %v4898_v29 = vcombine.high %v324_v17, %v328_v18  ;;  %v5026_v35 = vcombine.high %v452_v20, %v456_v21  ;;  %v320_v36 = vld [vmem:[%s7279_s1 + $0x930] sm:$0xff]  ;;  %v5025_v44 = vcombine.low %v452_v20, %v456_v21 }
 0x135   :  { %3590 = vmatpush2.bf16.msra.mxu1 %v4825_v28  ;;  %v5033_v28 = vcombine.low %v460_v10, %v464_v11  ;;  %v436_v51 = vld [vmem:[%s7279_s1 + $0xcd0] sm:$0xff] }
 0x136   :  { %3591 = vmatprep.subr.bf16.mxu1 %v4818_v63  ;;  %v440_v54 = vld [vmem:[%s7279_s1 + $0xcf0] sm:$0xff] }
 0x137   :  { %3551 = vmatpush2.bf16.msra.mxu0 %v4689_v37  ;;  %v428_v61 = vld [vmem:[%s7279_s1 + $0xc90] sm:$0xff]  ;;  %v5009_v2 = vcombine.low %v436_v51, %v440_v54 }
 0x138   :  { %3552 = vmatprep.subr.bf16.mxu0 %v4682_v38  ;;  %v432_v0 = vld [vmem:[%s7279_s1 + $0xcb0] sm:$0xff] }
 0x139   :  { %3592 = vmatpush2.bf16.msra.mxu1 %v4817_v53  ;;  %v444_v53 = vld [vmem:[%s7279_s1 + $0xd10] sm:$0xff]  ;;  %v5001_v11 = vcombine.low %v428_v61, %v432_v0 }
 0x13a   :  { %3593 = vmatprep.subr.bf16.mxu1 %v4810_v39  ;;  %v420_v7 = vld [vmem:[%s7279_s1 + $0xc50] sm:$0xff] }
 0x13b   :  { %3553 = vmatpush2.bf16.msra.mxu0 %v4681_v46  ;;  %v424_v8 = vld [vmem:[%s7279_s1 + $0xc70] sm:$0xff] }
 0x13c   :  { %3554 = vmatprep.subr.bf16.mxu0 %v4674_v48  ;;  %v308_v48 = vld [vmem:[%s7279_s1 + $0x8d0] sm:$0xff]  ;;  %v4993_v20 = vcombine.low %v420_v7, %v424_v8 }
 0x13d   :  { %3594 = vmatpush2.bf16.msra.mxu1 %v4809_v47  ;;  %v412_v17 = vld [vmem:[%s7279_s1 + $0xc10] sm:$0xff] }
 0x13e   :  { %3595 = vmatprep.subr.bf16.mxu1 %v4802_v49  ;;  %v312_v49 = vld [vmem:[%s7279_s1 + $0x8f0] sm:$0xff] }
 0x13f   :  { %3555 = vmatpush2.bf16.msra.mxu0 %v4673_v57  ;;  %v4882_v57 = vcombine.high %v308_v48, %v312_v49  ;;  %v4881_v1 = vcombine.low %v308_v48, %v312_v49  ;;  %v416_v18 = vld [vmem:[%s7279_s1 + $0xc30] sm:$0xff] }
 0x140   :  { %3556 = vmatprep.subr.bf16.mxu0 %v4666_v59  ;;  %v300_v59 = vld [vmem:[%s7279_s1 + $0x890] sm:$0xff] }
 0x141   :  { %3596 = vmatpush2.bf16.msra.mxu1 %v4801_v58  ;;  %v5010_v58 = vcombine.high %v436_v51, %v440_v54 }
 0x142   :  { %3597 = vmatprep.subr.bf16.mxu1 %v4794_v60  ;;  %v304_v60 = vld [vmem:[%s7279_s1 + $0x8b0] sm:$0xff] }
 0x143   :  { %3557 = vmatpush2.bf16.msra.mxu0 %v4665_v3  ;;  %v4874_v3 = vcombine.high %v300_v59, %v304_v60  ;;  %v4873_v10 = vcombine.low %v300_v59, %v304_v60 }
 0x144   :  { %3608 = vmatprep.subr.bf16.mxu0 %v4914_v5  ;;  %v292_v5 = vld [vmem:[%s7279_s1 + $0x850] sm:$0xff] }
 0x145   :  { %3598 = vmatpush2.bf16.msra.mxu1 %v4793_v4  ;;  %v5002_v4 = vcombine.high %v428_v61, %v432_v0 }
 0x146   :  { %3649 = vmatprep.subr.bf16.mxu1 %v5042_v6  ;;  %v3314_v19 = vpop.f32.mrf.mxu0  ;;  %3559 = vmatmul.mubr.bf16.vlgmr.msra.gmra.mxu0 %v5632_v23  ;;  %v296_v6 = vld [vmem:[%s7279_s1 + $0x870] sm:$0xff] }
 0x147   :  { %v3315_v24 = vadd.f32 %v3314_v19, %v6272_v52  ;;  %3609 = vmatpush1.bf16.msra.mxu0 %v4913_v12  ;;  %v316_v52 = vld [vmem:[%s7279_s1 + $0x910] sm:$0xff]  ;;  %3640 = vmatprep.mubr.bf16.mxu0 %v5647_v30  ;;  %v4866_v12 = vcombine.high %v292_v5, %v296_v6  ;;  %v4865_v19 = vcombine.low %v292_v5, %v296_v6 }
 0x148   :  { %v3355_v25 = vpop.f32.mrf.mxu1  ;;  %3600 = vmatmul.mubr.bf16.vlgmr.msra.gmra.mxu1 %v5651_v31  ;;  %v3316_v27 = vpop.f32.mrf.mxu0  ;;  %3610 = vmatprep.subr.bf16.mxu0 %v4906_v15  ;;  %v4890_v45 = vcombine.high %v316_v52, %v320_v36  ;;  %v4889_v55 = vcombine.low %v316_v52, %v320_v36  ;;  %v284_v15 = vld [vmem:[%s7279_s1 + $0x810] sm:$0xff] }
 0x149   :  { %3650 = vmatpush1.bf16.msra.mxu1 %v5041_v14  ;;  %v6473_v63 = vadd.f32 %v3355_v25, %v3315_v24  ;;  %v3317_v33 = vadd.f32 %v3316_v27, %v6288_v62  ;;  %v448_v62 = vld [vmem:[%s7279_s1 + $0xd30] sm:$0xff]  ;;  %3681 = vmatprep.mubr.bf16.mxu1 %v5668_v40  ;;  %v4994_v14 = vcombine.high %v420_v7, %v424_v8 }
 0x14a   :  { %v3357_v34 = vpop.f32.mrf.mxu1  ;;  %3651 = vmatprep.subr.bf16.mxu1 %v5034_v16  ;;  %v3318_v37 = vpop.f32.mrf.mxu0  ;;  %v5018_v47 = vcombine.high %v444_v53, %v448_v62  ;;  %v5017_v56 = vcombine.low %v444_v53, %v448_v62  ;;  %v288_v16 = vld [vmem:[%s7279_s1 + $0x830] sm:$0xff]  ;;  %v4986_v24 = vcombine.high %v412_v17, %v416_v18 }
 0x14b   :  { %v6490_v38 = vadd.f32 %v3357_v34, %v3317_v33  ;;  %3611 = vmatpush1.bf16.msra.mxu0 %v4905_v26  ;;  %v4858_v21 = vcombine.high %v284_v15, %v288_v16  ;;  %v404_v25 = vld [vmem:[%s7279_s1 + $0xbd0] sm:$0xff]  ;;  %v4985_v33 = vcombine.low %v412_v17, %v416_v18 }
 0x14c   :  { %v3359_v39 = vpop.f32.mrf.mxu1  ;;  %v3319_v42 = vpop.f32.mrf.mxu0  ;;  %3612 = vmatprep.subr.bf16.mxu0 %v4898_v29  ;;  %v408_v26 = vld [vmem:[%s7279_s1 + $0xbf0] sm:$0xff]  ;;  %v4857_v29 = vcombine.low %v284_v15, %v288_v16 }
 0x14d   :  { %3652 = vmatpush1.bf16.msra.mxu1 %v5033_v28  ;;  %v532_v27 = vld [vmem:[%s7279_s1 + $0xfd0] sm:$0xff]  ;;  %v4978_v34 = vcombine.high %v404_v25, %v408_v26  ;;  %v4977_v62 = vcombine.low %v404_v25, %v408_v26 }
 0x14e   :  { %v3360_v46 = vpop.f32.mrf.mxu1  ;;  %3653 = vmatprep.subr.bf16.mxu1 %v5026_v35  ;;  %v536_v28 = vld [vmem:[%s7279_s1 + $0xff0] sm:$0xff] }
 0x14f   :  { %3613 = vmatpush1.bf16.msra.mxu0 %v4897_v41  ;;  %v5106_v35 = vcombine.high %v532_v27, %v536_v28  ;;  %v396_v52 = vld [vmem:[%s7279_s1 + $0xb90] sm:$0xff]  ;;  %v5105_v39 = vcombine.low %v532_v27, %v536_v28 }
 0x150   :  { %3614 = vmatprep.subr.bf16.mxu0 %v4890_v45  ;;  %v400_v36 = vld [vmem:[%s7279_s1 + $0xbb0] sm:$0xff] }
 0x151   :  { %3654 = vmatpush1.bf16.msra.mxu1 %v5025_v44  ;;  %v524_v37 = vld [vmem:[%s7279_s1 + $0xf90] sm:$0xff]  ;;  %v4970_v41 = vcombine.high %v396_v52, %v400_v36  ;;  %v4969_v48 = vcombine.low %v396_v52, %v400_v36 }
 0x152   :  { %3655 = vmatprep.subr.bf16.mxu1 %v5018_v47  ;;  %v528_v53 = vld [vmem:[%s7279_s1 + $0xfb0] sm:$0xff] }
 0x153   :  { %3615 = vmatpush1.bf16.msra.mxu0 %v4889_v55  ;;  %v5098_v42 = vcombine.high %v524_v37, %v528_v53  ;;  %v388_v44 = vld [vmem:[%s7279_s1 + $0xb50] sm:$0xff]  ;;  %v5097_v49 = vcombine.low %v524_v37, %v528_v53 }
 0x154   :  { %3616 = vmatprep.subr.bf16.mxu0 %v4882_v57  ;;  %v392_v45 = vld [vmem:[%s7279_s1 + $0xb70] sm:$0xff] }
 0x155   :  { %3656 = vmatpush1.bf16.msra.mxu1 %v5017_v56  ;;  %v516_v46 = vld [vmem:[%s7279_s1 + $0xf50] sm:$0xff]  ;;  %v4962_v51 = vcombine.high %v388_v44, %v392_v45  ;;  %v4961_v59 = vcombine.low %v388_v44, %v392_v45  ;;  %v550_v45 = vsub.s32 2, %v5461_v43 }
 0x156   :  { %3657 = vmatprep.subr.bf16.mxu1 %v5010_v58  ;;  %v520_v47 = vld [vmem:[%s7279_s1 + $0xf70] sm:$0xff] }
 0x157   :  { %3617 = vmatpush1.bf16.msra.mxu0 %v4881_v1  ;;  %v5090_v54 = vcombine.high %v516_v46, %v520_v47  ;;  %v380_v55 = vld [vmem:[%s7279_s1 + $0xb10] sm:$0xff]  ;;  %v5089_v60 = vcombine.low %v516_v46, %v520_v47 }
 0x158   :  { %3618 = vmatprep.subr.bf16.mxu0 %v4874_v3  ;;  %v384_v56 = vld [vmem:[%s7279_s1 + $0xb30] sm:$0xff] }
 0x159   :  { %3658 = vmatpush1.bf16.msra.mxu1 %v5009_v2  ;;  %v508_v57 = vld [vmem:[%s7279_s1 + $0xf10] sm:$0xff]  ;;  %v4954_v61 = vcombine.high %v380_v55, %v384_v56  ;;  %v4953_v5 = vcombine.low %v380_v55, %v384_v56  ;;  %v205_v55 = vld [vmem:[%s7279_s1 + $0x598] sm:$0xff] }
 0x15a   :  { %3659 = vmatprep.subr.bf16.mxu1 %v5002_v4  ;;  %v512_v58 = vld [vmem:[%s7279_s1 + $0xf30] sm:$0xff]  ;;  %v209_v56 = vld [vmem:[%s7279_s1 + $0x5b8] sm:$0xff] }
 0x15b   :  { %3619 = vmatpush1.bf16.msra.mxu0 %v4873_v10  ;;  %v5082_v0 = vcombine.high %v508_v57, %v512_v58  ;;  %v372_v1 = vld [vmem:[%s7279_s1 + $0xad0] sm:$0xff]  ;;  %v5081_v6 = vcombine.low %v508_v57, %v512_v58  ;;  %v551_v57 = vrot.slane %v6241_v22, %v550_v45 }
 0x15c   :  { %3620 = vmatprep.subr.bf16.mxu0 %v4866_v12  ;;  %v376_v2 = vld [vmem:[%s7279_s1 + $0xaf0] sm:$0xff] }
 0x15d   :  { %3660 = vmatpush1.bf16.msra.mxu1 %v5001_v11  ;;  %v500_v3 = vld [vmem:[%s7279_s1 + $0xed0] sm:$0xff]  ;;  %v4946_v7 = vcombine.high %v372_v1, %v376_v2  ;;  %v4945_v15 = vcombine.low %v372_v1, %v376_v2  ;;  %v69_v1 = vld [vmem:[%s7279_s1 + $0x158] sm:$0xff] }
 0x15e   :  { %3661 = vmatprep.subr.bf16.mxu1 %v4994_v14  ;;  %v504_v4 = vld [vmem:[%s7279_s1 + $0xef0] sm:$0xff]  ;;  %v73_v2 = vld [vmem:[%s7279_s1 + $0x178] sm:$0xff] }
 0x15f   :  { %3621 = vmatpush1.bf16.msra.mxu0 %v4865_v19  ;;  %v5074_v8 = vcombine.high %v500_v3, %v504_v4  ;;  %v364_v10 = vld [vmem:[%s7279_s1 + $0xa90] sm:$0xff]  ;;  %v5073_v16 = vcombine.low %v500_v3, %v504_v4  ;;  %v197_v4 = vld [vmem:[%s7279_s1 + $0x558] sm:$0xff] }
 0x160   :  { %3622 = vmatprep.subr.bf16.mxu0 %v4858_v21  ;;  %v368_v11 = vld [vmem:[%s7279_s1 + $0xab0] sm:$0xff] }
 0x161   :  { %3662 = vmatpush1.bf16.msra.mxu1 %v4993_v20  ;;  %v492_v12 = vld [vmem:[%s7279_s1 + $0xe90] sm:$0xff]  ;;  %v4938_v17 = vcombine.high %v364_v10, %v368_v11  ;;  %v4937_v25 = vcombine.low %v364_v10, %v368_v11  ;;  %v4779_v10 = vcombine.low %v205_v55, %v209_v56  ;;  %v4644_v11 = vcombine.high %v69_v1, %v73_v2 }
 0x162   :  { %3663 = vmatprep.subr.bf16.mxu1 %v4986_v24  ;;  %v496_v14 = vld [vmem:[%s7279_s1 + $0xeb0] sm:$0xff] }
 0x163   :  { %3623 = vmatpush1.bf16.msra.mxu0 %v4857_v29  ;;  %v5066_v18 = vcombine.high %v492_v12, %v496_v14  ;;  %v356_v19 = vld [vmem:[%s7279_s1 + $0xa50] sm:$0xff]  ;;  %v5065_v26 = vcombine.low %v492_v12, %v496_v14 }
 0x164   :  { %3624 = vmatprep.subr.bf16.mxu0 %v4978_v34  ;;  %v360_v20 = vld [vmem:[%s7279_s1 + $0xa70] sm:$0xff] }
 0x165   :  { %3664 = vmatpush1.bf16.msra.mxu1 %v4985_v33  ;;  %v484_v21 = vld [vmem:[%s7279_s1 + $0xe50] sm:$0xff]  ;;  %v4930_v27 = vcombine.high %v356_v19, %v360_v20  ;;  %v4929_v52 = vcombine.low %v356_v19, %v360_v20  ;;  %v189_v20 = vld [vmem:[%s7279_s1 + $0x518] sm:$0xff] }
 0x166   :  { %3665 = vmatprep.subr.bf16.mxu1 %v5106_v35  ;;  %v488_v24 = vld [vmem:[%s7279_s1 + $0xe70] sm:$0xff] }
 0x167   :  { %3625 = vmatpush2.bf16.msra.mxu0 %v4977_v62  ;;  %v5058_v28 = vcombine.high %v484_v21, %v488_v24  ;;  %v348_v29 = vld [vmem:[%s7279_s1 + $0xa10] sm:$0xff]  ;;  %v5057_v36 = vcombine.low %v484_v21, %v488_v24  ;;  %v85_v62 = vld [vmem:[%s7279_s1 + $0x1d8] sm:$0xff] }
 0x168   :  { %3626 = vmatprep.subr.bf16.mxu0 %v4970_v41  ;;  %v352_v33 = vld [vmem:[%s7279_s1 + $0xa30] sm:$0xff]  ;;  %v213_v41 = vld [vmem:[%s7279_s1 + $0x5d8] sm:$0xff] }
 0x169   :  { %3666 = vmatpush2.bf16.msra.mxu1 %v5105_v39  ;;  %v476_v34 = vld [vmem:[%s7279_s1 + $0xe10] sm:$0xff]  ;;  %v4922_v37 = vcombine.high %v348_v29, %v352_v33  ;;  %v89_v39 = vld [vmem:[%s7279_s1 + $0x1f8] sm:$0xff]  ;;  %v4921_v44 = vcombine.low %v348_v29, %v352_v33 }
 0x16a   :  { %3667 = vmatprep.subr.bf16.mxu1 %v5098_v42  ;;  %v480_v35 = vld [vmem:[%s7279_s1 + $0xe30] sm:$0xff]  ;;  %v217_v42 = vld [vmem:[%s7279_s1 + $0x5f8] sm:$0xff]  ;;  %v4660_v47 = vcombine.high %v85_v62, %v89_v39  ;;  %v4659_v58 = vcombine.low %v85_v62, %v89_v39 }
 0x16b   :  { %3627 = vmatpush2.bf16.msra.mxu0 %v4969_v48  ;;  %v5050_v53 = vcombine.high %v476_v34, %v480_v35  ;;  %v5049_v46 = vcombine.low %v476_v34, %v480_v35  ;;  %v4788_v48 = vcombine.high %v213_v41, %v217_v42  ;;  %v193_v21 = vld [vmem:[%s7279_s1 + $0x538] sm:$0xff] }
 0x16c   :  { %3628 = vmatprep.subr.bf16.mxu0 %v4962_v51  ;;  %v77_v51 = vld [vmem:[%s7279_s1 + $0x198] sm:$0xff]  ;;  %v4764_v33 = vcombine.high %v189_v20, %v193_v21 }
 0x16d   :  { %3668 = vmatpush2.bf16.msra.mxu1 %v5097_v49  ;;  %v554_v49 = vsub.s32 3, %v5461_v43  ;;  %v53_v34 = vld [vmem:[%s7279_s1 + $0xd8] sm:$0xff] }
 0x16e   :  { %3669 = vmatprep.subr.bf16.mxu1 %v5090_v54  ;;  %v81_v54 = vld [vmem:[%s7279_s1 + $0x1b8] sm:$0xff] }
 0x16f   :  { %3629 = vmatpush2.bf16.msra.mxu0 %v4961_v59  ;;  %v4787_v59 = vcombine.low %v213_v41, %v217_v42  ;;  %v181_v35 = vld [vmem:[%s7279_s1 + $0x4d8] sm:$0xff] }
 0x170   :  { %3630 = vmatprep.subr.bf16.mxu0 %v4954_v61  ;;  %v555_v61 = vrot.slane %v6241_v22, %v554_v49  ;;  %v201_v22 = vld [vmem:[%s7279_s1 + $0x578] sm:$0xff] }
 0x171   :  { %3670 = vmatpush2.bf16.msra.mxu1 %v5089_v60  ;;  %v4652_v60 = vcombine.high %v77_v51, %v81_v54  ;;  %v45_v39 = vld [vmem:[%s7279_s1 + $0x98] sm:$0xff] }
 0x172   :  { %3671 = vmatprep.subr.bf16.mxu1 %v5082_v0  ;;  %v4780_v0 = vcombine.high %v205_v55, %v209_v56  ;;  %v49_v41 = vld [vmem:[%s7279_s1 + $0xb8] sm:$0xff] }
 0x173   :  { %3631 = vmatpush2.bf16.msra.mxu0 %v4953_v5  ;;  %v173_v42 = vld [vmem:[%s7279_s1 + $0x498] sm:$0xff]  ;;  %v4619_v56 = vcombine.low %v45_v39, %v49_v41 }
 0x174   :  { %3632 = vmatprep.subr.bf16.mxu0 %v4946_v7  ;;  %v4651_v7 = vcombine.low %v77_v51, %v81_v54  ;;  %v37_v49 = vld [vmem:[%s7279_s1 + $0x58] sm:$0xff] }
 0x175   :  { %3672 = vmatpush2.bf16.msra.mxu1 %v5081_v6  ;;  %v41_v51 = vld [vmem:[%s7279_s1 + $0x78] sm:$0xff] }
 0x176   :  { %3673 = vmatprep.subr.bf16.mxu1 %v5074_v8  ;;  %v165_v54 = vld [vmem:[%s7279_s1 + $0x458] sm:$0xff] }
 0x177   :  { %3633 = vmatpush2.bf16.msra.mxu0 %v4945_v15  ;;  %v169_v55 = vld [vmem:[%s7279_s1 + $0x478] sm:$0xff] }
 0x178   :  { %3634 = vmatprep.subr.bf16.mxu0 %v4938_v17  ;;  %v61_v17 = vld [vmem:[%s7279_s1 + $0x118] sm:$0xff] }
 0x179   :  { %3674 = vmatpush2.bf16.msra.mxu1 %v5073_v16  ;;  %v4772_v16 = vcombine.high %v197_v4, %v201_v22 }
 0x17a   :  { %3675 = vmatprep.subr.bf16.mxu1 %v5066_v18  ;;  %v65_v18 = vld [vmem:[%s7279_s1 + $0x138] sm:$0xff] }
 0x17b   :  { %3635 = vmatpush2.bf16.msra.mxu0 %v4937_v25 }
 0x17c   :  { %3636 = vmatprep.subr.bf16.mxu0 %v4930_v27 }
 0x17d   :  { %3676 = vmatpush2.bf16.msra.mxu1 %v5065_v26  ;;  %v4643_v26 = vcombine.low %v69_v1, %v73_v2  ;;  %v161_v1 = vld [vmem:[%s7279_s1 + $0x438] sm:$0xff]  ;;  %v4611_v2 = vcombine.low %v37_v49, %v41_v51 }
 0x17e   :  { %3677 = vmatprep.subr.bf16.mxu1 %v5058_v28  ;;  %v4636_v28 = vcombine.high %v61_v17, %v65_v18 }
 0x17f   :  { %3637 = vmatpush2.bf16.msra.mxu0 %v4929_v52  ;;  %v185_v52 = vld [vmem:[%s7279_s1 + $0x4f8] sm:$0xff] }
 0x180   :  { %3638 = vmatprep.subr.bf16.mxu0 %v4922_v37  ;;  %v4763_v37 = vcombine.low %v189_v20, %v193_v21  ;;  %v4756_v62 = vcombine.high %v181_v35, %v185_v52 }
 0x181   :  { %3678 = vmatpush2.bf16.msra.mxu1 %v5057_v36  ;;  %v4635_v36 = vcombine.low %v61_v17, %v65_v18  ;;  %v145_v17 = vld [vmem:[%s7279_s1 + $0x3b8] sm:$0xff] }
 0x182   :  { %3679 = vmatprep.subr.bf16.mxu1 %v5050_v53  ;;  %v269_v18 = vld [vmem:[%s7279_s1 + $0x798] sm:$0xff] }
 0x183   :  { %3639 = vmatpush2.bf16.msra.mxu0 %v4921_v44  ;;  %v177_v44 = vld [vmem:[%s7279_s1 + $0x4b8] sm:$0xff] }
 0x184   :  { %3690 = vmatprep.subr.bf16.mxu0 %v4660_v47  ;;  %v4620_v47 = vcombine.high %v45_v39, %v49_v41 }
 0x185   :  { %3680 = vmatpush2.bf16.msra.mxu1 %v5049_v46  ;;  %v4755_v46 = vcombine.low %v181_v35, %v185_v52  ;;  %v125_v52 = vld [vmem:[%s7279_s1 + $0x318] sm:$0xff] }
 0x186   :  { %3731 = vmatprep.subr.bf16.mxu1 %v4788_v48  ;;  %v3396_v3 = vpop.f32.mrf.mxu0  ;;  %3641 = vmatmul.mubr.bf16.vlgmr.msra.gmra.mxu0 %v5554_v32  ;;  %v4748_v48 = vcombine.high %v173_v42, %v177_v44 }
 0x187   :  { %v3397_v5 = vadd.f32 %v3396_v3, %v551_v57  ;;  %3691 = vmatpush1.bf16.msra.mxu0 %v4659_v58  ;;  %3722 = vmatprep.mubr.bf16.mxu0 %v5511_v9  ;;  %v4771_v9 = vcombine.low %v197_v4, %v201_v22  ;;  %v4747_v57 = vcombine.low %v173_v42, %v177_v44  ;;  %v117_v44 = vld [vmem:[%s7279_s1 + $0x2d8] sm:$0xff] }
 0x188   :  { %v3437_v6 = vpop.f32.mrf.mxu1  ;;  %3682 = vmatmul.mubr.bf16.vlgmr.msra.gmra.mxu1 %v5855_v50  ;;  %v3398_v8 = vpop.f32.mrf.mxu0  ;;  %3692 = vmatprep.subr.bf16.mxu0 %v4652_v60  ;;  %v4612_v58 = vcombine.high %v37_v49, %v41_v51  ;;  %v29_v60 = vld [vmem:[%s7279_s1 + $0x18] sm:$0xff]  ;;  %v4739_v3 = vcombine.low %v165_v54, %v169_v55 }
 0x189   :  { %3732 = vmatpush1.bf16.msra.mxu1 %v4787_v59  ;;  %v6678_v12 = vadd.f32 %v3437_v6, %v3397_v5  ;;  %v3399_v14 = vadd.f32 %v3398_v8, %v555_v61  ;;  %3763 = vmatprep.mubr.bf16.mxu1 %v5522_v13  ;;  %v57_v13 = vld [vmem:[%s7279_s1 + $0xf8] sm:$0xff]  ;;  %v4740_v59 = vcombine.high %v165_v54, %v169_v55 }
 0x18a   :  { %v3439_v15 = vpop.f32.mrf.mxu1  ;;  %3733 = vmatprep.subr.bf16.mxu1 %v4780_v0  ;;  %v3400_v19 = vpop.f32.mrf.mxu0  ;;  %v4628_v53 = vcombine.high %v53_v34, %v57_v13  ;;  %v4627_v45 = vcombine.low %v53_v34, %v57_v13  ;;  %v33_v61 = vld [vmem:[%s7279_s1 + $0x38] sm:$0xff] }
 0x18b   :  { %v6694_v24 = vadd.f32 %v3439_v15, %v3399_v14  ;;  %3693 = vmatpush1.bf16.msra.mxu0 %v4651_v7  ;;  %v157_v0 = vld [vmem:[%s7279_s1 + $0x418] sm:$0xff]  ;;  %v4604_v4 = vcombine.high %v29_v60, %v33_v61 }
 0x18c   :  { %v3441_v25 = vpop.f32.mrf.mxu1  ;;  %v3401_v27 = vpop.f32.mrf.mxu0  ;;  %3694 = vmatprep.subr.bf16.mxu0 %v4644_v11  ;;  %v4732_v22 = vcombine.high %v157_v0, %v161_v1  ;;  %v149_v5 = vld [vmem:[%s7279_s1 + $0x3d8] sm:$0xff]  ;;  %v4731_v11 = vcombine.low %v157_v0, %v161_v1 }
 0x18d   :  { %3734 = vmatpush1.bf16.msra.mxu1 %v4779_v10  ;;  %v153_v6 = vld [vmem:[%s7279_s1 + $0x3f8] sm:$0xff]  ;;  %v4603_v10 = vcombine.low %v29_v60, %v33_v61 }
 0x18e   :  { %v3442_v29 = vpop.f32.mrf.mxu1  ;;  %3735 = vmatprep.subr.bf16.mxu1 %v4772_v16  ;;  %v277_v7 = vld [vmem:[%s7279_s1 + $0x7d8] sm:$0xff]  ;;  %v4724_v14 = vcombine.high %v149_v5, %v153_v6  ;;  %v4723_v20 = vcombine.low %v149_v5, %v153_v6 }
 0x18f   :  { %3695 = vmatpush1.bf16.msra.mxu0 %v4643_v26  ;;  %v281_v8 = vld [vmem:[%s7279_s1 + $0x7f8] sm:$0xff] }
 0x190   :  { %3696 = vmatprep.subr.bf16.mxu0 %v4636_v28  ;;  %v4852_v15 = vcombine.high %v277_v7, %v281_v8  ;;  %v141_v16 = vld [vmem:[%s7279_s1 + $0x398] sm:$0xff]  ;;  %v4851_v21 = vcombine.low %v277_v7, %v281_v8 }
 0x191   :  { %3736 = vmatpush1.bf16.msra.mxu1 %v4771_v9  ;;  %v273_v19 = vld [vmem:[%s7279_s1 + $0x7b8] sm:$0xff]  ;;  %v4716_v25 = vcombine.high %v141_v16, %v145_v17 }
 0x192   :  { %3737 = vmatprep.subr.bf16.mxu1 %v4764_v33  ;;  %v4844_v26 = vcombine.high %v269_v18, %v273_v19  ;;  %v133_v27 = vld [vmem:[%s7279_s1 + $0x358] sm:$0xff]  ;;  %v4715_v33 = vcombine.low %v141_v16, %v145_v17  ;;  %v4843_v34 = vcombine.low %v269_v18, %v273_v19 }
 0x193   :  { %3697 = vmatpush1.bf16.msra.mxu0 %v4635_v36  ;;  %v137_v9 = vld [vmem:[%s7279_s1 + $0x378] sm:$0xff] }
 0x194   :  { %3698 = vmatprep.subr.bf16.mxu0 %v4628_v53  ;;  %v261_v28 = vld [vmem:[%s7279_s1 + $0x758] sm:$0xff]  ;;  %v4708_v13 = vcombine.high %v133_v27, %v137_v9 }
 0x195   :  { %3738 = vmatpush1.bf16.msra.mxu1 %v4763_v37  ;;  %v265_v29 = vld [vmem:[%s7279_s1 + $0x778] sm:$0xff] }
 0x196   :  { %3739 = vmatprep.subr.bf16.mxu1 %v4756_v62  ;;  %v4836_v35 = vcombine.high %v261_v28, %v265_v29  ;;  %v129_v36 = vld [vmem:[%s7279_s1 + $0x338] sm:$0xff]  ;;  %v4707_v62 = vcombine.low %v133_v27, %v137_v9  ;;  %v4835_v39 = vcombine.low %v261_v28, %v265_v29 }
 0x197   :  { %3699 = vmatpush1.bf16.msra.mxu0 %v4627_v45  ;;  %v253_v37 = vld [vmem:[%s7279_s1 + $0x718] sm:$0xff]  ;;  %v4700_v41 = vcombine.high %v125_v52, %v129_v36 }
 0x198   :  { %3700 = vmatprep.subr.bf16.mxu0 %v4620_v47  ;;  %v257_v53 = vld [vmem:[%s7279_s1 + $0x738] sm:$0xff] }
 0x199   :  { %3740 = vmatpush1.bf16.msra.mxu1 %v4755_v46  ;;  %v4828_v42 = vcombine.high %v253_v37, %v257_v53  ;;  %v121_v45 = vld [vmem:[%s7279_s1 + $0x2f8] sm:$0xff]  ;;  %v4827_v49 = vcombine.low %v253_v37, %v257_v53 }
 0x19a   :  { %3741 = vmatprep.subr.bf16.mxu1 %v4748_v48  ;;  %v245_v46 = vld [vmem:[%s7279_s1 + $0x6d8] sm:$0xff]  ;;  %v4699_v48 = vcombine.low %v125_v52, %v129_v36  ;;  %v4692_v51 = vcombine.high %v117_v44, %v121_v45 }
 0x19b   :  { %3701 = vmatpush1.bf16.msra.mxu0 %v4619_v56  ;;  %v249_v47 = vld [vmem:[%s7279_s1 + $0x6f8] sm:$0xff] }
 0x19c   :  { %3702 = vmatprep.subr.bf16.mxu0 %v4612_v58  ;;  %v4820_v54 = vcombine.high %v245_v46, %v249_v47  ;;  %v109_v55 = vld [vmem:[%s7279_s1 + $0x298] sm:$0xff]  ;;  %v4819_v60 = vcombine.low %v245_v46, %v249_v47 }
 0x19d   :  { %3742 = vmatpush1.bf16.msra.mxu1 %v4747_v57  ;;  %v113_v56 = vld [vmem:[%s7279_s1 + $0x2b8] sm:$0xff] }
 0x19e   :  { %3743 = vmatprep.subr.bf16.mxu1 %v4740_v59  ;;  %v237_v57 = vld [vmem:[%s7279_s1 + $0x698] sm:$0xff]  ;;  %v4691_v59 = vcombine.low %v117_v44, %v121_v45  ;;  %v4684_v61 = vcombine.high %v109_v55, %v113_v56 }
 0x19f   :  { %3703 = vmatpush1.bf16.msra.mxu0 %v4611_v2  ;;  %v241_v58 = vld [vmem:[%s7279_s1 + $0x6b8] sm:$0xff] }
 0x1a0   :  { %3704 = vmatprep.subr.bf16.mxu0 %v4604_v4  ;;  %v4812_v0 = vcombine.high %v237_v57, %v241_v58  ;;  %v101_v1 = vld [vmem:[%s7279_s1 + $0x258] sm:$0xff]  ;;  %v4811_v5 = vcombine.low %v237_v57, %v241_v58 }
 0x1a1   :  { %3744 = vmatpush1.bf16.msra.mxu1 %v4739_v3  ;;  %v105_v2 = vld [vmem:[%s7279_s1 + $0x278] sm:$0xff] }
 0x1a2   :  { %3745 = vmatprep.subr.bf16.mxu1 %v4732_v22  ;;  %v229_v3 = vld [vmem:[%s7279_s1 + $0x658] sm:$0xff]  ;;  %v4683_v22 = vcombine.low %v109_v55, %v113_v56  ;;  %v4676_v6 = vcombine.high %v101_v1, %v105_v2 }
 0x1a3   :  { %3705 = vmatpush1.bf16.msra.mxu0 %v4603_v10  ;;  %v233_v4 = vld [vmem:[%s7279_s1 + $0x678] sm:$0xff] }
 0x1a4   :  { %3706 = vmatprep.subr.bf16.mxu0 %v4724_v14  ;;  %v4804_v7 = vcombine.high %v229_v3, %v233_v4  ;;  %v93_v8 = vld [vmem:[%s7279_s1 + $0x218] sm:$0xff]  ;;  %v4803_v16 = vcombine.low %v229_v3, %v233_v4 }
 0x1a5   :  { %3746 = vmatpush1.bf16.msra.mxu1 %v4731_v11  ;;  %v97_v10 = vld [vmem:[%s7279_s1 + $0x238] sm:$0xff] }
 0x1a6   :  { %3747 = vmatprep.subr.bf16.mxu1 %v4852_v15  ;;  %v221_v11 = vld [vmem:[%s7279_s1 + $0x618] sm:$0xff]  ;;  %v4675_v15 = vcombine.low %v101_v1, %v105_v2  ;;  %v4668_v17 = vcombine.high %v93_v8, %v97_v10 }
 0x1a7   :  { %3707 = vmatpush2.bf16.msra.mxu0 %v4723_v20  ;;  %v225_v14 = vld [vmem:[%s7279_s1 + $0x638] sm:$0xff] }
 0x1a8   :  { %3708 = vmatprep.subr.bf16.mxu0 %v4716_v25  ;;  %v4796_v18 = vcombine.high %v221_v11, %v225_v14  ;;  %v341_v19 = vld [vmem:[%s7279_s1 + $0x9d8] sm:$0xff]  ;;  %v4795_v27 = vcombine.low %v221_v11, %v225_v14 }
 0x1a9   :  { %3748 = vmatpush2.bf16.msra.mxu1 %v4851_v21  ;;  %v345_v20 = vld [vmem:[%s7279_s1 + $0x9f8] sm:$0xff] }
 0x1aa   :  { %3749 = vmatprep.subr.bf16.mxu1 %v4844_v26  ;;  %v469_v21 = vld [vmem:[%s7279_s1 + $0xdd8] sm:$0xff]  ;;  %v4667_v26 = vcombine.low %v93_v8, %v97_v10  ;;  %v4916_v9 = vcombine.high %v341_v19, %v345_v20 }
 0x1ab   :  { %3709 = vmatpush2.bf16.msra.mxu0 %v4715_v33  ;;  %v473_v25 = vld [vmem:[%s7279_s1 + $0xdf8] sm:$0xff] }
 0x1ac   :  { %3710 = vmatprep.subr.bf16.mxu0 %v4708_v13  ;;  %v5044_v28 = vcombine.high %v469_v21, %v473_v25  ;;  %v333_v29 = vld [vmem:[%s7279_s1 + $0x998] sm:$0xff]  ;;  %v5043_v52 = vcombine.low %v469_v21, %v473_v25 }
 0x1ad   :  { %3750 = vmatpush2.bf16.msra.mxu1 %v4843_v34  ;;  %v337_v33 = vld [vmem:[%s7279_s1 + $0x9b8] sm:$0xff] }
 0x1ae   :  { %3751 = vmatprep.subr.bf16.mxu1 %v4836_v35  ;;  %v461_v34 = vld [vmem:[%s7279_s1 + $0xd98] sm:$0xff]  ;;  %v4915_v35 = vcombine.low %v341_v19, %v345_v20  ;;  %v4908_v36 = vcombine.high %v333_v29, %v337_v33  ;;  %v4907_v46 = vcombine.low %v333_v29, %v337_v33 }
 0x1af   :  { %3711 = vmatpush2.bf16.msra.mxu0 %v4707_v62  ;;  %v465_v13 = vld [vmem:[%s7279_s1 + $0xdb8] sm:$0xff] }
 0x1b0   :  { %3712 = vmatprep.subr.bf16.mxu0 %v4700_v41  ;;  %v5036_v37 = vcombine.high %v461_v34, %v465_v13  ;;  %v325_v53 = vld [vmem:[%s7279_s1 + $0x958] sm:$0xff] }
 0x1b1   :  { %3752 = vmatpush2.bf16.msra.mxu1 %v4835_v39  ;;  %v329_v62 = vld [vmem:[%s7279_s1 + $0x978] sm:$0xff] }
 0x1b2   :  { %3753 = vmatprep.subr.bf16.mxu1 %v4828_v42  ;;  %v453_v41 = vld [vmem:[%s7279_s1 + $0xd58] sm:$0xff] }
 0x1b3   :  { %3713 = vmatpush2.bf16.msra.mxu0 %v4699_v48  ;;  %v457_v42 = vld [vmem:[%s7279_s1 + $0xd78] sm:$0xff]  ;;  %v4900_v48 = vcombine.high %v325_v53, %v329_v62 }
 0x1b4   :  { %3714 = vmatprep.subr.bf16.mxu0 %v4692_v51  ;;  %v445_v56 = vld [vmem:[%s7279_s1 + $0xd18] sm:$0xff] }
 0x1b5   :  { %3754 = vmatpush2.bf16.msra.mxu1 %v4827_v49  ;;  %v449_v57 = vld [vmem:[%s7279_s1 + $0xd38] sm:$0xff] }
 0x1b6   :  { %3755 = vmatprep.subr.bf16.mxu1 %v4820_v54  ;;  %v5028_v54 = vcombine.high %v453_v41, %v457_v42  ;;  %v5020_v1 = vcombine.high %v445_v56, %v449_v57  ;;  %v309_v2 = vld [vmem:[%s7279_s1 + $0x8d8] sm:$0xff] }
 0x1b7   :  { %3715 = vmatpush2.bf16.msra.mxu0 %v4691_v59  ;;  %v4899_v59 = vcombine.low %v325_v53, %v329_v62  ;;  %v313_v3 = vld [vmem:[%s7279_s1 + $0x8f8] sm:$0xff] }
 0x1b8   :  { %3716 = vmatprep.subr.bf16.mxu0 %v4684_v61  ;;  %v5027_v61 = vcombine.low %v453_v41, %v457_v42  ;;  %v441_v4 = vld [vmem:[%s7279_s1 + $0xcf8] sm:$0xff] }
 0x1b9   :  { %3756 = vmatpush2.bf16.msra.mxu1 %v4819_v60  ;;  %v301_v8 = vld [vmem:[%s7279_s1 + $0x898] sm:$0xff] }
 0x1ba   :  { %3757 = vmatprep.subr.bf16.mxu1 %v4812_v0  ;;  %v305_v10 = vld [vmem:[%s7279_s1 + $0x8b8] sm:$0xff] }
 0x1bb   :  { %3717 = vmatpush2.bf16.msra.mxu0 %v4683_v22  ;;  %v429_v11 = vld [vmem:[%s7279_s1 + $0xc98] sm:$0xff] }
 0x1bc   :  { %3718 = vmatprep.subr.bf16.mxu0 %v4676_v6  ;;  %v4884_v6 = vcombine.high %v309_v2, %v313_v3  ;;  %v433_v14 = vld [vmem:[%s7279_s1 + $0xcb8] sm:$0xff] }
 0x1bd   :  { %3758 = vmatpush2.bf16.msra.mxu1 %v4811_v5  ;;  %v5019_v5 = vcombine.low %v445_v56, %v449_v57  ;;  %v293_v19 = vld [vmem:[%s7279_s1 + $0x858] sm:$0xff] }
 0x1be   :  { %3759 = vmatprep.subr.bf16.mxu1 %v4804_v7  ;;  %v297_v20 = vld [vmem:[%s7279_s1 + $0x878] sm:$0xff] }
 0x1bf   :  { %3719 = vmatpush2.bf16.msra.mxu0 %v4675_v15  ;;  %v4883_v15 = vcombine.low %v309_v2, %v313_v3  ;;  %v421_v21 = vld [vmem:[%s7279_s1 + $0xc58] sm:$0xff] }
 0x1c0   :  { %3720 = vmatprep.subr.bf16.mxu0 %v4668_v17  ;;  %v4876_v17 = vcombine.high %v301_v8, %v305_v10  ;;  %v425_v25 = vld [vmem:[%s7279_s1 + $0xc78] sm:$0xff] }
 0x1c1   :  { %3760 = vmatpush2.bf16.msra.mxu1 %v4803_v16  ;;  %v285_v29 = vld [vmem:[%s7279_s1 + $0x818] sm:$0xff] }
 0x1c2   :  { %3761 = vmatprep.subr.bf16.mxu1 %v4796_v18  ;;  %v5004_v18 = vcombine.high %v429_v11, %v433_v14  ;;  %v289_v33 = vld [vmem:[%s7279_s1 + $0x838] sm:$0xff] }
 0x1c3   :  { %3721 = vmatpush2.bf16.msra.mxu0 %v4667_v26  ;;  %v4875_v26 = vcombine.low %v301_v8, %v305_v10  ;;  %v405_v53 = vld [vmem:[%s7279_s1 + $0xbd8] sm:$0xff]  ;;  %v4859_v42 = vcombine.low %v285_v29, %v289_v33 }
 0x1c4   :  { %3772 = vmatprep.subr.bf16.mxu0 %v4916_v9  ;;  %v4868_v9 = vcombine.high %v293_v19, %v297_v20  ;;  %v409_v62 = vld [vmem:[%s7279_s1 + $0xbf8] sm:$0xff] }
 0x1c5   :  { %3762 = vmatpush2.bf16.msra.mxu1 %v4795_v27  ;;  %v5003_v27 = vcombine.low %v429_v11, %v433_v14  ;;  %v537_v41 = vld [vmem:[%s7279_s1 + $0xff8] sm:$0xff] }
 0x1c6   :  { %3813 = vmatprep.subr.bf16.mxu1 %v5044_v28  ;;  %v3478_v39 = vpop.f32.mrf.mxu0  ;;  %3723 = vmatmul.mubr.bf16.vlgmr.msra.gmra.mxu0 %v5632_v23  ;;  %v5035_v23 = vcombine.low %v461_v34, %v465_v13  ;;  %v4996_v28 = vcombine.high %v421_v21, %v425_v25  ;;  %v413_v34 = vld [vmem:[%s7279_s1 + $0xc18] sm:$0xff] }
 0x1c7   :  { %v3479_v44 = vadd.f32 %v3478_v39, %v6678_v12  ;;  %3773 = vmatpush1.bf16.msra.mxu0 %v4915_v35  ;;  %v317_v12 = vld [vmem:[%s7279_s1 + $0x918] sm:$0xff]  ;;  %3804 = vmatprep.mubr.bf16.mxu0 %v5647_v30  ;;  %v4867_v35 = vcombine.low %v293_v19, %v297_v20 }
 0x1c8   :  { %v3519_v45 = vpop.f32.mrf.mxu1  ;;  %3764 = vmatmul.mubr.bf16.vlgmr.msra.gmra.mxu1 %v5651_v31  ;;  %v6879_v47 = vpop.f32.mrf.mxu0  ;;  %3774 = vmatprep.subr.bf16.mxu0 %v4908_v36  ;;  %v321_v31 = vld [vmem:[%s7279_s1 + $0x938] sm:$0xff]  ;;  %v4860_v36 = vcombine.high %v285_v29, %v289_v33 }
 0x1c9   :  { %3814 = vmatpush1.bf16.msra.mxu1 %v5043_v52  ;;  %v6881_v49 = vadd.f32 %v3519_v45, %v3479_v44  ;;  %3845 = vmatprep.mubr.bf16.mxu1 %v5668_v40  ;;  %v4892_v0 = vcombine.high %v317_v12, %v321_v31  ;;  %v437_v40 = vld [vmem:[%s7279_s1 + $0xcd8] sm:$0xff]  ;;  %v4891_v22 = vcombine.low %v317_v12, %v321_v31 }
 0x1ca   :  { %v6883_v51 = vpop.f32.mrf.mxu1  ;;  %3815 = vmatprep.subr.bf16.mxu1 %v5036_v37  ;;  %v3482_v55 = vpop.f32.mrf.mxu0  ;;  %v5012_v7 = vcombine.high %v437_v40, %v441_v4  ;;  %v5011_v16 = vcombine.low %v437_v40, %v441_v4  ;;  %v417_v13 = vld [vmem:[%s7279_s1 + $0xc38] sm:$0xff]  ;;  %v4995_v52 = vcombine.low %v421_v21, %v425_v25  ;;  %v4980_v45 = vcombine.high %v405_v53, %v409_v62 }
 0x1cb   :  { %3775 = vmatpush1.bf16.msra.mxu0 %v4907_v46  ;;  %v4988_v37 = vcombine.high %v413_v34, %v417_v13  ;;  %v533_v39 = vld [vmem:[%s7279_s1 + $0xfd8] sm:$0xff]  ;;  %v4987_v44 = vcombine.low %v413_v34, %v417_v13  ;;  %v4979_v31 = vcombine.low %v405_v53, %v409_v62 }
 0x1cc   :  { %v3523_v58 = vpop.f32.mrf.mxu1  ;;  %v3483_v60 = vpop.f32.mrf.mxu0  ;;  %3776 = vmatprep.subr.bf16.mxu0 %v4900_v48  ;;  %v5108_v46 = vcombine.high %v533_v39, %v537_v41  ;;  %v401_v48 = vld [vmem:[%s7279_s1 + $0xbb8] sm:$0xff]  ;;  %v5107_v55 = vcombine.low %v533_v39, %v537_v41 }
 0x1cd   :  { %3816 = vmatpush1.bf16.msra.mxu1 %v5035_v23  ;;  %v397_v23 = vld [vmem:[%s7279_s1 + $0xb98] sm:$0xff] }
 0x1ce   :  { %v3524_v30 = vpop.f32.mrf.mxu1  ;;  %3817 = vmatprep.subr.bf16.mxu1 %v5028_v54  ;;  %v525_v54 = vld [vmem:[%s7279_s1 + $0xf98] sm:$0xff]  ;;  %v4972_v56 = vcombine.high %v397_v23, %v401_v48 }
 0x1cf   :  { %3777 = vmatpush1.bf16.msra.mxu0 %v4899_v59  ;;  %v529_v12 = vld [vmem:[%s7279_s1 + $0xfb8] sm:$0xff] }
 0x1d0   :  { %3778 = vmatprep.subr.bf16.mxu0 %v4892_v0  ;;  %v5100_v57 = vcombine.high %v525_v54, %v529_v12  ;;  %v389_v58 = vld [vmem:[%s7279_s1 + $0xb58] sm:$0xff]  ;;  %v4971_v0 = vcombine.low %v397_v23, %v401_v48  ;;  %v5099_v30 = vcombine.low %v525_v54, %v529_v12 }
 0x1d1   :  { %3818 = vmatpush1.bf16.msra.mxu1 %v5027_v61  ;;  %v393_v59 = vld [vmem:[%s7279_s1 + $0xb78] sm:$0xff] }
 0x1d2   :  { %3819 = vmatprep.subr.bf16.mxu1 %v5020_v1  ;;  %v517_v60 = vld [vmem:[%s7279_s1 + $0xf58] sm:$0xff]  ;;  %v4964_v1 = vcombine.high %v389_v58, %v393_v59 }
 0x1d3   :  { %3779 = vmatpush1.bf16.msra.mxu0 %v4891_v22  ;;  %v521_v61 = vld [vmem:[%s7279_s1 + $0xf78] sm:$0xff] }
 0x1d4   :  { %3780 = vmatprep.subr.bf16.mxu0 %v4884_v6  ;;  %v5092_v2 = vcombine.high %v517_v60, %v521_v61  ;;  %v381_v3 = vld [vmem:[%s7279_s1 + $0xb18] sm:$0xff]  ;;  %v5091_v6 = vcombine.low %v517_v60, %v521_v61 }
 0x1d5   :  { %3820 = vmatpush1.bf16.msra.mxu1 %v5019_v5  ;;  %v385_v40 = vld [vmem:[%s7279_s1 + $0xb38] sm:$0xff]  ;;  %v4963_v5 = vcombine.low %v389_v58, %v393_v59  ;;  %v5271_v58 = vld [vmem:[%s7281_s3 + $0x70] sm:$0xff]  }
 0x1d6   :  { %3821 = vmatprep.subr.bf16.mxu1 %v5012_v7  ;;  %v509_v4 = vld [vmem:[%s7279_s1 + $0xf18] sm:$0xff]  ;;  %v4956_v7 = vcombine.high %v381_v3, %v385_v40 }
 0x1d7   :  { %3781 = vmatpush1.bf16.msra.mxu0 %v4883_v15  ;;  %v513_v22 = vld [vmem:[%s7279_s1 + $0xf38] sm:$0xff] }
 0x1d8   :  { %3782 = vmatprep.subr.bf16.mxu0 %v4876_v17  ;;  %v5084_v8 = vcombine.high %v509_v4, %v513_v22  ;;  %v373_v10 = vld [vmem:[%s7279_s1 + $0xad8] sm:$0xff]  ;;  %v5083_v17 = vcombine.low %v509_v4, %v513_v22  ;;  %v5277_v22 = vld [vmem:[%s7281_s3 + $0x28] sm:$0xff]  }
 0x1d9   :  { %3822 = vmatpush1.bf16.msra.mxu1 %v5011_v16  ;;  %v377_v11 = vld [vmem:[%s7279_s1 + $0xaf8] sm:$0xff]  ;;  %v4955_v16 = vcombine.low %v381_v3, %v385_v40 }
 0x1da   :  { %3823 = vmatprep.subr.bf16.mxu1 %v5004_v18  ;;  %v501_v14 = vld [vmem:[%s7279_s1 + $0xed8] sm:$0xff]  ;;  %v4948_v18 = vcombine.high %v373_v10, %v377_v11 }
 0x1db   :  { %3783 = vmatpush1.bf16.msra.mxu0 %v4875_v26  ;;  %v505_v15 = vld [vmem:[%s7279_s1 + $0xef8] sm:$0xff] }
 0x1dc   :  { %3784 = vmatprep.subr.bf16.mxu0 %v4868_v9  ;;  %v5076_v19 = vcombine.high %v501_v14, %v505_v15  ;;  %v365_v20 = vld [vmem:[%s7279_s1 + $0xa98] sm:$0xff]  ;;  %v5075_v9 = vcombine.low %v501_v14, %v505_v15  ;;  %v5282_v14 = vld [vmem:[%s7281_s3 + $0xa0] sm:$0xff]  }
 0x1dd   :  { %3824 = vmatpush1.bf16.msra.mxu1 %v5003_v27  ;;  %v369_v21 = vld [vmem:[%s7279_s1 + $0xab8] sm:$0xff]  ;;  %v4947_v27 = vcombine.low %v373_v10, %v377_v11  ;;  %v5280_v10 = vld [vmem:[%s7281_s3 + $0xe0] sm:$0xff]  }
 0x1de   :  { %3825 = vmatprep.subr.bf16.mxu1 %v4996_v28  ;;  %v493_v25 = vld [vmem:[%s7279_s1 + $0xe98] sm:$0xff]  ;;  %v4940_v28 = vcombine.high %v365_v20, %v369_v21  ;;  %v5281_v11 = vld [vmem:[%s7281_s3 + $0x20] sm:$0xff]  }
 0x1df   :  { %3785 = vmatpush1.bf16.msra.mxu0 %v4867_v35  ;;  %v497_v26 = vld [vmem:[%s7279_s1 + $0xeb8] sm:$0xff] }
 0x1e0   :  { %3786 = vmatprep.subr.bf16.mxu0 %v4860_v36  ;;  %v5068_v29 = vcombine.high %v493_v25, %v497_v26  ;;  %v357_v33 = vld [vmem:[%s7279_s1 + $0xa58] sm:$0xff]  ;;  %v5067_v36 = vcombine.low %v493_v25, %v497_v26  ;;  %v5290_v25 = vld [vmem:[%s7281_s3 + $0x90] sm:$0xff]   ;;  %v5291_v26 = vld [vmem:[%s7281_s3 + $0x48] sm:$0xff]  }
 0x1e1   :  { %3826 = vmatpush1.bf16.msra.mxu1 %v4995_v52  ;;  %v361_v34 = vld [vmem:[%s7279_s1 + $0xa78] sm:$0xff]  ;;  %v4939_v52 = vcombine.low %v365_v20, %v369_v21  ;;  %v5288_v20 = vld [vmem:[%s7281_s3 + $0xd0] sm:$0xff]  }
 0x1e2   :  { %3827 = vmatprep.subr.bf16.mxu1 %v4988_v37  ;;  %v485_v13 = vld [vmem:[%s7279_s1 + $0xe58] sm:$0xff]  ;;  %v4932_v37 = vcombine.high %v357_v33, %v361_v34  ;;  %v5289_v21 = vld [vmem:[%s7281_s3 + $0x10] sm:$0xff]  }
 0x1e3   :  { %3787 = vmatpush1.bf16.msra.mxu0 %v4859_v42  ;;  %v489_v35 = vld [vmem:[%s7279_s1 + $0xe78] sm:$0xff] }
 0x1e4   :  { %3788 = vmatprep.subr.bf16.mxu0 %v4980_v45  ;;  %v5060_v53 = vcombine.high %v485_v13, %v489_v35  ;;  %v349_v62 = vld [vmem:[%s7279_s1 + $0xa18] sm:$0xff]  ;;  %v4931_v45 = vcombine.low %v357_v33, %v361_v34  ;;  %v5296_v33 = vld [vmem:[%s7281_s3 + $0xc0] sm:$0xff]  }
 0x1e5   :  { %3828 = vmatpush1.bf16.msra.mxu1 %v4987_v44  ;;  %v353_v39 = vld [vmem:[%s7279_s1 + $0xa38] sm:$0xff]  ;;  %v3481_v44 = vadd.f32 %v6879_v47, %v6694_v24  ;;  %v3855_v47 = vmax.f32 %v6490_v38, 0.0  ;;  %v5272_v38 = vld [vmem:[%s7281_s3 + $0xf0] sm:$0xff]   ;;  %v5297_v34 = vld [vmem:[%s7281_s3] sm:$0xff]  }
 0x1e6   :  { %3829 = vmatprep.subr.bf16.mxu1 %v5108_v46  ;;  %v477_v41 = vld [vmem:[%s7279_s1 + $0xe18] sm:$0xff]  ;;  %v5059_v46 = vcombine.low %v485_v13, %v489_v35  ;;  %v4924_v23 = vcombine.high %v349_v62, %v353_v39  ;;  %v4923_v12 = vcombine.low %v349_v62, %v353_v39  ;;  %v3854_v13 = vmax.f32 %v6473_v63, 0.0  ;;  %v5298_v35 = vld [vmem:[%s7281_s3 + $0x80] sm:$0xff]   ;;  %v5301_v62 = vld [vmem:[%s7281_s3 + $0x170] sm:$0xff]  }
 0x1e7   :  { %3789 = vmatpush2.bf16.msra.mxu0 %v4979_v31  ;;  %v481_v42 = vld [vmem:[%s7279_s1 + $0xe38] sm:$0xff]  ;;  %v3522_v54 = vadd.f32 %v6883_v51, %v3481_v44  ;;  %v3863_v59 = vpack.c.bf16 %v3855_v47, %v3855_v47  ;;  %v5303_v44 = vld [vmem:[%s7281_s3 + $0x168] sm:$0xff]  }
 0x1e8   :  { %3790 = vmatprep.subr.bf16.mxu0 %v4972_v56  ;;  %v5052_v48 = vcombine.high %v477_v41, %v481_v42  ;;  %v5051_v31 = vcombine.low %v477_v41, %v481_v42  ;;  %v5268_v24 = vld [vmem:[%s7281_s3 + $0xf8] sm:$0xff]   ;;  %v5317_v41 = vld [vmem:[%s7281_s3 + $0x1f0] sm:$0xff]  }
 0x1e9   :  { %3830 = vmatpush2.bf16.msra.mxu1 %v5107_v55  ;;  %v5267_v55 = vld [vmem:[%s7281_s3 + $0x78] sm:$0xff]   ;;  %v3857_v56 = vmax.f32 %v3522_v54, 0.0  ;;  %v5302_v42 = vld [vmem:[%s7281_s3 + $0x130] sm:$0xff]   ;;  %v5320_v54 = vld [vmem:[%s7281_s3 + $0x1a8] sm:$0xff]  }
 0x1ea   :  { %3831 = vmatprep.subr.bf16.mxu1 %v5100_v57  ;;  %v5269_v51 = vld [vmem:[%s7281_s3 + $0x38] sm:$0xff]  }
 0x1eb   :  { %3791 = vmatpush2.bf16.msra.mxu0 %v4971_v0  ;;  %v5270_v57 = vld [vmem:[%s7281_s3 + $0xb8] sm:$0xff]   ;;  %v3865_v61 = vpack.c.bf16 %v3857_v56, %v3857_v56 }
 0x1ec   :  { %3792 = vmatprep.subr.bf16.mxu0 %v4964_v1  ;;  %v5283_v15 = vld [vmem:[%s7281_s3 + $0x58] sm:$0xff]  }
 0x1ed   :  { %3832 = vmatpush2.bf16.msra.mxu1 %v5099_v30  ;;  %v5273_v30 = vld [vmem:[%s7281_s3 + $0x30] sm:$0xff]   ;;  %v5300_v63 = vld [vmem:[%s7281_s3 + $0x138] sm:$0xff]  }
 0x1ee   :  { %3833 = vmatprep.subr.bf16.mxu1 %v5092_v2  ;;  %v5275_v2 = vld [vmem:[%s7281_s3 + $0x68] sm:$0xff]   ;;  %v5323_v47 = vld [vmem:[%s7281_s3 + $0x1d8] sm:$0xff]  }
 0x1ef   :  { %3793 = vmatpush2.bf16.msra.mxu0 %v4963_v5  ;;  %v5308_v56 = vld [vmem:[%s7281_s3 + $0x118] sm:$0xff]  }
 0x1f0   :  { %3794 = vmatprep.subr.bf16.mxu0 %v4956_v7  ;;  %v5279_v7 = vld [vmem:[%s7281_s3 + $0x60] sm:$0xff]  }
 0x1f1   :  { %3834 = vmatpush2.bf16.msra.mxu1 %v5091_v6  ;;  %v5278_v6 = vld [vmem:[%s7281_s3 + $0xa8] sm:$0xff]  }
 0x1f2   :  { %3835 = vmatprep.subr.bf16.mxu1 %v5084_v8 }
 0x1f3   :  { %3795 = vmatpush2.bf16.msra.mxu0 %v4955_v16  ;;  %v5284_v16 = vld [vmem:[%s7281_s3 + $0xd8] sm:$0xff]  }
 0x1f4   :  { %3796 = vmatprep.subr.bf16.mxu0 %v4948_v18  ;;  %v5286_v18 = vld [vmem:[%s7281_s3 + $0x98] sm:$0xff]  }
 0x1f5   :  { %3836 = vmatpush2.bf16.msra.mxu1 %v5083_v17  ;;  %v5285_v17 = vld [vmem:[%s7281_s3 + $0x18] sm:$0xff]  }
 0x1f6   :  { %3837 = vmatprep.subr.bf16.mxu1 %v5076_v19  ;;  %v5287_v19 = vld [vmem:[%s7281_s3 + $0x50] sm:$0xff]  }
 0x1f7   :  { %3797 = vmatpush2.bf16.msra.mxu0 %v4947_v27  ;;  %v5292_v27 = vld [vmem:[%s7281_s3 + $0xc8] sm:$0xff]  }
 0x1f8   :  { %3798 = vmatprep.subr.bf16.mxu0 %v4940_v28  ;;  %v5294_v28 = vld [vmem:[%s7281_s3 + $0x88] sm:$0xff]  }
 0x1f9   :  { %3838 = vmatpush2.bf16.msra.mxu1 %v5075_v9  ;;  %v5293_v9 = vld [vmem:[%s7281_s3 + $0x8] sm:$0xff]  }
 0x1fa   :  { %3839 = vmatprep.subr.bf16.mxu1 %v5068_v29  ;;  %v5295_v29 = vld [vmem:[%s7281_s3 + $0x40] sm:$0xff]  }
 0x1fb   :  { %3799 = vmatpush2.bf16.msra.mxu0 %v4939_v52  ;;  %v5299_v52 = vld [vmem:[%s7281_s3 + $0x178] sm:$0xff]  }
 0x1fc   :  { %3800 = vmatprep.subr.bf16.mxu0 %v4932_v37  ;;  %v5315_v37 = vld [vmem:[%s7281_s3 + $0x1f8] sm:$0xff]  }
 0x1fd   :  { %3840 = vmatpush2.bf16.msra.mxu1 %v5067_v36  ;;  %v3856_v36 = vmax.f32 %v6881_v49, 0.0  ;;  %v5316_v49 = vld [vmem:[%s7281_s3 + $0x1b8] sm:$0xff]  }
 0x1fe   :  { %3841 = vmatprep.subr.bf16.mxu1 %v5060_v53  ;;  %v3862_v53 = vpack.c.bf16 %v3854_v13, %v3854_v13 }
 0x1ff   :  { %3801 = vmatpush2.bf16.msra.mxu0 %v4931_v45  ;;  %v3864_v39 = vpack.c.bf16 %v3856_v36, %v3856_v36  ;;  %v5318_v45 = vld [vmem:[%s7281_s3 + $0x1b0] sm:$0xff]  }
 0x200   :  { %3802 = vmatprep.subr.bf16.mxu0 %v4924_v23  ;;  %v5304_v23 = vld [vmem:[%s7281_s3 + $0x128] sm:$0xff]  }
 0x201   :  { %3842 = vmatpush2.bf16.msra.mxu1 %v5059_v46  ;;  %v5319_v46 = vld [vmem:[%s7281_s3 + $0x1e8] sm:$0xff]  }
 0x202   :  { %3843 = vmatprep.subr.bf16.mxu1 %v5052_v48  ;;  %v5305_v48 = vld [vmem:[%s7281_s3 + $0x160] sm:$0xff]  }
 0x203   :  { %3803 = vmatpush2.bf16.msra.mxu0 %v4923_v12  ;;  %v5321_v12 = vld [vmem:[%s7281_s3 + $0x1e0] sm:$0xff]  }
 0x204   :  { %5176 = vmatprep.subr.bf16.mxu0 %v5267_v55  ;;  %v5307_v55 = vld [vmem:[%s7281_s3 + $0x158] sm:$0xff]  }
 0x205   :  { %3844 = vmatpush2.bf16.msra.mxu1 %v5051_v31  ;;  %v5306_v31 = vld [vmem:[%s7281_s3 + $0x120] sm:$0xff]  }
 0x206   :  { %5198 = vmatprep.subr.bf16.mxu1 %v5268_v24  ;;  %v7062_v60 = vpop.f32.mrf.mxu0  ;;  %3805 = vmatmul.mubr.bf16.vlgmr.msra.gmra.mxu0 %v5554_v32  ;;  %v5274_v32 = vld [vmem:[%s7281_s3 + $0xb0] sm:$0xff]   ;;  %v5322_v24 = vld [vmem:[%s7281_s3 + $0x1a0] sm:$0xff]  }
 0x207   :  { %5177 = vmatpush3.bf16.msra.mxu0 %v5269_v51  ;;  %4421 = vmatprep.mubr.bf16.mxu0 %v3863_v59  ;;  %v5309_v51 = vld [vmem:[%s7281_s3 + $0x150] sm:$0xff]   ;;  %v5311_v59 = vld [vmem:[%s7281_s3 + $0x148] sm:$0xff]  }
 0x208   :  { %v7068_v0 = vpop.f32.mrf.mxu1  ;;  %3846 = vmatmul.mubr.bf16.vlgmr.msra.gmra.mxu1 %v5855_v50  ;;  %v7074_v1 = vpop.f32.mrf.mxu0  ;;  %5178 = vmatprep.subr.bf16.mxu0 %v5271_v58  ;;  %v5276_v50 = vld [vmem:[%s7281_s3 + $0xe8] sm:$0xff]   ;;  %v5310_v58 = vld [vmem:[%s7281_s3 + $0x110] sm:$0xff]  }
 0x209   :  { %5199 = vmatpush3.bf16.msra.mxu1 %v5270_v57  ;;  %4461 = vmatprep.mubr.bf16.mxu1 %v3865_v61  ;;  %v5324_v57 = vld [vmem:[%s7281_s3 + $0x198] sm:$0xff]   ;;  %v562_v61 = vsub.s32 5, %v5461_v43 }
 0x20a   :  { %v7082_v3 = vpop.f32.mrf.mxu1  ;;  %v3564_v40 = vpop.f32.mrf.mxu0  ;;  %5200 = vmatprep.subr.bf16.mxu1 %v5272_v38  ;;  %v558_v38 = vsub.s32 4, %v5461_v43 }
 0x20b   :  { %5179 = vmatpush3.bf16.msra.mxu0 %v5273_v30  ;;  %v5312_v30 = vld [vmem:[%s7281_s3 + $0x108] sm:$0xff]  }
 0x20c   :  { %v3605_v4 = vpop.f32.mrf.mxu1  ;;  %v3565_v5 = vpop.f32.mrf.mxu0  ;;  %5180 = vmatprep.subr.bf16.mxu0 %v5275_v2  ;;  %v5335_v2 = vld [vmem:[%s7280_s2] sm:$0xff] }
 0x20d   :  { %5201 = vmatpush3.bf16.msra.mxu1 %v5274_v32  ;;  %v5313_v32 = vld [vmem:[%s7281_s3 + $0x140] sm:$0xff]   ;;  %v563_v40 = vrot.slane %v5335_v2, %v562_v61 }
 0x20e   :  { %v3606_v8 = vpop.f32.mrf.mxu1  ;;  %5202 = vmatprep.subr.bf16.mxu1 %v5276_v50  ;;  %v559_v50 = vrot.slane %v5335_v2, %v558_v38  ;;  %v5314_v4 = vld [vmem:[%s7281_s3 + $0x100] sm:$0xff]  }
 0x20f   :  { %5181 = vmatpush3.bf16.msra.mxu0 %v5277_v22  ;;  %v3563_v5 = vadd.f32 %v7074_v1, %v563_v40  ;;  %v5325_v8 = vld [vmem:[%s7281_s3 + $0x1d0] sm:$0xff]  }
 0x210   :  { %5182 = vmatprep.subr.bf16.mxu0 %v5279_v7  ;;  %v3561_v22 = vadd.f32 %v7062_v60, %v559_v50 }
 0x211   :  { %5203 = vmatpush3.bf16.msra.mxu1 %v5278_v6 }
 0x212   :  { %5204 = vmatprep.subr.bf16.mxu1 %v5280_v10  ;;  %v3602_v6 = vadd.f32 %v7068_v0, %v3561_v22  ;;  %v3604_v10 = vadd.f32 %v7082_v3, %v3563_v5  ;;  %v5328_v3 = vld [vmem:[%s7281_s3 + $0x188] sm:$0xff]  }
 0x213   :  { %5183 = vmatpush3.bf16.msra.mxu0 %v5281_v11 }
 0x214   :  { %5184 = vmatprep.subr.bf16.mxu0 %v5283_v15  ;;  %v5326_v15 = vld [vmem:[%s7281_s3 + $0x190] sm:$0xff]  }
 0x215   :  { %5205 = vmatpush3.bf16.msra.mxu1 %v5282_v14 }
 0x216   :  { %5206 = vmatprep.subr.bf16.mxu1 %v5284_v16 }
 0x217   :  { %5185 = vmatpush3.bf16.msra.mxu0 %v5285_v17 }
 0x218   :  { %5186 = vmatprep.subr.bf16.mxu0 %v5287_v19 }
 0x219   :  { %5207 = vmatpush3.bf16.msra.mxu1 %v5286_v18  ;;  %v5327_v18 = vld [vmem:[%s7281_s3 + $0x1c8] sm:$0xff]  }
 0x21a   :  { %5208 = vmatprep.subr.bf16.mxu1 %v5288_v20 }
 0x21b   :  { %5187 = vmatpush3.bf16.msra.mxu0 %v5289_v21 }
 0x21c   :  { %5188 = vmatprep.subr.bf16.mxu0 %v5291_v26 }
 0x21d   :  { %5209 = vmatpush3.bf16.msra.mxu1 %v5290_v25 }
 0x21e   :  { %5210 = vmatprep.subr.bf16.mxu1 %v5292_v27 }
 0x21f   :  { %5189 = vmatpush3.bf16.msra.mxu0 %v5293_v9  ;;  %v5329_v9 = vld [vmem:[%s7281_s3 + $0x1c0] sm:$0xff]  }
 0x220   :  { %5190 = vmatprep.subr.bf16.mxu0 %v5295_v29  ;;  %v5330_v29 = vld [vmem:[%s7281_s3 + $0x180] sm:$0xff]  }
 0x221   :  { %5211 = vmatpush3.bf16.msra.mxu1 %v5294_v28 }
 0x222   :  { %5212 = vmatprep.subr.bf16.mxu1 %v5296_v33 }
 0x223   :  { %5191 = vmatpush3.bf16.msra.mxu0 %v5297_v34 }
 0x224   :  { %5220 = vmatprep.subr.bf16.mxu0 %v5299_v52 }
 0x225   :  { %5213 = vmatpush3.bf16.msra.mxu1 %v5298_v35 }
 0x226   :  { %5242 = vmatprep.subr.bf16.mxu1 %v5315_v37  ;;  %4422 = vmatmul.mubr.bf16.vlgmr.msra.gmra.mxu0 %v3862_v53 }
 0x227   :  { %5221 = vmatpush3.bf16.msra.mxu0 %v5300_v63 }
 0x228   :  { %4462 = vmatmul.mubr.bf16.vlgmr.msra.gmra.mxu1 %v3864_v39  ;;  %5222 = vmatprep.subr.bf16.mxu0 %v5301_v62  ;;  %v566_v62 = vsub.s32 6, %v5461_v43 }
 0x229   :  { %5243 = vmatpush3.bf16.msra.mxu1 %v5316_v49  ;;  %v570_v49 = vsub.s32 7, %v5461_v43 }
 0x22a   :  { %5244 = vmatprep.subr.bf16.mxu1 %v5317_v41  ;;  %v567_v39 = vrot.slane %v5335_v2, %v566_v62 }
 0x22b   :  { %5223 = vmatpush3.bf16.msra.mxu0 %v5302_v42  ;;  %v571_v41 = vrot.slane %v5335_v2, %v570_v49  ;;  %v5109_v2 = vld [vmem:[%s7282_s4] ss:$0 sm:$0xff] }
 0x22c   :  { %5224 = vmatprep.subr.bf16.mxu0 %v5303_v44 }
 0x22d   :  { %5245 = vmatpush3.bf16.msra.mxu1 %v5318_v45 }
 0x22e   :  { %5246 = vmatprep.subr.bf16.mxu1 %v5319_v46 }
 0x22f   :  { %5225 = vmatpush3.bf16.msra.mxu0 %v5304_v23 }
 0x230   :  { %5226 = vmatprep.subr.bf16.mxu0 %v5305_v48 }
 0x231   :  { %5247 = vmatpush3.bf16.msra.mxu1 %v5320_v54 }
 0x232   :  { %5248 = vmatprep.subr.bf16.mxu1 %v5321_v12 }
 0x233   :  { %5227 = vmatpush3.bf16.msra.mxu0 %v5306_v31 }
 0x234   :  { %5228 = vmatprep.subr.bf16.mxu0 %v5307_v55 }
 0x235   :  { %5249 = vmatpush3.bf16.msra.mxu1 %v5322_v24 }
 0x236   :  { %5250 = vmatprep.subr.bf16.mxu1 %v5323_v47 }
 0x237   :  { %5229 = vmatpush3.bf16.msra.mxu0 %v5308_v56 }
 0x238   :  { %5230 = vmatprep.subr.bf16.mxu0 %v5309_v51 }
 0x239   :  { %5251 = vmatpush3.bf16.msra.mxu1 %v5324_v57 }
 0x23a   :  { %5252 = vmatprep.subr.bf16.mxu1 %v5325_v8 }
 0x23b   :  { %5231 = vmatpush3.bf16.msra.mxu0 %v5310_v58 }
 0x23c   :  { %5232 = vmatprep.subr.bf16.mxu0 %v5311_v59 }
 0x23d   :  { %5253 = vmatpush3.bf16.msra.mxu1 %v5326_v15 }
 0x23e   :  { %5254 = vmatprep.subr.bf16.mxu1 %v5327_v18 }
 0x23f   :  { %5233 = vmatpush3.bf16.msra.mxu0 %v5312_v30 }
 0x240   :  { %5234 = vmatprep.subr.bf16.mxu0 %v5313_v32 }
 0x241   :  { %5255 = vmatpush3.bf16.msra.mxu1 %v5328_v3 }
 0x242   :  { %5256 = vmatprep.subr.bf16.mxu1 %v5329_v9 }
 0x243   :  { %5235 = vmatpush3.bf16.msra.mxu0 %v5314_v4 }
 0x245   :  { %5257 = vmatpush3.bf16.msra.mxu1 %v5330_v29 }
 0x246   :  { %v3642_v7 = vpop.f32.mrf.mxu0 }
 0x247   :  { %v3643_v11 = vadd.f32 %v3642_v7, %v3602_v6 }
 0x248   :  { %v3683_v14 = vpop.f32.mrf.mxu1  ;;  %v3644_v16 = vpop.f32.mrf.mxu0 }
 0x249   :  { %v3684_v60 = vadd.f32 %v3683_v14, %v3643_v11  ;;  %v3645_v1 = vadd.f32 %v3644_v16, %v3604_v10 }
 0x24a   :  { %v3685_v17 = vpop.f32.mrf.mxu1  ;;  %v3646_v0 = vpop.f32.mrf.mxu0 }
 0x24b   :  { %v3686_v19 = vadd.f32 %v3685_v17, %v3645_v1  ;;  %v3858_v21 = vmax.f32 %v3684_v60, 0.0 }
 0x24c   :  { %v3687_v20 = vpop.f32.mrf.mxu1  ;;  %v3647_v25 = vpop.f32.mrf.mxu0 }
 0x24d   :  { %v3859_v26 = vmax.f32 %v3686_v19, 0.0  ;;  %v3866_v33 = vpack.c.bf16 %v3858_v21, %v3858_v21 }
 0x24e   :  { %v3688_v27 = vpop.f32.mrf.mxu1 }
 0x24f   :  { %v3867_v28 = vpack.c.bf16 %v3859_v26, %v3859_v26 }
 0x251   :  { %4501 = vmatprep.mubr.bf16.mxu0 %v3867_v28 }
 0x252   :  { %4502 = vmatmul.mubr.bf16.vlgmr.msra.gmra.mxu0 %v3866_v33 }
 0x286   :  { %v3724_v34 = vpop.f32.mrf.mxu0 }
 0x287   :  { %v3725_v42 = vadd.f32 %v3724_v34, %v567_v39 }
 0x288   :  { %v3765_v13 = vpop.f32.mrf.mxu1  ;;  %v3726_v35 = vpop.f32.mrf.mxu0 }
 0x289   :  { %v3727_v44 = vadd.f32 %v3726_v35, %v571_v41  ;;  %v3766_v45 = vadd.f32 %v3765_v13, %v3725_v42  ;;  %v5174_v13 = vld [vmem:[%s7283_s5] ss:$0 sm:$0xff] }
 0x28a   :  { %v3767_v52 = vpop.f32.mrf.mxu1  ;;  %v3728_v36 = vpop.f32.mrf.mxu0 }
 0x28b   :  { %v3768_v23 = vadd.f32 %v3767_v52, %v3727_v44  ;;  %v5175_v52 = vld [vmem:[%s7283_s5 + $0x1] ss:$0 sm:$0xff] }
 0x28c   :  { %v3769_v37 = vpop.f32.mrf.mxu1  ;;  %v3729_v63 = vpop.f32.mrf.mxu0 }
 0x28e   :  { %v3770_v53 = vpop.f32.mrf.mxu1 }
 0x2c6   :  { %v3806_v46 = vpop.f32.mrf.mxu0 }
 0x2c7   :  { %v3807_v48 = vadd.f32 %v3806_v46, %v3766_v45 }
 0x2c8   :  { %v3847_v54 = vpop.f32.mrf.mxu1  ;;  %v3808_v12 = vpop.f32.mrf.mxu0 }
 0x2c9   :  { %v3848_v31 = vadd.f32 %v3847_v54, %v3807_v48  ;;  %v3809_v55 = vadd.f32 %v3808_v12, %v3768_v23 }
 0x2ca   :  { %v3849_v24 = vpop.f32.mrf.mxu1  ;;  %v3810_v47 = vpop.f32.mrf.mxu0 }
 0x2cb   :  { %v3850_v56 = vadd.f32 %v3849_v24, %v3809_v55  ;;  %v3860_v57 = vmax.f32 %v3848_v31, 0.0 }
 0x2cc   :  { %v3851_v51 = vpop.f32.mrf.mxu1  ;;  %v3811_v58 = vpop.f32.mrf.mxu0 }
 0x2cd   :  { %v3861_v59 = vmax.f32 %v3850_v56, 0.0  ;;  %v3868_v61 = vpack.c.bf16 %v3860_v57, %v3860_v57 }
 0x2ce   :  { %v3852_v43 = vpop.f32.mrf.mxu1 }
 0x2cf   :  { %v3869_v38 = vpack.c.bf16 %v3861_v59, %v3861_v59 }
 0x2d1   :  { %4541 = vmatprep.mubr.bf16.mxu1 %v3869_v38 }
 0x2d2   :  { %4542 = vmatmul.mubr.bf16.vlgmr.msra.gmra.mxu1 %v3868_v61 }
 0x2e6   :  { %v5192_v30 = vpop.f32.mrf.mxu0 }
 0x2e8   :  { %v5214_v32 = vpop.f32.mrf.mxu1  ;;  %v5193_v50 = vpop.f32.mrf.mxu0 }
 0x2e9   :  { %v5194_v40 = vadd.f32 %v5193_v50, %v5192_v30 }
 0x2ea   :  { %v5215_v4 = vpop.f32.mrf.mxu1  ;;  %v5195_v5 = vpop.f32.mrf.mxu0 }
 0x2eb   :  { %v5216_v22 = vadd.f32 %v5215_v4, %v5214_v32  ;;  %v4424_v6 = vadd.f32 %v5194_v40, %v5109_v2 }
 0x2ec   :  { %v5217_v7 = vpop.f32.mrf.mxu1  ;;  %v5196_v8 = vpop.f32.mrf.mxu0 }
 0x2ed   :  { %v4464_v10 = vadd.f32 %v5216_v22, %v4424_v6 }
 0x2ee   :  { %v5218_v11 = vpop.f32.mrf.mxu1 }
 0x312   :  { %v5236_v14 = vpop.f32.mrf.mxu0 }
 0x314   :  { %v5237_v15 = vpop.f32.mrf.mxu0 }
 0x315   :  { %v5238_v16 = vadd.f32 %v5237_v15, %v5236_v14 }
 0x316   :  { %v5239_v60 = vpop.f32.mrf.mxu0 }
 0x317   :  { %v4504_v1 = vadd.f32 %v5238_v16, %v4464_v10 }
 0x318   :  { %v5240_v17 = vpop.f32.mrf.mxu0 }
 0x392   :  { %v5258_v0 = vpop.f32.mrf.mxu1 }
 0x394   :  { %v5259_v18 = vpop.f32.mrf.mxu1 }
 0x395   :  { %v5260_v19 = vadd.f32 %v5259_v18, %v5258_v0 }
 0x396   :  { %v5261_v20 = vpop.f32.mrf.mxu1 }
 0x397   :  { %v4544_v3 = vadd.f32 %v5260_v19, %v4504_v1 }
 0x398   :  { %v5262_v21 = vpop.f32.mrf.mxu1 }
 0x399   :  { %v4550_v25 = vsel %vm4549_vm0, %v4544_v3, -inf }
 0x39a   :  { %4551 = vmax.xlane.f32.xlu0 %v4550_v25 }
 0x423   :  { %v4552_v26 = vpop.xlane.xlu0 %4551 }
 0x424   :  { %v4553_v27 = vsub.f32 %v4544_v3, %v4552_v26 }
 0x426   :  { %v4554_v9 = vmul.f32 1.442695, %v4553_v27 }
 0x428   :  { %5331 = vpow2.f32 %v4554_v9 }
 0x435   :  { %v5332_v28 = vpop.eup %5331 }
 0x436   :  { %v4556_v29 = vsel %vm4549_vm0, %v5332_v28, 0.0 }
 0x437   :  { %4557 = vadd.xlane.f32.xlu0 %v4556_v29 }
 0x4c0   :  { %v4558_v33 = vpop.xlane.xlu0 %4557 }
 0x4c1   :  { %5333 = vrcp.f32 %v4558_v33 }
 0x4ce   :  { %v5334_v34 = vpop.eup %5333 }
 0x4cf   :  { %v4560_v35 = vmul.f32 %v5334_v34, %v5332_v28 }
 0x4d1   :  { %v4566_v36 = vmul.f32 %v5174_v13, %v4560_v35  ;;  %v4575_v63 = vmul.f32 %v5175_v52, %v4560_v35 }
 0x4d3   :  { %v4567_v37 = vsel %vm4549_vm0, %v4566_v36, 0.0  ;;  %v4576_v53 = vsel %vm4549_vm0, %v4575_v63, 0.0 }
 0x4d4   :  { %4568 = vadd.xlane.f32.xlu1 %v4567_v37 }
 0x4d8   :  { %4577 = vadd.xlane.f32.xlu1 %v4576_v53 }
 0x55d   :  { %v4569_v62 = vpop.xlane.xlu1 %4568 }
 0x561   :  { %v4578_v49 = vpop.xlane.xlu1 %4577 }
 0x562   :  { %v4580_v39 = vsel %vm4579_vm1, %v4569_v62, %v4578_v49 }
 0x563   :  { %4582 = vst.msk [vmem:[#allocation2] sm:$0x3] %vm4581_vm2, %v4580_v39 }
 0x564   :  { %5347 = shalt.err (!%p5344_p4)
}
 0x565   :  { %4592 = dma.vmem_to_hbm [thread:$0]  %s4590_s29, 32, %s7284_s6, [#allocation3]  }
 0x566   :  { %5356 = dma.done.wait [#allocation3], 32  }
 0x567   :  { %5357 = vsyncadd [#allocation3], 4294967264 }
 0x568   :  { %4596 = vsyncpa [#allocation3], 1 }

</bundles_post_ra>
